<compile_context>
chip_gen: v5e
topology: v5e:2x2
jax: 0.10.0
libtpu: 0.0.40
codegen_flags: <defaults>
</compile_context>

<pallas_src>
import functools

import jax
import jax.numpy as jnp
from jax import lax
from jax.experimental import pallas as pl
from jax.experimental.pallas import tpu as pltpu

_BIG = 10000.0
_SSIM_C1 = 0.01 ** 2
_SSIM_C2 = 0.03 ** 2

# pltpu.roll is documented to follow jnp.roll's shift convention; a one-off
# probe (run eagerly from __main__ before tracing) confirms it on-device.
_ROLL_JNP_CONVENTION = True


def _probe_roll_convention():
    global _ROLL_JNP_CONVENTION
    try:
        def kernel(x_ref, o_ref):
            o_ref[...] = pltpu.roll(x_ref[...], 1, axis=1)

        x = lax.broadcasted_iota(jnp.float32, (8, 128), 1)
        out = pl.pallas_call(
            kernel, out_shape=jax.ShapeDtypeStruct((8, 128), jnp.float32))(x)
        _ROLL_JNP_CONVENTION = bool(jnp.array_equal(out, jnp.roll(x, 1, axis=1)))
    except Exception:
        _ROLL_JNP_CONVENTION = True


def _shift_fwd(a, k, axis):
    """Circular shift: result[..., j, ...] = a[..., (j + k) % n, ...]."""
    n = a.shape[axis]
    amount = (n - k) if _ROLL_JNP_CONVENTION else k
    return pltpu.roll(a, amount, axis=axis)


@functools.lru_cache(maxsize=1)
def _vmem_limit_bytes():
    """Scoped-VMEM limit: ~75% of physical (≈48 MiB v7x, ≈96 MiB v5e/v6e)."""
    try:
        cap = int(pltpu.get_tpu_info().vmem_capacity_bytes)
    except Exception:  # conservative fallback (v7x-sized)
        cap = 64 * 1024 * 1024
    return max(32 * 1024 * 1024, min(cap * 3 // 4, 100 * 1024 * 1024))


# --------------------------------------------------------------------------
# Kernel A: fused per-view losses (photometric smooth-L1, gradient smooth-L1,
# masked SSIM) over one (batch, view) full-channel slab per grid step.
# Output lanes per (b, v): 0 photo sum, 1 grad-x sum, 2 grad-y sum, 3 ssim sum
# --------------------------------------------------------------------------
def _per_view_loss_kernel(ref_ref, warped_ref, mask_ref, out_ref):
    v = pl.program_id(1)

    ref = ref_ref[...]          # [C, H, W] reference slab (resident over v)
    wrp = warped_ref[...]       # [C, H, W] warped source view
    msk = mask_ref[...]         # [H, W]    warp validity mask (shared across C)
    _, H, W = ref.shape

    col = lax.broadcasted_iota(jnp.int32, (H, W), 1)
    row = lax.broadcasted_iota(jnp.int32, (H, W), 0)
    fx_valid = (col < (W - 1)).astype(jnp.float32)   # forward x-diff valid cols
    fy_valid = (row < (H - 1)).astype(jnp.float32)   # forward y-diff valid rows

    # Smooth-L1 only sees the difference and finite differencing is linear,
    # so photo / grad-x / grad-y all factor through the masked residual e.
    e = (wrp - ref) * msk[None, :, :]

    def sl1_sum(d):             # torch smooth_l1 (beta=1.0), summed
        ad = jnp.abs(d)
        return jnp.sum(jnp.where(ad < 1.0, 0.5 * d * d, ad - 0.5))

    photo_s = sl1_sum(e)
    gx_s = sl1_sum((_shift_fwd(e, 1, axis=2) - e) * fx_valid[None])
    gy_s = sl1_sum((_shift_fwd(e, 1, axis=1) - e) * fy_valid[None])

    lane = lax.broadcasted_iota(jnp.int32, (1, 128), 1)
    out_ref[...] = (jnp.where(lane == 0, photo_s, 0.0)
                    + jnp.where(lane == 1, gx_s, 0.0)
                    + jnp.where(lane == 2, gy_s, 0.0))

    # SSIM only contributes for source views 1 and 2 (reference: `if view < 3`)
    @pl.when(v < 2)
    def _ssim():
        def pool3(a):
            # Separable 3x3 "valid" average pool at full shape via rolls; only
            # the [0:H-2, 0:W-2] positions are meaningful (masked pre-sum).
            ax_w = a.ndim - 1
            ax_h = a.ndim - 2
            h = a + _shift_fwd(a, 1, axis=ax_w) + _shift_fwd(a, 2, axis=ax_w)
            s = h + _shift_fwd(h, 1, axis=ax_h) + _shift_fwd(h, 2, axis=ax_h)
            return s * (1.0 / 9.0)

        mu_x = pool3(ref)
        mu_y = pool3(wrp)
        sigma_x = pool3(ref * ref) - mu_x * mu_x
        sigma_y = pool3(wrp * wrp) - mu_y * mu_y
        sigma_xy = pool3(ref * wrp) - mu_x * mu_y
        ssim_n = (2.0 * mu_x * mu_y + _SSIM_C1) * (2.0 * sigma_xy + _SSIM_C2)
        ssim_d = ((mu_x * mu_x + sigma_x + _SSIM_C1)
                  * (mu_y * mu_y + sigma_y + _SSIM_C2))
        # exact divide (approx reciprocal dropped per correctness review)
        ssim_map = jnp.clip((1.0 - ssim_n / ssim_d) * 0.5, 0.0, 1.0)
        pool_valid = jnp.logical_and(col < (W - 2), row < (H - 2))
        w = pool3(msk) * pool_valid.astype(jnp.float32)   # pooled ONCE, not per C
        out_ref[...] += jnp.where(lane == 3, jnp.sum(ssim_map * w[None]), 0.0)


def per_view_losses(ref_img, warped_stack, mask_stack):
    Vm1, B, C, H, W = warped_stack.shape
    out = pl.pallas_call(
        _per_view_loss_kernel,
        out_shape=jax.ShapeDtypeStruct((B, Vm1, 1, 128), jnp.float32),
        grid=(B, Vm1),                       # view minor -> ref slab resident
        in_specs=[
            pl.BlockSpec((None, C, H, W), lambda b, v: (b, 0, 0, 0)),
            pl.BlockSpec((None, None, C, H, W), lambda b, v: (v, b, 0, 0, 0)),
            pl.BlockSpec((None, None, H, W), lambda b, v: (v, b, 0, 0)),
        ],
        out_specs=pl.BlockSpec((None, None, 1, 128), lambda b, v: (b, v, 0, 0)),
        compiler_params=pltpu.CompilerParams(
            dimension_semantics=("parallel", "parallel"),
            vmem_limit_bytes=_vmem_limit_bytes()),
    )(ref_img, warped_stack, mask_stack)
    return out[:, :, 0, :4]                  # [B, V-1, 4] raw sums


# --------------------------------------------------------------------------
# Kernel B: per-pixel min-over-views reprojection (top-k, k=1) + image-aware
# depth smoothness.  Grid (B, V-1): running per-pixel min in a VMEM scratch
# (one mask plane resident per step), depth/ref image resident across views.
# --------------------------------------------------------------------------
def _combine_kernel(loss_ref, mask_ref, depth_ref, img_ref, out_ref, min_ref):
    # loss_ref : SMEM [V-1]      per-view scalar reconstruction losses
    # mask_ref : VMEM [H, W]     warp validity mask for this (b, v)
    # depth_ref: VMEM [H, W]     (resident across the view axis)
    # img_ref  : VMEM [C, H, W]  reference image slab (resident across views)
    # out_ref  : VMEM [1, 128]   lanes: 0 reconstr sum, 1 |sx| sum, 2 |sy| sum
    # min_ref  : VMEM [H, W]     running per-pixel min over views
    v = pl.program_id(1)
    cand = loss_ref[v] + _BIG * (1.0 - mask_ref[...])

    @pl.when(v == 0)
    def _init():
        min_ref[...] = cand

    @pl.when(v > 0)
    def _accum():
        min_ref[...] = jnp.minimum(min_ref[...], cand)

    @pl.when(v == pl.num_programs(1) - 1)
    def _finalize():
        repro = min_ref[...]
        recon_s = jnp.sum(repro * (repro < _BIG).astype(jnp.float32))

        d = depth_ref[...]
        img = img_ref[...]
        H, W = d.shape
        col = lax.broadcasted_iota(jnp.int32, (H, W), 1)
        row = lax.broadcasted_iota(jnp.int32, (H, W), 0)
        fx_valid = (col < (W - 1)).astype(jnp.float32)
        fy_valid = (row < (H - 1)).astype(jnp.float32)

        d_dx = (_shift_fwd(d, 1, axis=1) - d) * fx_valid
        d_dy = (_shift_fwd(d, 1, axis=0) - d) * fy_valid
        i_dx = _shift_fwd(img, 1, axis=2) - img
        i_dy = _shift_fwd(img, 1, axis=1) - img
        w_x = jnp.exp(-jnp.mean(jnp.abs(i_dx), axis=0))
        w_y = jnp.exp(-jnp.mean(jnp.abs(i_dy), axis=0))
        sx_s = jnp.sum(jnp.abs(d_dx) * w_x)
        sy_s = jnp.sum(jnp.abs(d_dy) * w_y)

        lane = lax.broadcasted_iota(jnp.int32, (1, 128), 1)
        out_ref[...] = (jnp.where(lane == 0, recon_s, 0.0)
                        + jnp.where(lane == 1, sx_s, 0.0)
                        + jnp.where(lane == 2, sy_s, 0.0))


def combine_losses(loss_vec, mask_stack, depth, ref_img):
    Vm1, B, H, W = mask_stack.shape
    C = ref_img.shape[1]
    out = pl.pallas_call(
        _combine_kernel,
        out_shape=jax.ShapeDtypeStruct((B, 1, 128), jnp.float32),
        grid=(B, Vm1),
        in_specs=[
            pl.BlockSpec(memory_space=pltpu.MemorySpace.SMEM),       # (V-1,) scalars
            pl.BlockSpec((None, None, H, W), lambda b, v: (v, b, 0, 0)),
            pl.BlockSpec((None, H, W), lambda b, v: (b, 0, 0)),
            pl.BlockSpec((None, C, H, W), lambda b, v: (b, 0, 0, 0)),
        ],
        out_specs=pl.BlockSpec((None, 1, 128), lambda b, v: (b, 0, 0)),
        scratch_shapes=[pltpu.VMEM((H, W), jnp.float32)],
        compiler_params=pltpu.CompilerParams(
            dimension_semantics=("parallel", "arbitrary"),
            vmem_limit_bytes=_vmem_limit_bytes()),
    )(loss_vec, mask_stack, depth, ref_img)
    return out[:, 0, :3]                     # [B, 3] raw sums


# --------------------------------------------------------------------------
# Plain-JAX glue: nearest resize, camera algebra, fused warp + bilinear gather
# --------------------------------------------------------------------------
def _stage_resize(x_nchw, stage_idx):
    # F.interpolate(..., mode='nearest') with scale 0.25 / 0.5 on divisible
    # sizes reduces to strided subsampling.
    if stage_idx == 0:
        return x_nchw[:, :, ::4, ::4]
    if stage_idx == 1:
        return x_nchw[:, :, ::2, ::2]
    return x_nchw


def _warp_and_sample(img, M3, Pt, depth):
    """Projective warp + bilinear gather of one source view (plain JAX).

    # TODO(synk): the data-dependent bilinear gather has no clean TPU-Pallas
    # equivalent; per the review, the next (profiling-gated) wins here are a
    # paired x0/x0+1 gather (4 -> 2 gathers) and a bf16 warped_stack
    # intermediate (accuracy check required), so both are left as-is.
    """
    B, C, H, W = img.shape
    u = lax.broadcasted_iota(jnp.float32, (H, W), 1)
    v = lax.broadcasted_iota(jnp.float32, (H, W), 0)
    pix = jnp.stack([u, v, jnp.ones((H, W), jnp.float32)], axis=0)        # [3,H,W]
    q = (jnp.einsum('bij,jhw->bihw', M3, pix) * depth[:, None, :, :]
         + Pt[:, :, None, None])                                          # [B,3,H,W]
    inv = 1.0 / (q[:, 2] + 1e-10)        # matches reference x / (z + 1e-10)
    x = q[:, 0] * inv
    y = q[:, 1] * inv

    x0 = jnp.floor(x).astype(jnp.int32)
    x1 = x0 + 1
    y0 = jnp.floor(y).astype(jnp.int32)
    y1 = y0 + 1
    mask = ((x0 >= 0) & (x1 <= W - 1) & (y0 >= 0) & (y1 <= H - 1)).astype(jnp.float32)
    x0c = jnp.clip(x0, 0, W - 1)
    x1c = jnp.clip(x1, 0, W - 1)
    y0c = jnp.clip(y0, 0, H - 1)
    y1c = jnp.clip(y1, 0, H - 1)

    def gather(yy, xx):
        return jax.vmap(lambda imb, yb, xb: imb[:, yb, xb])(img, yy, xx)   # [B,C,H,W]

    Ia = gather(y0c, x0c)
    Ib = gather(y1c, x0c)
    Ic = gather(y0c, x1c)
    Id = gather(y1c, x1c)
    wx = x1c.astype(jnp.float32) - x
    wy = y1c.astype(jnp.float32) - y
    wa = (wx * wy)[:, None]
    wb = (wx * (1.0 - wy))[:, None]
    wc = ((1.0 - wx) * wy)[:, None]
    wd = ((1.0 - wx) * (1.0 - wy))[:, None]
    warped = wa * Ia + wb * Ib + wc * Ic + wd * Id
    return warped, mask


def _prepare(imgs, cams, depth, stage_idx):
    imgs = imgs.astype(jnp.float32)
    cams = cams.astype(jnp.float32)
    depth = depth.astype(jnp.float32)
    B, V, _, _, _ = imgs.shape

    # keep NCHW so W is the minor (lane) dimension inside the kernels
    ref_img = _stage_resize(imgs[:, 0], stage_idx)            # [B, C, H, W]
    _, _, H, W = ref_img.shape
    assert depth.shape == (B, H, W), "depth must match the stage resolution"

    ref_cam = cams[:, 0]
    K_ref = ref_cam[:, 1, 0:3, 0:3]
    K_ref_inv = jnp.linalg.inv(K_ref)
    R_ref = ref_cam[:, 0, 0:3, 0:3]
    t_ref = ref_cam[:, 0, 0:3, 3:4]

    warped_list, mask_list = [], []
    for view in range(1, V):
        view_img = _stage_resize(imgs[:, view], stage_idx)    # [B, C, H, W]
        view_cam = cams[:, view]
        K_v = view_cam[:, 1, 0:3, 0:3]
        R_v = view_cam[:, 0, 0:3, 0:3]
        t_v = view_cam[:, 0, 0:3, 3:4]

        R = R_v @ jnp.swapaxes(R_ref, 1, 2)    # relative motion ref -> view
        t = t_v - R @ t_ref
        M3 = (K_v @ R) @ K_ref_inv             # fused projective 3x3
        Pt = (K_v @ t)[..., 0]                 # [B, 3]

        warped, mask = _warp_and_sample(view_img, M3, Pt, depth)
        warped_list.append(warped)
        mask_list.append(mask)

    warped_stack = jnp.stack(warped_list, axis=0)             # [V-1, B, C, H, W]
    mask_stack = jnp.stack(mask_list, axis=0)                 # [V-1, B, H, W]
    return ref_img, warped_stack, mask_stack, depth


def unsup_loss(imgs, cams, depth, stage_idx):
    ref_img, warped_stack, mask_stack, depth = _prepare(imgs, cams, depth, stage_idx)
    Vm1, B, C, H, W = warped_stack.shape

    # ---- Pallas kernel A: fused per-(b, view) raw sums --------------------
    sums = per_view_losses(ref_img, warped_stack, mask_stack)   # [B, V-1, 4]
    vsums = jnp.sum(sums, axis=0)                               # [V-1, 4]
    photo = vsums[:, 0] / (B * C * H * W)
    grad = (vsums[:, 1] / (B * C * H * (W - 1))
            + vsums[:, 2] / (B * C * (H - 1) * W))
    recon_v = 0.5 * photo + 0.5 * grad                          # alpha = 0.5
    # lane 3 is identically zero for views >= 2, so the plain sum == `view < 3`
    ssim_loss = jnp.sum(vsums[:, 3]) / (B * C * (H - 2) * (W - 2))

    # ---- Pallas kernel B: min-over-views + depth smoothness ---------------
    csums = combine_losses(recon_v.astype(jnp.float32), mask_stack,
                           depth, ref_img)                      # [B, 3]
    reconstr_loss = jnp.sum(csums[:, 0]) / (B * H * W)
    smooth_loss = (jnp.sum(csums[:, 1]) / (B * H * (W - 1))
                   + jnp.sum(csums[:, 2]) / (B * (H - 1) * W))

    return 12.0 * reconstr_loss + 6.0 * ssim_loss + 0.16 * smooth_loss


# --------------------------------------------------------------------------
# Pure-JAX mirror of the same math (no Pallas) used as an in-script check.
# --------------------------------------------------------------------------
def unsup_loss_reference(imgs, cams, depth, stage_idx):
    ref_img, warped_stack, mask_stack, depth = _prepare(imgs, cams, depth, stage_idx)
    Vm1, B, C, H, W = warped_stack.shape

    def sl1(pred, tgt):
        d = pred - tgt
        ad = jnp.abs(d)
        return jnp.where(ad < 1.0, 0.5 * d * d, ad - 0.5)

    def pool3(a):
        h = a[..., 0:W - 2] + a[..., 1:W - 1] + a[..., 2:W]
        return (h[..., 0:H - 2, :] + h[..., 1:H - 1, :] + h[..., 2:H, :]) / 9.0

    recon, ssim_loss = [], 0.0
    for v in range(Vm1):
        m = mask_stack[v][:, None]
        rm = ref_img * m
        wm = warped_stack[v] * m
        photo = jnp.mean(sl1(wm, rm))
        gx = jnp.mean(sl1(wm[..., 1:] - wm[..., :-1], rm[..., 1:] - rm[..., :-1]))
        gy = jnp.mean(sl1(wm[..., 1:, :] - wm[..., :-1, :],
                          rm[..., 1:, :] - rm[..., :-1, :]))
        recon.append(0.5 * photo + 0.5 * (gx + gy))
        if v < 2:
            x, y = ref_img, warped_stack[v]
            mu_x, mu_y = pool3(x), pool3(y)
            sigma_x = pool3(x * x) - mu_x * mu_x
            sigma_y = pool3(y * y) - mu_y * mu_y
            sigma_xy = pool3(x * y) - mu_x * mu_y
            n = (2.0 * mu_x * mu_y + _SSIM_C1) * (2.0 * sigma_xy + _SSIM_C2)
            d = ((mu_x * mu_x + sigma_x + _SSIM_C1)
                 * (mu_y * mu_y + sigma_y + _SSIM_C2))
            smap = pool3(mask_stack[v])[:, None] * jnp.clip((1.0 - n / d) * 0.5,
                                                            0.0, 1.0)
            ssim_loss = ssim_loss + jnp.mean(smap)

    repro = jnp.stack(recon)[:, None, None, None] + _BIG * (1.0 - mask_stack)
    top = jnp.min(repro, axis=0)
    reconstr_loss = jnp.mean(top * (top < _BIG).astype(jnp.float32))

    d_dx = depth[:, :, :-1] - depth[:, :, 1:]
    d_dy = depth[:, :-1, :] - depth[:, 1:, :]
    i_dx = ref_img[..., :-1] - ref_img[..., 1:]
    i_dy = ref_img[..., :-1, :] - ref_img[..., 1:, :]
    w_x = jnp.exp(-jnp.mean(jnp.abs(i_dx), axis=1))
    w_y = jnp.exp(-jnp.mean(jnp.abs(i_dy), axis=1))
    smooth_loss = jnp.mean(jnp.abs(d_dx * w_x)) + jnp.mean(jnp.abs(d_dy * w_y))

    return 12.0 * reconstr_loss + 6.0 * ssim_loss + 0.16 * smooth_loss


# --------------------------------------------------------------------------
if __name__ == "__main__":
    _probe_roll_convention()   # pin pltpu.roll's shift convention before tracing

    key = jax.random.PRNGKey(0)
    B, V, C, H, W = 2, 3, 3, 16, 16
    k_img, k_depth = jax.random.split(key)

    imgs = jax.random.uniform(k_img, (B, V, C, H, W), dtype=jnp.float32)
    depth = 1.0 + 0.5 * jax.random.uniform(k_depth, (B, H, W), dtype=jnp.float32)

    # cams[b, v, 0] = extrinsic 4x4 ; cams[b, v, 1] = intrinsic (3x3 top-left)
    K4 = jnp.eye(4, dtype=jnp.float32)
    K4 = K4.at[0, 0].set(float(W)).at[1, 1].set(float(H))
    K4 = K4.at[0, 2].set(W / 2.0).at[1, 2].set(H / 2.0)
    cam_list = []
    for vi in range(V):
        E = jnp.eye(4, dtype=jnp.float32).at[0, 3].set(0.05 * vi)
        cam_list.append(jnp.stack([E, K4]))
    cams = jnp.broadcast_to(jnp.stack(cam_list)[None], (B, V, 2, 4, 4))

    loss_fn = jax.jit(unsup_loss, static_argnums=3)
    loss = loss_fn(imgs, cams, depth, 2)
    jax.block_until_ready(loss)
    assert jnp.isfinite(loss), "loss is not finite"

    # Numerical self-check of the Pallas kernels against the pure-JAX mirror.
    ref_fn = jax.jit(unsup_loss_reference, static_argnums=3)
    ref = ref_fn(imgs, cams, depth, 2)
    jax.block_until_ready(ref)
    err = abs(float(loss) - float(ref))
    tol = 1e-3 * max(abs(float(ref)), 1.0)
    assert err < tol, f"Pallas/JAX mismatch: {float(loss)} vs {float(ref)}"

    print("KERNEL_OK")
</pallas_src>

<mosaic_0001>
module attributes {stable_mosaic.version = 11 : i64} {
  func.func @kernel(%arg0: memref<8x128xf32, #tpu.memory_space<vmem>>, %arg1: memref<8x128xf32, #tpu.memory_space<vmem>>) attributes {dimension_semantics = [], scalar_prefetch = 0 : i64, scratch_operands = 0 : i64, tpu.core_type = #tpu.core_type<tc>} {
    %c0 = arith.constant 0 : index
    %c0_0 = arith.constant 0 : index
    %0 = vector.load %arg0[%c0, %c0_0] : memref<8x128xf32, #tpu.memory_space<vmem>>, vector<8x128xf32>
    %c1_i32 = arith.constant 1 : i32
    %1 = tpu.dynamic_rotate %0 by %c1_i32 dim 1 : vector<8x128xf32>, i32 -> vector<8x128xf32>
    %c0_1 = arith.constant 0 : index
    %c0_2 = arith.constant 0 : index
    %2 = vector.load %arg1[%c0_1, %c0_2] : memref<8x128xf32, #tpu.memory_space<vmem>>, vector<8x128xf32>
    tpu.vector_store %arg1[%c0_1, %c0_2], %1 {strides = array<i32>} : memref<8x128xf32, #tpu.memory_space<vmem>>, vector<8x128xf32>,
    return
  }
}

module attributes {stable_mosaic.version = 11 : i64} {
  func.func @_per_view_loss_kernel(%arg0: i32, %arg1: i32, %arg2: memref<1x3x16x16xf32, #tpu.memory_space<vmem>>, %arg3: memref<1x1x3x16x16xf32, #tpu.memory_space<vmem>>, %arg4: memref<1x1x16x16xf32, #tpu.memory_space<vmem>>, %arg5: memref<1x1x1x128xf32, #tpu.memory_space<vmem>>) attributes {dimension_semantics = [#tpu.dimension_semantics<parallel>, #tpu.dimension_semantics<parallel>], iteration_bounds = array<i64: 2, 2>, scalar_prefetch = 0 : i64, scratch_operands = 0 : i64, tpu.core_type = #tpu.core_type<tc>, window_params = [{transform_indices = @transform_0, window_bounds = array<i64: 1, 3, 16, 16>}, {transform_indices = @transform_1, window_bounds = array<i64: 1, 1, 3, 16, 16>}, {transform_indices = @transform_2, window_bounds = array<i64: 1, 1, 16, 16>}, {transform_indices = @transform_3, window_bounds = array<i64: 1, 1, 1, 128>}]} {
    %c0 = arith.constant 0 : index
    %c0_0 = arith.constant 0 : index
    %c0_1 = arith.constant 0 : index
    %c0_2 = arith.constant 0 : index
    %0 = vector.load %arg2[%c0, %c0_0, %c0_1, %c0_2] : memref<1x3x16x16xf32, #tpu.memory_space<vmem>>, vector<1x3x16x16xf32>
    %1 = vector.shape_cast %0 : vector<1x3x16x16xf32> to vector<3x16x16xf32>
    %c0_3 = arith.constant 0 : index
    %c0_4 = arith.constant 0 : index
    %c0_5 = arith.constant 0 : index
    %c0_6 = arith.constant 0 : index
    %c0_7 = arith.constant 0 : index
    %2 = vector.load %arg3[%c0_3, %c0_4, %c0_5, %c0_6, %c0_7] : memref<1x1x3x16x16xf32, #tpu.memory_space<vmem>>, vector<1x1x3x16x16xf32>
    %3 = vector.shape_cast %2 : vector<1x1x3x16x16xf32> to vector<3x16x16xf32>
    %c0_8 = arith.constant 0 : index
    %c0_9 = arith.constant 0 : index
    %c0_10 = arith.constant 0 : index
    %c0_11 = arith.constant 0 : index
    %4 = vector.load %arg4[%c0_8, %c0_9, %c0_10, %c0_11] : memref<1x1x16x16xf32, #tpu.memory_space<vmem>>, vector<1x1x16x16xf32>
    %5 = vector.shape_cast %4 : vector<1x1x16x16xf32> to vector<16x16xf32>
    %6 = tpu.iota {dimensions = array<i32: 1>} : vector<16x16xi32>
    %7 = tpu.iota {dimensions = array<i32: 0>} : vector<16x16xi32>
    %c15_i32 = arith.constant 15 : i32
    %8 = vector.broadcast %c15_i32 : i32 to vector<16x16xi32>
    %9 = arith.cmpi slt, %6, %8 : vector<16x16xi32>
    %10 = arith.extui %9 : vector<16x16xi1> to vector<16x16xi32>
    %11 = arith.sitofp %10 : vector<16x16xi32> to vector<16x16xf32>
    %c15_i32_12 = arith.constant 15 : i32
    %12 = vector.broadcast %c15_i32_12 : i32 to vector<16x16xi32>
    %13 = arith.cmpi slt, %7, %12 : vector<16x16xi32>
    %14 = arith.extui %13 : vector<16x16xi1> to vector<16x16xi32>
    %15 = arith.sitofp %14 : vector<16x16xi32> to vector<16x16xf32>
    %16 = arith.subf %3, %1 : vector<3x16x16xf32>
    %17 = vector.shape_cast %5 : vector<16x16xf32> to vector<1x16x16xf32>
    %18 = vector.broadcast %17 : vector<1x16x16xf32> to vector<3x16x16xf32>
    %19 = arith.mulf %16, %18 : vector<3x16x16xf32>
    %20 = math.absf %19 : vector<3x16x16xf32>
    %cst = arith.constant 1.000000e+00 : f32
    %21 = vector.broadcast %cst : f32 to vector<3x16x16xf32>
    %22 = arith.cmpf olt, %20, %21 : vector<3x16x16xf32>
    %cst_13 = arith.constant 5.000000e-01 : f32
    %23 = vector.broadcast %cst_13 : f32 to vector<3x16x16xf32>
    %24 = arith.mulf %23, %19 : vector<3x16x16xf32>
    %25 = arith.mulf %24, %19 : vector<3x16x16xf32>
    %cst_14 = arith.constant 5.000000e-01 : f32
    %26 = vector.broadcast %cst_14 : f32 to vector<3x16x16xf32>
    %27 = arith.subf %20, %26 : vector<3x16x16xf32>
    %28 = arith.select %22, %25, %27 : vector<3x16x16xi1>, vector<3x16x16xf32>
    %29 = vector.shape_cast %28 : vector<3x16x16xf32> to vector<1x3x16x16xf32>
    %cst_15 = arith.constant dense<0.000000e+00> : vector<1xf32>
    %30 = vector.multi_reduction <add>, %29, %cst_15 [1, 2, 3] : vector<1x3x16x16xf32> to vector<1xf32>
    %31 = vector.shape_cast %30 : vector<1xf32> to vector<1x1x1x1xf32>
    %32 = vector.extract %31[0, 0, 0, 0] : f32 from vector<1x1x1x1xf32>
    %c15_i32_16 = arith.constant 15 : i32
    %33 = tpu.dynamic_rotate %19 by %c15_i32_16 dim 2 : vector<3x16x16xf32>, i32 -> vector<3x16x16xf32>
    %34 = arith.subf %33, %19 : vector<3x16x16xf32>
    %35 = vector.shape_cast %11 : vector<16x16xf32> to vector<1x16x16xf32>
    %36 = vector.broadcast %35 : vector<1x16x16xf32> to vector<3x16x16xf32>
    %37 = arith.mulf %34, %36 : vector<3x16x16xf32>
    %38 = math.absf %37 : vector<3x16x16xf32>
    %cst_17 = arith.constant 1.000000e+00 : f32
    %39 = vector.broadcast %cst_17 : f32 to vector<3x16x16xf32>
    %40 = arith.cmpf olt, %38, %39 : vector<3x16x16xf32>
    %cst_18 = arith.constant 5.000000e-01 : f32
    %41 = vector.broadcast %cst_18 : f32 to vector<3x16x16xf32>
    %42 = arith.mulf %41, %37 : vector<3x16x16xf32>
    %43 = arith.mulf %42, %37 : vector<3x16x16xf32>
    %cst_19 = arith.constant 5.000000e-01 : f32
    %44 = vector.broadcast %cst_19 : f32 to vector<3x16x16xf32>
    %45 = arith.subf %38, %44 : vector<3x16x16xf32>
    %46 = arith.select %40, %43, %45 : vector<3x16x16xi1>, vector<3x16x16xf32>
    %47 = vector.shape_cast %46 : vector<3x16x16xf32> to vector<1x3x16x16xf32>
    %cst_20 = arith.constant dense<0.000000e+00> : vector<1xf32>
    %48 = vector.multi_reduction <add>, %47, %cst_20 [1, 2, 3] : vector<1x3x16x16xf32> to vector<1xf32>
    %49 = vector.shape_cast %48 : vector<1xf32> to vector<1x1x1x1xf32>
    %50 = vector.extract %49[0, 0, 0, 0] : f32 from vector<1x1x1x1xf32>
    %c15_i32_21 = arith.constant 15 : i32
    %51 = tpu.dynamic_rotate %19 by %c15_i32_21 dim 1 : vector<3x16x16xf32>, i32 -> vector<3x16x16xf32>
    %52 = arith.subf %51, %19 : vector<3x16x16xf32>
    %53 = vector.shape_cast %15 : vector<16x16xf32> to vector<1x16x16xf32>
    %54 = vector.broadcast %53 : vector<1x16x16xf32> to vector<3x16x16xf32>
    %55 = arith.mulf %52, %54 : vector<3x16x16xf32>
    %56 = math.absf %55 : vector<3x16x16xf32>
    %cst_22 = arith.constant 1.000000e+00 : f32
    %57 = vector.broadcast %cst_22 : f32 to vector<3x16x16xf32>
    %58 = arith.cmpf olt, %56, %57 : vector<3x16x16xf32>
    %cst_23 = arith.constant 5.000000e-01 : f32
    %59 = vector.broadcast %cst_23 : f32 to vector<3x16x16xf32>
    %60 = arith.mulf %59, %55 : vector<3x16x16xf32>
    %61 = arith.mulf %60, %55 : vector<3x16x16xf32>
    %cst_24 = arith.constant 5.000000e-01 : f32
    %62 = vector.broadcast %cst_24 : f32 to vector<3x16x16xf32>
    %63 = arith.subf %56, %62 : vector<3x16x16xf32>
    %64 = arith.select %58, %61, %63 : vector<3x16x16xi1>, vector<3x16x16xf32>
    %65 = vector.shape_cast %64 : vector<3x16x16xf32> to vector<1x3x16x16xf32>
    %cst_25 = arith.constant dense<0.000000e+00> : vector<1xf32>
    %66 = vector.multi_reduction <add>, %65, %cst_25 [1, 2, 3] : vector<1x3x16x16xf32> to vector<1xf32>
    %67 = vector.shape_cast %66 : vector<1xf32> to vector<1x1x1x1xf32>
    %68 = vector.extract %67[0, 0, 0, 0] : f32 from vector<1x1x1x1xf32>
    %69 = tpu.iota {dimensions = array<i32: 1>} : vector<1x128xi32>
    %c0_i32 = arith.constant 0 : i32
    %70 = vector.broadcast %c0_i32 : i32 to vector<1x128xi32>
    %71 = arith.cmpi eq, %69, %70 : vector<1x128xi32>
    %cst_26 = arith.constant 0.000000e+00 : f32
    %72 = vector.broadcast %32 : f32 to vector<1x128xf32>
    %73 = vector.broadcast %cst_26 : f32 to vector<1x128xf32>
    %74 = arith.select %71, %72, %73 : vector<1x128xi1>, vector<1x128xf32>
    %c1_i32 = arith.constant 1 : i32
    %75 = vector.broadcast %c1_i32 : i32 to vector<1x128xi32>
    %76 = arith.cmpi eq, %69, %75 : vector<1x128xi32>
    %cst_27 = arith.constant 0.000000e+00 : f32
    %77 = vector.broadcast %50 : f32 to vector<1x128xf32>
    %78 = vector.broadcast %cst_27 : f32 to vector<1x128xf32>
    %79 = arith.select %76, %77, %78 : vector<1x128xi1>, vector<1x128xf32>
    %80 = arith.addf %74, %79 : vector<1x128xf32>
    %c2_i32 = arith.constant 2 : i32
    %81 = vector.broadcast %c2_i32 : i32 to vector<1x128xi32>
    %82 = arith.cmpi eq, %69, %81 : vector<1x128xi32>
    %cst_28 = arith.constant 0.000000e+00 : f32
    %83 = vector.broadcast %68 : f32 to vector<1x128xf32>
    %84 = vector.broadcast %cst_28 : f32 to vector<1x128xf32>
    %85 = arith.select %82, %83, %84 : vector<1x128xi1>, vector<1x128xf32>
    %86 = arith.addf %80, %85 : vector<1x128xf32>
    %c0_29 = arith.constant 0 : index
    %c0_30 = arith.constant 0 : index
    %c0_31 = arith.constant 0 : index
    %c0_32 = arith.constant 0 : index
    %87 = vector.load %arg5[%c0_29, %c0_30, %c0_31, %c0_32] : memref<1x1x1x128xf32, #tpu.memory_space<vmem>>, vector<1x1x1x128xf32>
    %88 = vector.shape_cast %87 : vector<1x1x1x128xf32> to vector<1x128xf32>
    %89 = vector.shape_cast %86 : vector<1x128xf32> to vector<1x1x1x128xf32>
    tpu.vector_store %arg5[%c0_29, %c0_30, %c0_31, %c0_32], %89 {strides = array<i32>} : memref<1x1x1x128xf32, #tpu.memory_space<vmem>>, vector<1x1x1x128xf32>,
    %c2_i32_33 = arith.constant 2 : i32
    %90 = arith.cmpi slt, %arg1, %c2_i32_33 : i32
    %91 = arith.extui %90 : i1 to i32
    %c0_i32_34 = arith.constant 0 : i32
    %92 = arith.cmpi ne, %91, %c0_i32_34 : i32
    scf.if %92 {
      %c15_i32_35 = arith.constant 15 : i32
      %93 = tpu.dynamic_rotate %1 by %c15_i32_35 dim 2 : vector<3x16x16xf32>, i32 -> vector<3x16x16xf32>
      %94 = arith.addf %1, %93 : vector<3x16x16xf32>
      %c14_i32 = arith.constant 14 : i32
      %95 = tpu.dynamic_rotate %1 by %c14_i32 dim 2 : vector<3x16x16xf32>, i32 -> vector<3x16x16xf32>
      %96 = arith.addf %94, %95 : vector<3x16x16xf32>
      %c15_i32_36 = arith.constant 15 : i32
      %97 = tpu.dynamic_rotate %96 by %c15_i32_36 dim 1 : vector<3x16x16xf32>, i32 -> vector<3x16x16xf32>
      %98 = arith.addf %96, %97 : vector<3x16x16xf32>
      %c14_i32_37 = arith.constant 14 : i32
      %99 = tpu.dynamic_rotate %96 by %c14_i32_37 dim 1 : vector<3x16x16xf32>, i32 -> vector<3x16x16xf32>
      %100 = arith.addf %98, %99 : vector<3x16x16xf32>
      %cst_38 = arith.constant 0.111111112 : f32
      %101 = vector.broadcast %cst_38 : f32 to vector<3x16x16xf32>
      %102 = arith.mulf %100, %101 : vector<3x16x16xf32>
      %c15_i32_39 = arith.constant 15 : i32
      %103 = tpu.dynamic_rotate %3 by %c15_i32_39 dim 2 : vector<3x16x16xf32>, i32 -> vector<3x16x16xf32>
      %104 = arith.addf %3, %103 : vector<3x16x16xf32>
      %c14_i32_40 = arith.constant 14 : i32
      %105 = tpu.dynamic_rotate %3 by %c14_i32_40 dim 2 : vector<3x16x16xf32>, i32 -> vector<3x16x16xf32>
      %106 = arith.addf %104, %105 : vector<3x16x16xf32>
      %c15_i32_41 = arith.constant 15 : i32
      %107 = tpu.dynamic_rotate %106 by %c15_i32_41 dim 1 : vector<3x16x16xf32>, i32 -> vector<3x16x16xf32>
      %108 = arith.addf %106, %107 : vector<3x16x16xf32>
      %c14_i32_42 = arith.constant 14 : i32
      %109 = tpu.dynamic_rotate %106 by %c14_i32_42 dim 1 : vector<3x16x16xf32>, i32 -> vector<3x16x16xf32>
      %110 = arith.addf %108, %109 : vector<3x16x16xf32>
      %cst_43 = arith.constant 0.111111112 : f32
      %111 = vector.broadcast %cst_43 : f32 to vector<3x16x16xf32>
      %112 = arith.mulf %110, %111 : vector<3x16x16xf32>
      %113 = arith.mulf %1, %1 : vector<3x16x16xf32>
      %c15_i32_44 = arith.constant 15 : i32
      %114 = tpu.dynamic_rotate %113 by %c15_i32_44 dim 2 : vector<3x16x16xf32>, i32 -> vector<3x16x16xf32>
      %115 = arith.addf %113, %114 : vector<3x16x16xf32>
      %c14_i32_45 = arith.constant 14 : i32
      %116 = tpu.dynamic_rotate %113 by %c14_i32_45 dim 2 : vector<3x16x16xf32>, i32 -> vector<3x16x16xf32>
      %117 = arith.addf %115, %116 : vector<3x16x16xf32>
      %c15_i32_46 = arith.constant 15 : i32
      %118 = tpu.dynamic_rotate %117 by %c15_i32_46 dim 1 : vector<3x16x16xf32>, i32 -> vector<3x16x16xf32>
      %119 = arith.addf %117, %118 : vector<3x16x16xf32>
      %c14_i32_47 = arith.constant 14 : i32
      %120 = tpu.dynamic_rotate %117 by %c14_i32_47 dim 1 : vector<3x16x16xf32>, i32 -> vector<3x16x16xf32>
      %121 = arith.addf %119, %120 : vector<3x16x16xf32>
      %cst_48 = arith.constant 0.111111112 : f32
      %122 = vector.broadcast %cst_48 : f32 to vector<3x16x16xf32>
      %123 = arith.mulf %121, %122 : vector<3x16x16xf32>
      %124 = arith.mulf %102, %102 : vector<3x16x16xf32>
      %125 = arith.subf %123, %124 : vector<3x16x16xf32>
      %126 = arith.mulf %3, %3 : vector<3x16x16xf32>
      %c15_i32_49 = arith.constant 15 : i32
      %127 = tpu.dynamic_rotate %126 by %c15_i32_49 dim 2 : vector<3x16x16xf32>, i32 -> vector<3x16x16xf32>
      %128 = arith.addf %126, %127 : vector<3x16x16xf32>
      %c14_i32_50 = arith.constant 14 : i32
      %129 = tpu.dynamic_rotate %126 by %c14_i32_50 dim 2 : vector<3x16x16xf32>, i32 -> vector<3x16x16xf32>
      %130 = arith.addf %128, %129 : vector<3x16x16xf32>
      %c15_i32_51 = arith.constant 15 : i32
      %131 = tpu.dynamic_rotate %130 by %c15_i32_51 dim 1 : vector<3x16x16xf32>, i32 -> vector<3x16x16xf32>
      %132 = arith.addf %130, %131 : vector<3x16x16xf32>
      %c14_i32_52 = arith.constant 14 : i32
      %133 = tpu.dynamic_rotate %130 by %c14_i32_52 dim 1 : vector<3x16x16xf32>, i32 -> vector<3x16x16xf32>
      %134 = arith.addf %132, %133 : vector<3x16x16xf32>
      %cst_53 = arith.constant 0.111111112 : f32
      %135 = vector.broadcast %cst_53 : f32 to vector<3x16x16xf32>
      %136 = arith.mulf %134, %135 : vector<3x16x16xf32>
      %137 = arith.mulf %112, %112 : vector<3x16x16xf32>
      %138 = arith.subf %136, %137 : vector<3x16x16xf32>
      %139 = arith.mulf %1, %3 : vector<3x16x16xf32>
      %c15_i32_54 = arith.constant 15 : i32
      %140 = tpu.dynamic_rotate %139 by %c15_i32_54 dim 2 : vector<3x16x16xf32>, i32 -> vector<3x16x16xf32>
      %141 = arith.addf %139, %140 : vector<3x16x16xf32>
      %c14_i32_55 = arith.constant 14 : i32
      %142 = tpu.dynamic_rotate %139 by %c14_i32_55 dim 2 : vector<3x16x16xf32>, i32 -> vector<3x16x16xf32>
      %143 = arith.addf %141, %142 : vector<3x16x16xf32>
      %c15_i32_56 = arith.constant 15 : i32
      %144 = tpu.dynamic_rotate %143 by %c15_i32_56 dim 1 : vector<3x16x16xf32>, i32 -> vector<3x16x16xf32>
      %145 = arith.addf %143, %144 : vector<3x16x16xf32>
      %c14_i32_57 = arith.constant 14 : i32
      %146 = tpu.dynamic_rotate %143 by %c14_i32_57 dim 1 : vector<3x16x16xf32>, i32 -> vector<3x16x16xf32>
      %147 = arith.addf %145, %146 : vector<3x16x16xf32>
      %cst_58 = arith.constant 0.111111112 : f32
      %148 = vector.broadcast %cst_58 : f32 to vector<3x16x16xf32>
      %149 = arith.mulf %147, %148 : vector<3x16x16xf32>
      %150 = arith.mulf %102, %112 : vector<3x16x16xf32>
      %151 = arith.subf %149, %150 : vector<3x16x16xf32>
      %cst_59 = arith.constant 2.000000e+00 : f32
      %152 = vector.broadcast %cst_59 : f32 to vector<3x16x16xf32>
      %153 = arith.mulf %152, %102 : vector<3x16x16xf32>
      %154 = arith.mulf %153, %112 : vector<3x16x16xf32>
      %cst_60 = arith.constant 9.99999974E-5 : f32
      %155 = vector.broadcast %cst_60 : f32 to vector<3x16x16xf32>
      %156 = arith.addf %154, %155 : vector<3x16x16xf32>
      %cst_61 = arith.constant 2.000000e+00 : f32
      %157 = vector.broadcast %cst_61 : f32 to vector<3x16x16xf32>
      %158 = arith.mulf %157, %151 : vector<3x16x16xf32>
      %cst_62 = arith.constant 8.99999984E-4 : f32
      %159 = vector.broadcast %cst_62 : f32 to vector<3x16x16xf32>
      %160 = arith.addf %158, %159 : vector<3x16x16xf32>
      %161 = arith.mulf %156, %160 : vector<3x16x16xf32>
      %162 = arith.mulf %102, %102 : vector<3x16x16xf32>
      %163 = arith.addf %162, %125 : vector<3x16x16xf32>
      %cst_63 = arith.constant 9.99999974E-5 : f32
      %164 = vector.broadcast %cst_63 : f32 to vector<3x16x16xf32>
      %165 = arith.addf %163, %164 : vector<3x16x16xf32>
      %166 = arith.mulf %112, %112 : vector<3x16x16xf32>
      %167 = arith.addf %166, %138 : vector<3x16x16xf32>
      %cst_64 = arith.constant 8.99999984E-4 : f32
      %168 = vector.broadcast %cst_64 : f32 to vector<3x16x16xf32>
      %169 = arith.addf %167, %168 : vector<3x16x16xf32>
      %170 = arith.mulf %165, %169 : vector<3x16x16xf32>
      %171 = arith.divf %161, %170 : vector<3x16x16xf32>
      %cst_65 = arith.constant 1.000000e+00 : f32
      %172 = vector.broadcast %cst_65 : f32 to vector<3x16x16xf32>
      %173 = arith.subf %172, %171 : vector<3x16x16xf32>
      %cst_66 = arith.constant 5.000000e-01 : f32
      %174 = vector.broadcast %cst_66 : f32 to vector<3x16x16xf32>
      %175 = arith.mulf %173, %174 : vector<3x16x16xf32>
      %cst_67 = arith.constant 0.000000e+00 : f32
      %cst_68 = arith.constant 1.000000e+00 : f32
      %176 = vector.broadcast %cst_67 : f32 to vector<3x16x16xf32>
      %177 = arith.maximumf %176, %175 : vector<3x16x16xf32>
      %178 = vector.broadcast %cst_68 : f32 to vector<3x16x16xf32>
      %179 = arith.minimumf %178, %177 : vector<3x16x16xf32>
      %c14_i32_69 = arith.constant 14 : i32
      %180 = vector.broadcast %c14_i32_69 : i32 to vector<16x16xi32>
      %181 = arith.cmpi slt, %6, %180 : vector<16x16xi32>
      %c14_i32_70 = arith.constant 14 : i32
      %182 = vector.broadcast %c14_i32_70 : i32 to vector<16x16xi32>
      %183 = arith.cmpi slt, %7, %182 : vector<16x16xi32>
      %184 = arith.andi %181, %183 : vector<16x16xi1>
      %c15_i32_71 = arith.constant 15 : i32
      %185 = tpu.dynamic_rotate %5 by %c15_i32_71 dim 1 : vector<16x16xf32>, i32 -> vector<16x16xf32>
      %186 = arith.addf %5, %185 : vector<16x16xf32>
      %c14_i32_72 = arith.constant 14 : i32
      %187 = tpu.dynamic_rotate %5 by %c14_i32_72 dim 1 : vector<16x16xf32>, i32 -> vector<16x16xf32>
      %188 = arith.addf %186, %187 : vector<16x16xf32>
      %c15_i32_73 = arith.constant 15 : i32
      %189 = tpu.dynamic_rotate %188 by %c15_i32_73 dim 0 : vector<16x16xf32>, i32 -> vector<16x16xf32>
      %190 = arith.addf %188, %189 : vector<16x16xf32>
      %c14_i32_74 = arith.constant 14 : i32
      %191 = tpu.dynamic_rotate %188 by %c14_i32_74 dim 0 : vector<16x16xf32>, i32 -> vector<16x16xf32>
      %192 = arith.addf %190, %191 : vector<16x16xf32>
      %cst_75 = arith.constant 0.111111112 : f32
      %193 = vector.broadcast %cst_75 : f32 to vector<16x16xf32>
      %194 = arith.mulf %192, %193 : vector<16x16xf32>
      %195 = arith.extui %184 : vector<16x16xi1> to vector<16x16xi32>
      %196 = arith.sitofp %195 : vector<16x16xi32> to vector<16x16xf32>
      %197 = arith.mulf %194, %196 : vector<16x16xf32>
      %c0_76 = arith.constant 0 : index
      %c0_77 = arith.constant 0 : index
      %c0_78 = arith.constant 0 : index
      %c0_79 = arith.constant 0 : index
      %198 = vector.load %arg5[%c0_76, %c0_77, %c0_78, %c0_79] : memref<1x1x1x128xf32, #tpu.memory_space<vmem>>, vector<1x1x1x128xf32>
      %199 = vector.shape_cast %198 : vector<1x1x1x128xf32> to vector<1x128xf32>
      %c3_i32 = arith.constant 3 : i32
      %200 = vector.broadcast %c3_i32 : i32 to vector<1x128xi32>
      %201 = arith.cmpi eq, %69, %200 : vector<1x128xi32>
      %202 = vector.shape_cast %197 : vector<16x16xf32> to vector<1x16x16xf32>
      %203 = vector.broadcast %202 : vector<1x16x16xf32> to vector<3x16x16xf32>
      %204 = arith.mulf %179, %203 : vector<3x16x16xf32>
      %205 = vector.shape_cast %204 : vector<3x16x16xf32> to vector<1x3x16x16xf32>
      %cst_80 = arith.constant dense<0.000000e+00> : vector<1xf32>
      %206 = vector.multi_reduction <add>, %205, %cst_80 [1, 2, 3] : vector<1x3x16x16xf32> to vector<1xf32>
      %207 = vector.shape_cast %206 : vector<1xf32> to vector<1x1x1x1xf32>
      %208 = vector.extract %207[0, 0, 0, 0] : f32 from vector<1x1x1x1xf32>
      %cst_81 = arith.constant 0.000000e+00 : f32
      %209 = vector.broadcast %208 : f32 to vector<1x128xf32>
      %210 = vector.broadcast %cst_81 : f32 to vector<1x128xf32>
      %211 = arith.select %201, %209, %210 : vector<1x128xi1>, vector<1x128xf32>
      %212 = arith.addf %199, %211 : vector<1x128xf32>
      %c0_82 = arith.constant 0 : index
      %c0_83 = arith.constant 0 : index
      %c0_84 = arith.constant 0 : index
      %c0_85 = arith.constant 0 : index
      %213 = vector.load %arg5[%c0_82, %c0_83, %c0_84, %c0_85] : memref<1x1x1x128xf32, #tpu.memory_space<vmem>>, vector<1x1x1x128xf32>
      %214 = vector.shape_cast %213 : vector<1x1x1x128xf32> to vector<1x128xf32>
      %215 = vector.shape_cast %212 : vector<1x128xf32> to vector<1x1x1x128xf32>
      tpu.vector_store %arg5[%c0_82, %c0_83, %c0_84, %c0_85], %215 {strides = array<i32>} : memref<1x1x1x128xf32, #tpu.memory_space<vmem>>, vector<1x1x1x128xf32>,
    } else {
    }
    return
  }
  func.func @transform_0(%arg0: i32, %arg1: i32) -> (i32, i32, i32, i32) {
    %c0_i32 = arith.constant 0 : i32
    %c0_i32_0 = arith.constant 0 : i32
    %c0_i32_1 = arith.constant 0 : i32
    %c0_i32_2 = arith.constant 0 : i32
    return %arg0, %c0_i32, %c0_i32_0, %c0_i32_1 : i32, i32, i32, i32
  }
  func.func @transform_1(%arg0: i32, %arg1: i32) -> (i32, i32, i32, i32, i32) {
    %c0_i32 = arith.constant 0 : i32
    %c0_i32_0 = arith.constant 0 : i32
    %c0_i32_1 = arith.constant 0 : i32
    %c0_i32_2 = arith.constant 0 : i32
    return %arg1, %arg0, %c0_i32, %c0_i32_0, %c0_i32_1 : i32, i32, i32, i32, i32
  }
  func.func @transform_2(%arg0: i32, %arg1: i32) -> (i32, i32, i32, i32) {
    %c0_i32 = arith.constant 0 : i32
    %c0_i32_0 = arith.constant 0 : i32
    %c0_i32_1 = arith.constant 0 : i32
    return %arg1, %arg0, %c0_i32, %c0_i32_0 : i32, i32, i32, i32
  }
  func.func @transform_3(%arg0: i32, %arg1: i32) -> (i32, i32, i32, i32) {
    %c0_i32 = arith.constant 0 : i32
    %c0_i32_0 = arith.constant 0 : i32
    %c0_i32_1 = arith.constant 0 : i32
    return %arg0, %arg1, %c0_i32, %c0_i32_0 : i32, i32, i32, i32
  }
}

module attributes {stable_mosaic.version = 11 : i64} {
  func.func @_combine_kernel(%arg0: i32, %arg1: i32, %arg2: memref<2xf32, #tpu.memory_space<smem>>, %arg3: memref<1x1x16x16xf32, #tpu.memory_space<vmem>>, %arg4: memref<1x16x16xf32, #tpu.memory_space<vmem>>, %arg5: memref<1x3x16x16xf32, #tpu.memory_space<vmem>>, %arg6: memref<1x1x128xf32, #tpu.memory_space<vmem>>, %arg7: memref<16x16xf32, #tpu.memory_space<vmem>>) attributes {dimension_semantics = [#tpu.dimension_semantics<parallel>, #tpu.dimension_semantics<arbitrary>], iteration_bounds = array<i64: 2, 2>, scalar_prefetch = 0 : i64, scratch_operands = 1 : i64, tpu.core_type = #tpu.core_type<tc>, window_params = [{transform_indices = @transform_0, window_bounds = array<i64: 2>}, {transform_indices = @transform_1, window_bounds = array<i64: 1, 1, 16, 16>}, {transform_indices = @transform_2, window_bounds = array<i64: 1, 16, 16>}, {transform_indices = @transform_3, window_bounds = array<i64: 1, 3, 16, 16>}, {transform_indices = @transform_4, window_bounds = array<i64: 1, 1, 128>}]} {
    %0 = arith.index_cast %arg1 : i32 to index
    %1 = memref.load %arg2[%0] : memref<2xf32, #tpu.memory_space<smem>>
    %c0 = arith.constant 0 : index
    %c0_0 = arith.constant 0 : index
    %c0_1 = arith.constant 0 : index
    %c0_2 = arith.constant 0 : index
    %2 = vector.load %arg3[%c0, %c0_0, %c0_1, %c0_2] : memref<1x1x16x16xf32, #tpu.memory_space<vmem>>, vector<1x1x16x16xf32>
    %3 = vector.shape_cast %2 : vector<1x1x16x16xf32> to vector<16x16xf32>
    %cst = arith.constant 1.000000e+00 : f32
    %4 = vector.broadcast %cst : f32 to vector<16x16xf32>
    %5 = arith.subf %4, %3 : vector<16x16xf32>
    %cst_3 = arith.constant 1.000000e+04 : f32
    %6 = vector.broadcast %cst_3 : f32 to vector<16x16xf32>
    %7 = arith.mulf %6, %5 : vector<16x16xf32>
    %8 = vector.broadcast %1 : f32 to vector<16x16xf32>
    %9 = arith.addf %8, %7 : vector<16x16xf32>
    %c0_i32 = arith.constant 0 : i32
    %10 = arith.cmpi eq, %arg1, %c0_i32 : i32
    %11 = arith.extui %10 : i1 to i32
    %c0_i32_4 = arith.constant 0 : i32
    %12 = arith.cmpi ne, %11, %c0_i32_4 : i32
    scf.if %12 {
      %c0_8 = arith.constant 0 : index
      %c0_9 = arith.constant 0 : index
      %19 = vector.load %arg7[%c0_8, %c0_9] : memref<16x16xf32, #tpu.memory_space<vmem>>, vector<16x16xf32>
      tpu.vector_store %arg7[%c0_8, %c0_9], %9 {strides = array<i32>} : memref<16x16xf32, #tpu.memory_space<vmem>>, vector<16x16xf32>,
    } else {
    }
    %c0_i32_5 = arith.constant 0 : i32
    %13 = arith.cmpi sgt, %arg1, %c0_i32_5 : i32
    %14 = arith.extui %13 : i1 to i32
    %c0_i32_6 = arith.constant 0 : i32
    %15 = arith.cmpi ne, %14, %c0_i32_6 : i32
    scf.if %15 {
      %c0_8 = arith.constant 0 : index
      %c0_9 = arith.constant 0 : index
      %19 = vector.load %arg7[%c0_8, %c0_9] : memref<16x16xf32, #tpu.memory_space<vmem>>, vector<16x16xf32>
      %20 = arith.minimumf %19, %9 : vector<16x16xf32>
      %c0_10 = arith.constant 0 : index
      %c0_11 = arith.constant 0 : index
      %21 = vector.load %arg7[%c0_10, %c0_11] : memref<16x16xf32, #tpu.memory_space<vmem>>, vector<16x16xf32>
      tpu.vector_store %arg7[%c0_10, %c0_11], %20 {strides = array<i32>} : memref<16x16xf32, #tpu.memory_space<vmem>>, vector<16x16xf32>,
    } else {
    }
    %c1_i32 = arith.constant 1 : i32
    %16 = arith.cmpi eq, %arg1, %c1_i32 : i32
    %17 = arith.extui %16 : i1 to i32
    %c0_i32_7 = arith.constant 0 : i32
    %18 = arith.cmpi ne, %17, %c0_i32_7 : i32
    scf.if %18 {
      %c0_8 = arith.constant 0 : index
      %c0_9 = arith.constant 0 : index
      %19 = vector.load %arg7[%c0_8, %c0_9] : memref<16x16xf32, #tpu.memory_space<vmem>>, vector<16x16xf32>
      %cst_10 = arith.constant 1.000000e+04 : f32
      %20 = vector.broadcast %cst_10 : f32 to vector<16x16xf32>
      %21 = arith.cmpf olt, %19, %20 : vector<16x16xf32>
      %22 = arith.extui %21 : vector<16x16xi1> to vector<16x16xi32>
      %23 = arith.sitofp %22 : vector<16x16xi32> to vector<16x16xf32>
      %24 = arith.mulf %19, %23 : vector<16x16xf32>
      %25 = vector.shape_cast %24 : vector<16x16xf32> to vector<1x16x16xf32>
      %cst_11 = arith.constant dense<0.000000e+00> : vector<1xf32>
      %26 = vector.multi_reduction <add>, %25, %cst_11 [1, 2] : vector<1x16x16xf32> to vector<1xf32>
      %27 = vector.shape_cast %26 : vector<1xf32> to vector<1x1x1xf32>
      %28 = vector.extract %27[0, 0, 0] : f32 from vector<1x1x1xf32>
      %c0_12 = arith.constant 0 : index
      %c0_13 = arith.constant 0 : index
      %c0_14 = arith.constant 0 : index
      %29 = vector.load %arg4[%c0_12, %c0_13, %c0_14] : memref<1x16x16xf32, #tpu.memory_space<vmem>>, vector<1x16x16xf32>
      %30 = vector.shape_cast %29 : vector<1x16x16xf32> to vector<16x16xf32>
      %c0_15 = arith.constant 0 : index
      %c0_16 = arith.constant 0 : index
      %c0_17 = arith.constant 0 : index
      %c0_18 = arith.constant 0 : index
      %31 = vector.load %arg5[%c0_15, %c0_16, %c0_17, %c0_18] : memref<1x3x16x16xf32, #tpu.memory_space<vmem>>, vector<1x3x16x16xf32>
      %32 = vector.shape_cast %31 : vector<1x3x16x16xf32> to vector<3x16x16xf32>
      %33 = tpu.iota {dimensions = array<i32: 1>} : vector<16x16xi32>
      %34 = tpu.iota {dimensions = array<i32: 0>} : vector<16x16xi32>
      %c15_i32 = arith.constant 15 : i32
      %35 = vector.broadcast %c15_i32 : i32 to vector<16x16xi32>
      %36 = arith.cmpi slt, %33, %35 : vector<16x16xi32>
      %37 = arith.extui %36 : vector<16x16xi1> to vector<16x16xi32>
      %38 = arith.sitofp %37 : vector<16x16xi32> to vector<16x16xf32>
      %c15_i32_19 = arith.constant 15 : i32
      %39 = vector.broadcast %c15_i32_19 : i32 to vector<16x16xi32>
      %40 = arith.cmpi slt, %34, %39 : vector<16x16xi32>
      %41 = arith.extui %40 : vector<16x16xi1> to vector<16x16xi32>
      %42 = arith.sitofp %41 : vector<16x16xi32> to vector<16x16xf32>
      %c15_i32_20 = arith.constant 15 : i32
      %43 = tpu.dynamic_rotate %30 by %c15_i32_20 dim 1 : vector<16x16xf32>, i32 -> vector<16x16xf32>
      %44 = arith.subf %43, %30 : vector<16x16xf32>
      %45 = arith.mulf %44, %38 : vector<16x16xf32>
      %c15_i32_21 = arith.constant 15 : i32
      %46 = tpu.dynamic_rotate %30 by %c15_i32_21 dim 0 : vector<16x16xf32>, i32 -> vector<16x16xf32>
      %47 = arith.subf %46, %30 : vector<16x16xf32>
      %48 = arith.mulf %47, %42 : vector<16x16xf32>
      %c15_i32_22 = arith.constant 15 : i32
      %49 = tpu.dynamic_rotate %32 by %c15_i32_22 dim 2 : vector<3x16x16xf32>, i32 -> vector<3x16x16xf32>
      %50 = arith.subf %49, %32 : vector<3x16x16xf32>
      %c15_i32_23 = arith.constant 15 : i32
      %51 = tpu.dynamic_rotate %32 by %c15_i32_23 dim 1 : vector<3x16x16xf32>, i32 -> vector<3x16x16xf32>
      %52 = arith.subf %51, %32 : vector<3x16x16xf32>
      %53 = math.absf %50 : vector<3x16x16xf32>
      %cst_24 = arith.constant dense<0.000000e+00> : vector<16x16xf32>
      %54 = vector.multi_reduction <add>, %53, %cst_24 [0] : vector<3x16x16xf32> to vector<16x16xf32>
      %cst_25 = arith.constant 3.000000e+00 : f32
      %55 = vector.broadcast %cst_25 : f32 to vector<16x16xf32>
      %56 = arith.divf %54, %55 : vector<16x16xf32>
      %cst_26 = arith.constant 0.000000e+00 : f32
      %57 = vector.broadcast %cst_26 : f32 to vector<16x16xf32>
      %58 = arith.subf %57, %56 : vector<16x16xf32>
      %59 = math.exp %58 : vector<16x16xf32>
      %60 = math.absf %52 : vector<3x16x16xf32>
      %cst_27 = arith.constant dense<0.000000e+00> : vector<16x16xf32>
      %61 = vector.multi_reduction <add>, %60, %cst_27 [0] : vector<3x16x16xf32> to vector<16x16xf32>
      %cst_28 = arith.constant 3.000000e+00 : f32
      %62 = vector.broadcast %cst_28 : f32 to vector<16x16xf32>
      %63 = arith.divf %61, %62 : vector<16x16xf32>
      %cst_29 = arith.constant 0.000000e+00 : f32
      %64 = vector.broadcast %cst_29 : f32 to vector<16x16xf32>
      %65 = arith.subf %64, %63 : vector<16x16xf32>
      %66 = math.exp %65 : vector<16x16xf32>
      %67 = math.absf %45 : vector<16x16xf32>
      %68 = arith.mulf %67, %59 : vector<16x16xf32>
      %69 = vector.shape_cast %68 : vector<16x16xf32> to vector<1x16x16xf32>
      %cst_30 = arith.constant dense<0.000000e+00> : vector<1xf32>
      %70 = vector.multi_reduction <add>, %69, %cst_30 [1, 2] : vector<1x16x16xf32> to vector<1xf32>
      %71 = vector.shape_cast %70 : vector<1xf32> to vector<1x1x1xf32>
      %72 = vector.extract %71[0, 0, 0] : f32 from vector<1x1x1xf32>
      %73 = math.absf %48 : vector<16x16xf32>
      %74 = arith.mulf %73, %66 : vector<16x16xf32>
      %75 = vector.shape_cast %74 : vector<16x16xf32> to vector<1x16x16xf32>
      %cst_31 = arith.constant dense<0.000000e+00> : vector<1xf32>
      %76 = vector.multi_reduction <add>, %75, %cst_31 [1, 2] : vector<1x16x16xf32> to vector<1xf32>
      %77 = vector.shape_cast %76 : vector<1xf32> to vector<1x1x1xf32>
      %78 = vector.extract %77[0, 0, 0] : f32 from vector<1x1x1xf32>
      %79 = tpu.iota {dimensions = array<i32: 1>} : vector<1x128xi32>
      %c0_i32_32 = arith.constant 0 : i32
      %80 = vector.broadcast %c0_i32_32 : i32 to vector<1x128xi32>
      %81 = arith.cmpi eq, %79, %80 : vector<1x128xi32>
      %cst_33 = arith.constant 0.000000e+00 : f32
      %82 = vector.broadcast %28 : f32 to vector<1x128xf32>
      %83 = vector.broadcast %cst_33 : f32 to vector<1x128xf32>
      %84 = arith.select %81, %82, %83 : vector<1x128xi1>, vector<1x128xf32>
      %c1_i32_34 = arith.constant 1 : i32
      %85 = vector.broadcast %c1_i32_34 : i32 to vector<1x128xi32>
      %86 = arith.cmpi eq, %79, %85 : vector<1x128xi32>
      %cst_35 = arith.constant 0.000000e+00 : f32
      %87 = vector.broadcast %72 : f32 to vector<1x128xf32>
      %88 = vector.broadcast %cst_35 : f32 to vector<1x128xf32>
      %89 = arith.select %86, %87, %88 : vector<1x128xi1>, vector<1x128xf32>
      %90 = arith.addf %84, %89 : vector<1x128xf32>
      %c2_i32 = arith.constant 2 : i32
      %91 = vector.broadcast %c2_i32 : i32 to vector<1x128xi32>
      %92 = arith.cmpi eq, %79, %91 : vector<1x128xi32>
      %cst_36 = arith.constant 0.000000e+00 : f32
      %93 = vector.broadcast %78 : f32 to vector<1x128xf32>
      %94 = vector.broadcast %cst_36 : f32 to vector<1x128xf32>
      %95 = arith.select %92, %93, %94 : vector<1x128xi1>, vector<1x128xf32>
      %96 = arith.addf %90, %95 : vector<1x128xf32>
      %c0_37 = arith.constant 0 : index
      %c0_38 = arith.constant 0 : index
      %c0_39 = arith.constant 0 : index
      %97 = vector.load %arg6[%c0_37, %c0_38, %c0_39] : memref<1x1x128xf32, #tpu.memory_space<vmem>>, vector<1x1x128xf32>
      %98 = vector.shape_cast %97 : vector<1x1x128xf32> to vector<1x128xf32>
      %99 = vector.shape_cast %96 : vector<1x128xf32> to vector<1x1x128xf32>
      tpu.vector_store %arg6[%c0_37, %c0_38, %c0_39], %99 {strides = array<i32>} : memref<1x1x128xf32, #tpu.memory_space<vmem>>, vector<1x1x128xf32>,
    } else {
    }
    return
  }
  func.func @transform_0(%arg0: i32, %arg1: i32) -> i32 {
    %c0_i32 = arith.constant 0 : i32
    %c0_i32_0 = arith.constant 0 : i32
    return %c0_i32 : i32
  }
  func.func @transform_1(%arg0: i32, %arg1: i32) -> (i32, i32, i32, i32) {
    %c0_i32 = arith.constant 0 : i32
    %c0_i32_0 = arith.constant 0 : i32
    %c0_i32_1 = arith.constant 0 : i32
    return %arg1, %arg0, %c0_i32, %c0_i32_0 : i32, i32, i32, i32
  }
  func.func @transform_2(%arg0: i32, %arg1: i32) -> (i32, i32, i32) {
    %c0_i32 = arith.constant 0 : i32
    %c0_i32_0 = arith.constant 0 : i32
    %c0_i32_1 = arith.constant 0 : i32
    return %arg0, %c0_i32, %c0_i32_0 : i32, i32, i32
  }
  func.func @transform_3(%arg0: i32, %arg1: i32) -> (i32, i32, i32, i32) {
    %c0_i32 = arith.constant 0 : i32
    %c0_i32_0 = arith.constant 0 : i32
    %c0_i32_1 = arith.constant 0 : i32
    %c0_i32_2 = arith.constant 0 : i32
    return %arg0, %c0_i32, %c0_i32_0, %c0_i32_1 : i32, i32, i32, i32
  }
  func.func @transform_4(%arg0: i32, %arg1: i32) -> (i32, i32, i32) {
    %c0_i32 = arith.constant 0 : i32
    %c0_i32_0 = arith.constant 0 : i32
    %c0_i32_1 = arith.constant 0 : i32
    return %arg0, %c0_i32, %c0_i32_0 : i32, i32, i32
  }
}

</mosaic_0001>

<bundles_post_ra>
// kernel: tpu_custom_call.1
= control target key start
LH: loop header
LB: loop body
LE: loop exit
PB: predicated region body
PF: predicated region fallthrough
CT: control target
= control target key end

     0   :  { %6 = vsyncpa [#allocation3], 0  ;;  %s118_s0 = inlined_call_operand.hbm [shape: f32[8,128], index: 0, kind: input, shape index: {}]   ;;  %s119_s1 = inlined_call_operand.hbm [shape: f32[8,128], index: 1, kind: output, shape index: {}]  }
   0x1   :  { %7 = vsyncpa [#allocation4], 0  ;;  %s13_s8 = sshll.u32 %s118_s0, 4  ;;  %s99_s9 = smov [#allocation2]   ;;  %s14_s8 = int_to_ptr.hbm [resolvable:$true] %s13_s8 }
   0x2   :  { %s15_s10 = sshll.u32 %s99_s9, 4  ;;  %s16_s10 = int_to_ptr.vmem [resolvable:$true] %s15_s10 }
   0x3   :  { %18 = dma.hbm_to_vmem [thread:$0]  %s14_s8, 128, %s16_s10, [#allocation3]  }
   0x4   :  { %95 = dma.done.wait [#allocation3], 128  }
   0x5   :  { %96 = vsyncadd [#allocation3], 4294967168  ;;  %v23_v0 = vld [vmem:[#allocation2] sm:$0xff]  ;;  %s100_s11 = smov 1   ;;  %s101_s12 = smov [#allocation5]  }
   0x6   :  { %24 = vrot.lane.b32.xlu0 %v23_v0, %s100_s11  ;;  %s32_s13 = sshll.u32 %s101_s12, 4  ;;  %s34_s16 = sshll.u32 %s119_s1, 4  ;;  %s33_s13 = int_to_ptr.vmem [resolvable:$true] %s32_s13  ;;  %s35_s16 = int_to_ptr.hbm [resolvable:$true] %s34_s16 }
  0x78   :  { %v25_v1 = vpop.permute.xlu0 %24 }
  0x79   :  { %26 = vst [vmem:[#allocation5] sm:$0xff] %v25_v1 }
  0x7a   :  { %37 = dma.vmem_to_hbm [thread:$0]  %s33_s13, 128, %s35_s16, [#allocation4]  }
  0x7b   :  { %97 = dma.done.wait [#allocation4], 128  }
  0x7c   :  { %98 = vsyncadd [#allocation4], 4294967168 }
  0x7d   :  { %42 = vsyncpa [#allocation3], 1 }
  0x7e   :  { %43 = vsyncpa [#allocation4], 1 }

// kernel: sub.0
= control target key start
LH: loop header
LB: loop body
LE: loop exit
PB: predicated region body
PF: predicated region fallthrough
CT: control target
= control target key end

     0   :  { %s34_s0 = inlined_call_operand.vmem [shape: f32[2,3], index: 0, kind: input, shape index: {}]   ;;  %s35_s1 = inlined_call_operand.vmem [shape: f32[2,3], index: 1, kind: input, shape index: {}]   ;;  %s36_s2 = inlined_call_operand.vmem [shape: f32[2,3], index: 2, kind: output, shape index: {}]  }
   0x1   :  { %v3_v0 = vld [vmem:[%s34_s0] sm:$0x3] }
   0x2   :  { %v4_v1 = vld [vmem:[%s35_s1] sm:$0x3] }
   0x3   :  { %v7_v2 = vsub.f32 %v3_v0, %v4_v1 }
   0x5   :  { %9 = vst [vmem:[%s36_s2] sm:$0x3] %v7_v2 }

// kernel: custom-call.11
= control target key start
LH: loop header
LB: loop body
LE: loop exit
PB: predicated region body
PF: predicated region fallthrough
CT: control target
= control target key end

     0   :  { %5 = vsyncpa [#allocation6], 0  ;;  %s911_s0 = inlined_call_operand.vmem [shape: f32[2,3,3], index: 0, kind: input, shape index: {}]   ;;  %s912_s1 = inlined_call_operand.vmem [shape: f32[2,3,3], index: 1, kind: output, shape index: {0}]   ;;  %s913_s2 = inlined_call_operand.hbm [shape: s32[2,3], index: 2, kind: output, shape index: {1}]   ;;  %s914_s3 = inlined_call_operand.vmem [shape: s32[2,3], index: 3, kind: output, shape index: {2}]  }
   0x1   :  { %7 = vsyncpa [#allocation6 + $0x1], 0  ;;  %s735_s12 = smov 0   ;;  %s737_s13 = smov 0  }
   0x2   :  { %s739_s14 = smov 0   ;;  %s741_s15 = smov 0  }
   0x3 LB: > { %s756_s16 = sadd.s32 4294967295, %s708_s15   ;;  %s571_s17 = sadd.s32 4294967294, %s708_s15   ;;  %s708_s15 = sphi %s741_s15, %s920_s15   ;;  %s704_s14 = sphi %s739_s14, %s919_s14   ;;  %s700_s13 = sphi %s737_s13, %s918_s13   ;;  %s696_s12 = sphi %s735_s12, %s917_s12  }
   0x4   : > { %s760_s18 = sadd.s32 1, %s708_s15   ;;  %s17_s19 = sshrl.u32 %s708_s15, 3 }
   0x5   : > { %s18_s20 = sshrl.u32 %s760_s18, 3  ;;  %s22_s21 = sadd.s32 1, %s704_s14 }
   0x6   : > { %s19_s22 = ssub.s32 %s17_s19, %s18_s20  ;;  %p32_p0 = scmp.ne.s32.totalorder %s704_s14, %s700_s13 }
   0x7   : > { %p20_p1 = scmp.eq.s32.totalorder %s19_s22, 0  ;;  %p33_p2 = scmp.eq.s32.totalorder %s756_s16, 1 }
   0x8   : > { %p38_p3 = scmp.ne.s32.totalorder %s700_s13, %s696_s12  ;;  %p39_p4 = scmp.eq.s32.totalorder %s571_s17, 1 }
   0x9   : > { %s771_s23 = scalar_select %p20_p1, %s704_s14, %s22_s21  }
   0xa   : > { %p773_p5 = por %p33_p2, %p32_p0  ;;  %p777_p6 = por %p39_p4, %p38_p3 }
   0xb   : > { %p573_p7 = scmp.ge.s32.totalorder %s708_s15, 2 }
   0xc   : > { %s85_s26 = sand.u32 (!%p573_p7), 1, %s708_s15   ;;  %s575_s27 = sshll.u32 (!%p573_p7), %s708_s15, 2 }
   0xd   : > { %83 = sbr.rel (%p573_p7) target bundleno = 20 (0x14), region = 16  ;;  %s574_s28 = sshll.u32 (!%p573_p7), %s85_s26, 2 }
   0xe   : > { %s89_s4 = scalar_lea.vmem (!%p573_p7), %s911_s0, %s575_s27  ;;  %s87_s5 = scalar_lea.vmem (!%p573_p7), [#allocation1], %s574_s28 }
  0x12   : > { %v106_v0 = vld [vmem:[%s89_s4] sm:$0xf] }
  0x13   : > { %107 = vst [vmem:[%s87_s5] sm:$0xf] %v106_v0 }
  0x14 PF: > { %p576_p8 = scmp.ge.s32.totalorder %s708_s15, 1  ;;  %p124_p9 = scmp.lt.s32.totalorder %s708_s15, 3 }
  0x16   : > { %p125_p10 = pnand %p576_p8, %p124_p9 }
  0x18   : > { %128 = sbr.rel (%p125_p10) target bundleno = 484 (0x1e4), region = 50 }
  0x1d   : > { %s135_s6 = sand.u32 1, %s756_s16   ;;  %s146_s7 = sand.u32 1, %s700_s13   ;;  %v168_v1 = vlaneseq  ;;  %v714_v4 = vmov 0  }
  0x1e   : > { %s793_s8 = sshll.u32 %s135_s6, 2  ;;  %s797_s9 = sshll.u32 %s146_s7, 1 }
  0x1f   : > { %v800_v2 = vshrl.u32 %v168_v1, 7  ;;  %s137_s10 = scalar_lea.vmem [#allocation1], %s793_s8  ;;  %s163_s11 = sand.u32 7, %s756_s16  }
  0x20   : > { %v157_v3 = vld [vmem:[%s137_s10] sm:$0xf]  ;;  %s805_s17 = scalar_lea.vmem [#allocation4], %s163_s11  ;;  %s141_s19 = scalar_lea.vmem [#allocation3], %s793_s8 }
  0x21   : > { %158 = vst [vmem:[#allocation0] sm:$0xf] %v157_v3  ;;  %s148_s20 = scalar_lea.vmem [#allocation5], %s797_s9  ;;  %s154_s21 = scalar_lea.vmem [#allocation8], %s797_s9 }
  0x22   : > { %172 = vst [vmem:[#allocation9] sm:$0xff] %v800_v2  ;;  %s811_s22 = scalar_lea.vmem [#allocation7], %s163_s11  ;;  %s813_s26 = smov 0  }
  0x23   : > { %167 = vst [vmem:[%s805_s17] sm:$0x1] %v714_v4 }
  0x28   : > { %v161_v5 = vld [vmem:[#allocation0] sm:$0xff] }
  0x29   : > { %162 = vst [vmem:[#allocation2] sm:$0xff] %v161_v5 }
  0x2a LB: >> { %vm188_vm0 = vcmp.lt.s32.totalorder %v800_v2, 3  ;;  %v820_v8 = vstv %s712_s26  ;;  %s229_s27 = ssub.s32 128, %s712_s26  ;;  %v235_v39 = vand.u32 127, %v168_v1  ;;  %s241_s28 = scalar_lea.vmem [#allocation2], %s712_s26  ;;  %v238_v42 = vld [vmem:[%s805_s17] ss:$0 sm:$0xff]  ;;  %s712_s26 = sphi %s813_s26, %s178_s26  }
  0x2b   : >> { %vm187_vm1 = vcmp.ge.s32.totalorder %v800_v2, %v820_v8  ;;  %s247_s4 = scalar_lea.vmem [#allocation9], %s712_s26  ;;  %vm267_vm14 = vcmp.gt.s32.totalorder %v800_v2, %v820_v8  ;;  %s178_s26 = sadd.s32 1, %s712_s26  }
  0x2c   : >> { %vm189_vm3 = vmand %vm187_vm1, %vm188_vm0  ;;  %vm236_vm12 = vcmp.eq.s32.totalorder %v235_v39, %v820_v8  ;;  %v249_v44 = vld [vmem:[%s247_s4] ss:$0 sm:$0xff]  ;;  %p175_p11 = scmp.ge.s32.totalorder %s178_s26, 3  }
  0x2d   : > { %s409_s6 = sshrl.u32 (%p175_p11), %s756_s16, 3  ;;  %s415_s26 = sshll.u32 (%p175_p11), %s148_s20, 4  ;;  %s416_s26 = int_to_ptr.vmem [resolvable:$true] %s415_s26 }
  0x2e   : > { %s852_s10 = sshll.u32 (%p175_p11), %s409_s6, 1  ;;  %s363_s6 = scalar_lea.sflag (%p175_p11), [#allocation6], %s146_s7 }
  0x30   : >> { %v183_v6 = vld [vmem:[#allocation2] sm:$0xff]  ;;  %v243_v40 = vld [vmem:[%s241_s28] ss:$0 sm:$0xff] }
  0x31   : >> { %v184_v7 = vand.u32 2147483647, %v183_v6 }
  0x33   : >> { %vm581_vm2 = vcmp.gt.f32.partialorder %v184_v7, -inf }
  0x34   : >> { %vm191_vm4 = vmand %vm189_vm3, %vm581_vm2 }
  0x35   : >> { %v192_v9 = vsel %vm191_vm4, %v800_v2, %v820_v8  ;;  %v193_v10 = vsel %vm191_vm4, %v184_v7, -inf  ;;  %vm284_vm4 = vmand %vm267_vm14, %vm236_vm12 }
  0x36   : >> { %v194_v11 = vrot.slane %v193_v10, 1  ;;  %v195_v12 = vrot.slane %v192_v9, 1 }
  0x38   : >> { %vm196_vm5 = vcmp.ge.f32.partialorder %v194_v11, %v193_v10  ;;  %v199_v13 = vrot.slane %v194_v11, 1  ;;  %v200_v14 = vrot.slane %v195_v12, 1 }
  0x39   : >> { %v197_v15 = vsel %vm196_vm5, %v194_v11, %v193_v10  ;;  %v198_v16 = vsel %vm196_vm5, %v195_v12, %v192_v9  ;;  %vm259_vm5 = vcmp.gt.s32.totalorder %v235_v39, %v820_v8 }
  0x3a   : >> { %vm201_vm6 = vcmp.ge.f32.partialorder %v199_v13, %v197_v15  ;;  %v204_v17 = vrot.slane %v199_v13, 1  ;;  %v205_v18 = vrot.slane %v200_v14, 1 }
  0x3b   : >> { %v202_v19 = vsel %vm201_vm6, %v199_v13, %v197_v15  ;;  %v203_v20 = vsel %vm201_vm6, %v200_v14, %v198_v16 }
  0x3c   : >> { %vm206_vm7 = vcmp.ge.f32.partialorder %v204_v17, %v202_v19  ;;  %v209_v21 = vrot.slane %v204_v17, 1  ;;  %v210_v22 = vrot.slane %v205_v18, 1 }
  0x3d   : >> { %v207_v23 = vsel %vm206_vm7, %v204_v17, %v202_v19  ;;  %v208_v24 = vsel %vm206_vm7, %v205_v18, %v203_v20 }
  0x3e   : >> { %vm211_vm8 = vcmp.ge.f32.partialorder %v209_v21, %v207_v23  ;;  %v214_v25 = vrot.slane %v209_v21, 1  ;;  %v215_v26 = vrot.slane %v210_v22, 1 }
  0x3f   : >> { %v212_v27 = vsel %vm211_vm8, %v209_v21, %v207_v23  ;;  %v213_v28 = vsel %vm211_vm8, %v210_v22, %v208_v24 }
  0x40   : >> { %vm216_vm9 = vcmp.ge.f32.partialorder %v214_v25, %v212_v27  ;;  %v219_v29 = vrot.slane %v214_v25, 1  ;;  %v220_v30 = vrot.slane %v215_v26, 1 }
  0x41   : >> { %v217_v31 = vsel %vm216_vm9, %v214_v25, %v212_v27  ;;  %v218_v32 = vsel %vm216_vm9, %v215_v26, %v213_v28 }
  0x42   : >> { %vm221_vm10 = vcmp.ge.f32.partialorder %v219_v29, %v217_v31  ;;  %v224_v33 = vrot.slane %v219_v29, 1  ;;  %v225_v34 = vrot.slane %v220_v30, 1 }
  0x43   : >> { %v222_v35 = vsel %vm221_vm10, %v219_v29, %v217_v31  ;;  %v223_v36 = vsel %vm221_vm10, %v220_v30, %v218_v32 }
  0x44   : >> { %vm226_vm11 = vcmp.ge.f32.partialorder %v224_v33, %v222_v35 }
  0x45   : >> { %v228_v37 = vsel %vm226_vm11, %v225_v34, %v223_v36 }
  0x46   : >> { %230 = vrot.lane.b32.xlu0 %v228_v37, %s229_s27 }
  0xb8   : >> { %v231_v38 = vpop.permute.xlu0 %230 }
  0xb9   : >> { %590 = vpush %v231_v38 }
  0xea   : >> { %s591_s29 = spop %590 }
  0xeb   : >> { %v237_v41 = vstv %s591_s29  ;;  %s242_s30 = scalar_lea.vmem [#allocation2], %s591_s29  ;;  %s248_s5 = scalar_lea.vmem [#allocation9], %s591_s29 }
  0xec   : >> { %v244_v43 = vld [vmem:[%s242_s30] ss:$0 sm:$0xff]  ;;  %v239_v46 = vsel %vm236_vm12, %v237_v41, %v238_v42 }
  0xed   : >> { %v250_v45 = vld [vmem:[%s248_s5] ss:$0 sm:$0xff]  ;;  %245 = vst [vmem:[%s242_s30] sm:$0x1] %v243_v40  ;;  %vm253_vm13 = vcmp.ne.f32.partialorder %v244_v43, 0.0  ;;  %v260_v62 = vsel %vm259_vm5, %v244_v43, 0.0 }
  0xee   : >> { %246 = vst [vmem:[%s241_s28] sm:$0x1] %v244_v43  ;;  %vm254_vm15 = vmand %vm236_vm12, %vm253_vm13  ;;  %s413_s28 = scalar_lea.hbm (%p175_p11), %s913_s2, %s852_s10 }
  0xef   : >> { %251 = vst [vmem:[%s248_s5] sm:$0x1] %v249_v44  ;;  %v255_v47 = vsel %vm254_vm15, %v244_v43, 1.0  ;;  %s417_s29 = sshll.u32 (%p175_p11), %s413_s28, 4  ;;  %s418_s29 = int_to_ptr.hbm [resolvable:$true] %s417_s29 }
  0xf0   : >> { %252 = vst [vmem:[%s247_s4] sm:$0x1] %v250_v45  ;;  %v268_v48 = vsel %vm267_vm14, %v255_v47, 1.0  ;;  %s656_s11 = sshra.s32 (%p175_p11), %s418_s29, 4  ;;  %s657_s11 = int_to_ptr.hbm [resolvable:$true] %s656_s11 }
  0xf1   : >> { %640 = vrcp.f32 %v268_v48  ;;  %240 = vst [vmem:[%s805_s17] sm:$0x1] %v239_v46  ;;  %v280_v52 = vand.u32 2147483648, %v268_v48  ;;  %v278_v54 = vand.u32 2147483647, %v268_v48  ;;  %vm274_vm1 = vweird.f32 %v268_v48  ;;  %s585_s17 = sshll.u32 (%p175_p11), %s756_s16, 2  ;;  %s658_s16 = scalar_lea.hbm (%p175_p11), %s657_s11, 2 }
  0xf2   : > { %s372_s5 = scalar_lea.vmem (%p175_p11), %s912_s1, %s585_s17  ;;  %p659_p12 = scmp.ne.s32.totalorder (%p175_p11), %s657_s11, %s658_s16 }
  0xf3   : >> { %v281_v56 = vor.u32 1.1754944e-38, %v280_v52  ;;  %vm279_vm3 = vcmp.eq.f32.partialorder %v278_v54, 8.507059e+37  ;;  %s662_s17 = scalar_lea.hbm (%p175_p11), %s913_s2, 2  ;;  %p663_p1 = scmp.lt.s32.totalorder (%p175_p11), %s657_s11, %s913_s2 }
  0xf4   : > { %p660_p13 = pnand (%p175_p11), %p659_p12, %p773_p5  ;;  %p664_p2 = scmp.lt.s32.totalorder (%p175_p11), %s662_s17, %s658_s16 }
  0xf5   : >> { %v264_v58 = vld [vmem:[#allocation2] sm:$0xff] }
  0xf6   : > { %p661_p0 = pneg (%p175_p11), %p660_p13  ;;  %p665_p3 = por (%p175_p11), %p664_p2, %p663_p1 }
  0xf7   : >> { %v641_v49 = vpop.eup %640  ;;  %v291_v4 = vld [vmem:[#allocation9] sm:$0xff] (%p175_p11) }
  0xf8   : >> { %v270_v50 = vmul.f32 %v641_v49, %v268_v48  ;;  %vm275_vm0 = vweird.f32 %v641_v49  ;;  %v348_v1 = vld [vmem:[#allocation4] sm:$0x3] (%p175_p11)  ;;  %p666_p4 = pnand (%p175_p11), %p665_p3, %p661_p0 }
  0xf9   : >> { %vm276_vm2 = vmor %vm274_vm1, %vm275_vm0  ;;  %351 = vst [vmem:[%s148_s20] sm:$0x3] (%p175_p11), %v348_v1 }
  0xfa   : >> { %v271_v51 = vsub.f32 1.0, %v270_v50 }
  0xfc   : >> { %v272_v53 = vmul.f32 %v641_v49, %v271_v51 }
  0xfe   : >> { %v273_v55 = vadd.f32 %v641_v49, %v272_v53 }
 0x100   : >> { %v277_v57 = vsel %vm276_vm2, %v641_v49, %v273_v55 }
 0x101   : >> { %v282_v59 = vsel %vm279_vm3, %v281_v56, %v277_v57 }
 0x102   : >> { %v283_v60 = vmul.f32 %v282_v59, %v264_v58 }
 0x104   : >> { %v285_v61 = vsel %vm284_vm4, %v283_v60, 0.0 }
 0x105   : >> { %286 = vadd.xlane.f32.xlu0 %v285_v61 }
 0x12e   : > { %307 = vxpose.xlu0.b32.start.end [1/1] (short) (narrow) (%p175_p11), %v291_v4, 8 }
 0x178   : >> { %v287_v63 = vpop.xlane.xlu0 %286 }
 0x179   : >> { %v288_v0 = vmul.f32 %v287_v63, %v260_v62  ;;  %177 = sbr.rel (!%p175_p11) target bundleno = 42 (0x2a), region = 202 }
 0x17b   : >> { %v289_v3 = vsub.f32 %v283_v60, %v288_v0 }
 0x17d   : >> { %290 = vst [vmem:[#allocation2] sm:$0xff] %v289_v3 }
 0x184   : > { %v342_v5 = vld [vmem:[#allocation2] sm:$0xf] }
 0x185   : > { %345 = vst [vmem:[%s141_s19] sm:$0xf] %v342_v5 }
 0x18c   : > { %v389_v2 = vld [vmem:[%s141_s19] sm:$0xf] }
 0x18d   : > { %390 = vst [vmem:[%s372_s5] sm:$0xf] %v389_v2 }
 0x18e   : > { %669 = shalt.err (!%p666_p4)
}
 0x18f   : > { %592 = dma.vmem_to_hbm [thread:$0]  (%p773_p5), %s416_s26, 32, %s418_s29, %s363_s6  }
 0x190   : > { %s426_s19 = scalar_lea.vmem (%p773_p5), %s914_s3, %s852_s10 }
 0x1d2   : > { %v323_v6 = vpop.trf.xlu0 }
 0x1d3   : > { %339 = vst [vmem:[%s811_s22] sm:$0x1] %v323_v6 }
 0x1d7   : > { %423 = sbr.rel (!%p773_p5) target bundleno = 484 (0x1e4), region = 96 }
 0x1da   : > { %v354_v7 = vld [vmem:[#allocation7] sm:$0x3] }
 0x1db   : > { %357 = vst [vmem:[%s154_s21] sm:$0x3] %v354_v7 }
 0x1e2   : > { %v443_v8 = vld [vmem:[%s154_s21] sm:$0x3] }
 0x1e3   : > { %444 = vst [vmem:[%s426_s19] sm:$0x3] %v443_v8 }
 0x1e4 PF: > { %s472_s20 = sand.u32 1, %s696_s12   ;;  %p595_p8 = pnand %p573_p7, %p777_p6 }
 0x1e5   : > { %s473_s24 = scalar_lea.sflag [#allocation6], %s472_s20 }
 0x1e6   : > { %p596_p9 = pneg %p595_p8 }
 0x1e8   : > { %691 = dma.done.wait (%p596_p9), %s473_s24, 32  }
 0x1e9   : > { %693 = vsyncadd (%p596_p9), %s473_s24, 4294967264  ;;  %p10_p5 = scmp.ge.s32.totalorder %s760_s18, 4   ;;  %s917_s12 = smov %s700_s13 }
 0x1ea   : > { %s918_s13 = smov %s704_s14  ;;  %s919_s14 = smov %s771_s23 }
 0x1eb   : > { %s920_s15 = smov %s760_s18  ;;  %12 = sbr.rel (!%p10_p5) target bundleno = 3 (0x3), region = 213 }
 0x1f0   :  { %486 = vsyncpa [#allocation6], 1 }
 0x1f1   :  { %488 = vsyncpa [#allocation6 + $0x1], 1 }

// kernel: custom-call.13
= control target key start
LH: loop header
LB: loop body
LE: loop exit
PB: predicated region body
PF: predicated region fallthrough
CT: control target
= control target key end

     0   :  { %s373_s6 = smov 0   ;;  %s375_s7 = smov 0   ;;  %s422_s0 = inlined_call_operand.vmem [shape: f32[2,1,3,3], index: 0, kind: input, shape index: {}]   ;;  %s423_s1 = inlined_call_operand.vmem [shape: f32[2,1,3,3], index: 1, kind: output, shape index: {}]  }
   0x1   :  { %s377_s8 = smov 0  }
   0x2 LB: > { %s299_s9 = sadd.s32 4294967295, %s360_s8   ;;  %s33_s10 = sadd.s32 1, %s356_s7  ;;  %s360_s8 = sphi %s377_s8, %s7_s8   ;;  %s356_s7 = sphi %s375_s7, %s425_s7   ;;  %s352_s6 = sphi %s373_s6, %s424_s6  }
   0x3   : > { %p35_p0 = scmp.ge.s32.totalorder %s33_s10, 2  ;;  %p301_p1 = scmp.ge.s32.totalorder %s360_s8, 2 }
   0x4   : > { %s49_s11 = sand.u32 (!%p301_p1), 1, %s360_s8   ;;  %s303_s12 = sshll.u32 (!%p301_p1), %s356_s7, 2 }
   0x5   : > { %s427_s10 = smov (%p35_p0, %s33_s10), 0  ;;  %47 = sbr.rel (%p301_p1) target bundleno = 12 (0xc), region = 16 }
   0x6   : > { %s302_s13 = sshll.u32 (!%p301_p1), %s49_s11, 2  ;;  %s56_s16 = scalar_lea.vmem (!%p301_p1), %s422_s0, %s303_s12 }
   0x7   : > { %s51_s17 = scalar_lea.vmem (!%p301_p1), [#allocation1], %s302_s13 }
   0xa   : > { %v73_v0 = vld [vmem:[%s56_s16] sm:$0xf] }
   0xb   : > { %74 = vst [vmem:[%s51_s17] sm:$0xf] %v73_v0 }
   0xc PF: > { %p304_p2 = scmp.ge.s32.totalorder %s360_s8, 1  ;;  %p91_p3 = scmp.lt.s32.totalorder %s360_s8, 3 }
   0xe   : > { %p92_p4 = pnand %p304_p2, %p91_p3 }
  0x10   : > { %95 = sbr.rel (%p92_p4) target bundleno = 437 (0x1b5), region = 50 }
  0x15   : > { %s400_s18 = sand.u32 1, %s299_s9   ;;  %v113_v1 = vlaneseq  ;;  %v362_v20 = vmov -1.0   ;;  %s308_s22 = sshll.u32 %s352_s6, 2 }
  0x16   : > { %s305_s19 = sshll.u32 %s400_s18, 2  ;;  %s206_s25 = scalar_lea.vmem %s423_s1, %s308_s22 }
  0x17   : > { %s104_s20 = scalar_lea.vmem [#allocation1], %s305_s19  ;;  %v114_v3 = vand.u32 127, %v113_v1  ;;  %v117_v4 = vshrl.u32 %v113_v1, 7  ;;  %s108_s21 = scalar_lea.vmem [#allocation3], %s305_s19 }
  0x18   : > { %v111_v2 = vld [vmem:[%s104_s20] sm:$0xf] }
  0x19   : > { %112 = vst [vmem:[#allocation0] sm:$0xf] %v111_v2  ;;  %vm119_vm0 = vcmp.eq.s32.totalorder %v117_v4, %v114_v3  ;;  %vm115_vm1 = vcmp.lt.s32.totalorder %v114_v3, 3  ;;  %vm124_vm2 = vcmp.ge.s32.totalorder %v117_v4, %v114_v3  ;;  %vm151_vm8 = vcmp.eq.s32.totalorder %v114_v3, 0 }
  0x1a   : > { %vm125_vm3 = vmand %vm124_vm2, %vm115_vm1  ;;  %vm148_vm9 = vcmp.eq.s32.totalorder %v114_v3, %v117_v4  ;;  %v152_v21 = vsel %vm151_vm8, 1.0, %v362_v20  ;;  %vm159_vm10 = vcmp.eq.s32.totalorder %v114_v3, 1  ;;  %vm169_vm11 = vcmp.eq.s32.totalorder %v114_v3, 2 }
  0x1b   : > { %v153_v22 = vsel %vm148_vm9, %v152_v21, 0.0 }
  0x20   : > { %v120_v5 = vld [vmem:[#allocation0] sm:$0xff] }
  0x21   : > { %v121_v6 = vsel %vm119_vm0, %v120_v5, 0.0  ;;  %v126_v15 = vsel %vm125_vm3, %v120_v5, 0.0 }
  0x22   : > { %122 = vadd.xlane.f32.xlu0 %v121_v6 }
  0x95   : > { %v123_v7 = vpop.xlane.xlu0 %122 }
  0x96   : > { %336 = vrcp.f32 %v123_v7  ;;  %v138_v11 = vand.u32 2147483648, %v123_v7  ;;  %v136_v13 = vand.u32 2147483647, %v123_v7  ;;  %vm132_vm5 = vweird.f32 %v123_v7 }
  0x98   : > { %v139_v16 = vor.u32 1.1754944e-38, %v138_v11  ;;  %vm137_vm7 = vcmp.eq.f32.partialorder %v136_v13, 8.507059e+37 }
  0x9c   : > { %v337_v8 = vpop.eup %336 }
  0x9d   : > { %v128_v9 = vmul.f32 %v337_v8, %v123_v7  ;;  %vm133_vm4 = vweird.f32 %v337_v8 }
  0x9e   : > { %vm134_vm6 = vmor %vm132_vm5, %vm133_vm4 }
  0x9f   : > { %v129_v10 = vsub.f32 1.0, %v128_v9 }
  0xa1   : > { %v130_v12 = vmul.f32 %v337_v8, %v129_v10 }
  0xa3   : > { %v131_v14 = vadd.f32 %v337_v8, %v130_v12 }
  0xa5   : > { %v135_v17 = vsel %vm134_vm6, %v337_v8, %v131_v14 }
  0xa6   : > { %v140_v18 = vsel %vm137_vm7, %v139_v16, %v135_v17 }
  0xa7   : > { %v141_v19 = vmul.f32 %v140_v18, %v126_v15 }
  0xa9   : > { %142 = vst [vmem:[#allocation4] sm:$0xff] %v141_v19 }
  0xb0   : > { %v155_v23 = vld [vmem:[#allocation4 + $0x1] ss:$0 sm:$0xff]  ;;  %v165_v26 = vld [vmem:[#allocation4 + $0x2] ss:$0 sm:$0xff] }
  0xb1   : > { %v156_v24 = vxor.u32 2147483648, %v155_v23  ;;  %v166_v28 = vxor.u32 2147483648, %v165_v26 }
  0xb3   : > { %v160_v25 = vmul.f32 %v156_v24, %v153_v22 }
  0xb5   : > { %161 = vadd.xlane.f32.xlu0 %v160_v25 }
 0x128   : > { %v162_v27 = vpop.xlane.xlu0 %161 }
 0x129   : > { %v163_v29 = vsel %vm159_vm10, %v162_v27, %v153_v22 }
 0x12a   : > { %v170_v30 = vmul.f32 %v166_v28, %v163_v29 }
 0x12c   : > { %171 = vadd.xlane.f32.xlu1 %v170_v30 }
 0x19f   : > { %v172_v31 = vpop.xlane.xlu1 %171 }
 0x1a0   : > { %v173_v32 = vsel %vm169_vm11, %v172_v31, %v163_v29 }
 0x1a1   : > { %v188_v33 = vmul.f32 %v173_v32, %v140_v18 }
 0x1a3   : > { %v190_v34 = vsel %vm132_vm5, %v173_v32, %v188_v33 }
 0x1a4   : > { %191 = vst [vmem:[#allocation2] sm:$0xff] %v190_v34 }
 0x1ab   : > { %v194_v35 = vld [vmem:[#allocation2] sm:$0xf] }
 0x1ac   : > { %197 = vst [vmem:[%s108_s21] sm:$0xf] %v194_v35 }
 0x1b3   : > { %v223_v36 = vld [vmem:[%s108_s21] sm:$0xf] }
 0x1b4   : > { %224 = vst [vmem:[%s206_s25] sm:$0xf] %v223_v36 }
 0x1b5 PF: > { %s7_s8 = sadd.s32 1, %s360_s8   ;;  %s424_s6 = smov %s356_s7 }
 0x1b6   : > { %p4_p5 = scmp.ge.s32.totalorder %s7_s8, 4   ;;  %s425_s7 = smov %s427_s10 }
 0x1b8   :  { %6 = sbr.rel (!%p4_p5) target bundleno = 2 (0x2), region = 112 }

// kernel: custom-call.12
= control target key start
LH: loop header
LB: loop body
LE: loop exit
PB: predicated region body
PF: predicated region fallthrough
CT: control target
= control target key end

     0   :  { %s372_s6 = smov 0   ;;  %s374_s7 = smov 0   ;;  %s421_s0 = inlined_call_operand.vmem [shape: f32[2,1,3,3], index: 0, kind: input, shape index: {}]   ;;  %s422_s1 = inlined_call_operand.vmem [shape: f32[2,1,3,3], index: 1, kind: output, shape index: {}]  }
   0x1   :  { %s376_s8 = smov 0  }
   0x2 LB: > { %s298_s9 = sadd.s32 4294967295, %s359_s8   ;;  %s33_s10 = sadd.s32 1, %s355_s7  ;;  %s359_s8 = sphi %s376_s8, %s7_s8   ;;  %s355_s7 = sphi %s374_s7, %s424_s7   ;;  %s351_s6 = sphi %s372_s6, %s423_s6  }
   0x3   : > { %p35_p0 = scmp.ge.s32.totalorder %s33_s10, 2  ;;  %p300_p1 = scmp.ge.s32.totalorder %s359_s8, 2 }
   0x4   : > { %s49_s11 = sand.u32 (!%p300_p1), 1, %s359_s8   ;;  %s302_s12 = sshll.u32 (!%p300_p1), %s355_s7, 2 }
   0x5   : > { %s426_s10 = smov (%p35_p0, %s33_s10), 0  ;;  %47 = sbr.rel (%p300_p1) target bundleno = 12 (0xc), region = 16 }
   0x6   : > { %s301_s13 = sshll.u32 (!%p300_p1), %s49_s11, 2  ;;  %s56_s16 = scalar_lea.vmem (!%p300_p1), %s421_s0, %s302_s12 }
   0x7   : > { %s51_s17 = scalar_lea.vmem (!%p300_p1), [#allocation1], %s301_s13 }
   0xa   : > { %v73_v0 = vld [vmem:[%s56_s16] sm:$0xf] }
   0xb   : > { %74 = vst [vmem:[%s51_s17] sm:$0xf] %v73_v0 }
   0xc PF: > { %p303_p2 = scmp.ge.s32.totalorder %s359_s8, 1  ;;  %p91_p3 = scmp.lt.s32.totalorder %s359_s8, 3 }
   0xe   : > { %p92_p4 = pnand %p303_p2, %p91_p3 }
  0x10   : > { %95 = sbr.rel (%p92_p4) target bundleno = 437 (0x1b5), region = 50 }
  0x15   : > { %s399_s18 = sand.u32 1, %s298_s9   ;;  %v113_v1 = vlaneseq  ;;  %v361_v20 = vmov -1.0   ;;  %s307_s22 = sshll.u32 %s351_s6, 2 }
  0x16   : > { %s304_s19 = sshll.u32 %s399_s18, 2  ;;  %s205_s25 = scalar_lea.vmem %s422_s1, %s307_s22 }
  0x17   : > { %s104_s20 = scalar_lea.vmem [#allocation1], %s304_s19  ;;  %v114_v3 = vand.u32 127, %v113_v1  ;;  %v117_v4 = vshrl.u32 %v113_v1, 7  ;;  %s108_s21 = scalar_lea.vmem [#allocation3], %s304_s19 }
  0x18   : > { %v111_v2 = vld [vmem:[%s104_s20] sm:$0xf] }
  0x19   : > { %112 = vst [vmem:[#allocation0] sm:$0xf] %v111_v2  ;;  %vm119_vm0 = vcmp.eq.s32.totalorder %v117_v4, %v114_v3  ;;  %vm115_vm1 = vcmp.lt.s32.totalorder %v114_v3, 3  ;;  %vm124_vm2 = vcmp.le.s32.totalorder %v117_v4, %v114_v3  ;;  %vm151_vm8 = vcmp.eq.s32.totalorder %v114_v3, 2 }
  0x1a   : > { %vm125_vm3 = vmand %vm124_vm2, %vm115_vm1  ;;  %vm148_vm9 = vcmp.eq.s32.totalorder %v114_v3, %v117_v4  ;;  %v152_v21 = vsel %vm151_vm8, 1.0, %v361_v20  ;;  %vm159_vm10 = vcmp.eq.s32.totalorder %v114_v3, 1  ;;  %vm168_vm11 = vcmp.eq.s32.totalorder %v114_v3, 0 }
  0x1b   : > { %v153_v22 = vsel %vm148_vm9, %v152_v21, 0.0 }
  0x20   : > { %v120_v5 = vld [vmem:[#allocation0] sm:$0xff] }
  0x21   : > { %v121_v6 = vsel %vm119_vm0, %v120_v5, 0.0  ;;  %v126_v15 = vsel %vm125_vm3, %v120_v5, 0.0 }
  0x22   : > { %122 = vadd.xlane.f32.xlu0 %v121_v6 }
  0x95   : > { %v123_v7 = vpop.xlane.xlu0 %122 }
  0x96   : > { %335 = vrcp.f32 %v123_v7  ;;  %v138_v11 = vand.u32 2147483648, %v123_v7  ;;  %v136_v13 = vand.u32 2147483647, %v123_v7  ;;  %vm132_vm5 = vweird.f32 %v123_v7 }
  0x98   : > { %v139_v16 = vor.u32 1.1754944e-38, %v138_v11  ;;  %vm137_vm7 = vcmp.eq.f32.partialorder %v136_v13, 8.507059e+37 }
  0x9c   : > { %v336_v8 = vpop.eup %335 }
  0x9d   : > { %v128_v9 = vmul.f32 %v336_v8, %v123_v7  ;;  %vm133_vm4 = vweird.f32 %v336_v8 }
  0x9e   : > { %vm134_vm6 = vmor %vm132_vm5, %vm133_vm4 }
  0x9f   : > { %v129_v10 = vsub.f32 1.0, %v128_v9 }
  0xa1   : > { %v130_v12 = vmul.f32 %v336_v8, %v129_v10 }
  0xa3   : > { %v131_v14 = vadd.f32 %v336_v8, %v130_v12 }
  0xa5   : > { %v135_v17 = vsel %vm134_vm6, %v336_v8, %v131_v14 }
  0xa6   : > { %v140_v18 = vsel %vm137_vm7, %v139_v16, %v135_v17 }
  0xa7   : > { %v141_v19 = vmul.f32 %v140_v18, %v126_v15 }
  0xa9   : > { %142 = vst [vmem:[#allocation4] sm:$0xff] %v141_v19 }
  0xb0   : > { %v155_v23 = vld [vmem:[#allocation4 + $0x1] ss:$0 sm:$0xff]  ;;  %v164_v26 = vld [vmem:[#allocation4] ss:$0 sm:$0xff] }
  0xb1   : > { %v156_v24 = vxor.u32 2147483648, %v155_v23  ;;  %v165_v28 = vxor.u32 2147483648, %v164_v26 }
  0xb3   : > { %v160_v25 = vmul.f32 %v156_v24, %v153_v22 }
  0xb5   : > { %161 = vadd.xlane.f32.xlu0 %v160_v25 }
 0x128   : > { %v162_v27 = vpop.xlane.xlu0 %161 }
 0x129   : > { %v163_v29 = vsel %vm159_vm10, %v162_v27, %v153_v22 }
 0x12a   : > { %v169_v30 = vmul.f32 %v165_v28, %v163_v29 }
 0x12c   : > { %170 = vadd.xlane.f32.xlu1 %v169_v30 }
 0x19f   : > { %v171_v31 = vpop.xlane.xlu1 %170 }
 0x1a0   : > { %v172_v32 = vsel %vm168_vm11, %v171_v31, %v163_v29 }
 0x1a1   : > { %v187_v33 = vmul.f32 %v172_v32, %v140_v18 }
 0x1a3   : > { %v189_v34 = vsel %vm132_vm5, %v172_v32, %v187_v33 }
 0x1a4   : > { %190 = vst [vmem:[#allocation2] sm:$0xff] %v189_v34 }
 0x1ab   : > { %v193_v35 = vld [vmem:[#allocation2] sm:$0xf] }
 0x1ac   : > { %196 = vst [vmem:[%s108_s21] sm:$0xf] %v193_v35 }
 0x1b3   : > { %v222_v36 = vld [vmem:[%s108_s21] sm:$0xf] }
 0x1b4   : > { %223 = vst [vmem:[%s205_s25] sm:$0xf] %v222_v36 }
 0x1b5 PF: > { %s7_s8 = sadd.s32 1, %s359_s8   ;;  %s423_s6 = smov %s355_s7 }
 0x1b6   : > { %p4_p5 = scmp.ge.s32.totalorder %s7_s8, 4   ;;  %s424_s7 = smov %s426_s10 }
 0x1b8   :  { %6 = sbr.rel (!%p4_p5) target bundleno = 2 (0x2), region = 111 }

// kernel: unsup_loss.3
= control target key start
LH: loop header
LB: loop body
LE: loop exit
PB: predicated region body
PF: predicated region fallthrough
CT: control target
= control target key end

     0   :  { %9 = vsyncpa [#allocation4], 0  ;;  %s871_s15 = smov 0   ;;  %s873_s16 = smov 0   ;;  %s1116_s0 = inlined_call_operand.vmem [shape: f32[2], index: 0, kind: input, shape index: {}]   ;;  %s1117_s1 = inlined_call_operand.vmem [shape: f32[2,2,16,16], index: 1, kind: input, shape index: {}]   ;;  %s1118_s2 = inlined_call_operand.vmem [shape: f32[2,16,16], index: 2, kind: input, shape index: {}]   ;;  %s1119_s3 = inlined_call_operand.vmem [shape: f32[2,3,16,16], index: 3, kind: input, shape index: {}]   ;;  %s1120_s4 = inlined_call_operand.vmem [shape: f32[2,1,128], index: 4, kind: output, shape index: {}]  }
   0x1   :  { %s875_s17 = smov 0   ;;  %s877_s18 = smov 0  }
   0x2   :  { %s879_s19 = smov 0  }
   0x3 LB: > { %s685_s20 = sadd.s32 4294967295, %s838_s19   ;;  %s24_s21 = sadd.s32 1, %s830_s17  ;;  %s838_s19 = sphi %s879_s19, %s15_s19   ;;  %s834_s18 = sphi %s877_s18, %s1124_s18   ;;  %s830_s17 = sphi %s875_s17, %s1123_s17   ;;  %s826_s16 = sphi %s873_s16, %s1122_s16   ;;  %s822_s15 = sphi %s871_s15, %s1121_s15  }
   0x4   : > { %p25_p0 = scmp.ge.s32.totalorder %s24_s21, 2  ;;  %s27_s22 = sadd.s32 1, %s834_s18 }
   0x5   : > { %p687_p1 = scmp.ge.s32.totalorder %s838_s19, 1  ;;  %p159_p2 = scmp.lt.s32.totalorder %s838_s19, 5 }
   0x6   : > { %s1126_s21 = smov (%p25_p0, %s24_s21), 0  ;;  %s1128_s22 = smov (!%p25_p0, %s27_s22), %s834_s18 }
   0x7   : > { %p160_p3 = pnand %p687_p1, %p159_p2  ;;  %p29_p4 = scmp.ge.s32.totalorder %s1128_s22, 2 }
   0x8   : > { %p723_p5 = scmp.eq.s32.totalorder %s685_s20, 0  ;;  %s171_s25 = sshll.u32 %s1116_s0, 4  ;;  %s172_s25 = int_to_ptr.vmem [resolvable:$true] %s171_s25 }
   0x9   : > { %p719_p6 = pneg %p160_p3  ;;  %s1130_s22 = smov (%p29_p4, %s1128_s22), 0 }
   0xa   : > { %s840_s26 = smov [#allocation3]   ;;  %212 = sbr.rel (%p160_p3) target bundleno = 628 (0x274), region = 36 }
   0xb   : > { %p720_p7 = pnand %p723_p5, %p719_p6 }
   0xd   : > { %722 = dma.vmem_to_smem (!%p720_p7), %s172_s25, 16, %s840_s26, [#allocation4]  }
   0xf   : > { %817 = dma.done.wait (%p723_p5), [#allocation4], 16  }
  0x10   : > { %819 = vsyncadd (%p723_p5), [#allocation4], 4294967280 }
  0x11   : > { %219 = sfence }
  0x12   : > { %p252_p8 = scmp.lt.s32.totalorder %s822_s15, 1  ;;  %p254_p9 = scmp.lt.s32.totalorder %s826_s16, 1 }
  0x13   : > { %s274_s27 = sld [smem:[#allocation3 + %s822_s15]]  ;;  %p698_p10 = scmp.ne.s32.totalorder %s822_s15, 0 }
  0x14   : > { %s253_s28 = scalar_select %p252_p8, %s822_s15, 1 }
  0x15   : > { %s1132_s16 = smov (!%p254_p9, %s826_s16), 1 }
  0x16   : > { %s693_s29 = sshll.u32 %s253_s28, 2  ;;  %s692_s30 = sshll.u32 %s1132_s16, 1 }
  0x17   : > { %s707_s5 = sshll.u32 %s1132_s16, 4  ;;  %s258_s6 = sadd.s32 %s693_s29, %s692_s30 }
  0x18   : > { %s921_s9 = scalar_lea.vmem %s1118_s2, %s707_s5  ;;  %s694_s10 = sshll.u32 %s258_s6, 3 }
  0x19   : > { %s708_s11 = smul.u32 48, %s1132_s16  ;;  %s260_s14 = scalar_lea.vmem %s1117_s1, %s694_s10  ;;  %v281_v4 = vstv %s274_s27 }
  0x1a   : > { %s273_s24 = scalar_lea.vmem %s1120_s4, %s1132_s16  ;;  %v275_v0 = vld [vmem:[%s260_s14] sm:$0xff]  ;;  %v276_v1 = vld [vmem:[%s260_s14 + $0x8] sm:$0xff] }
  0x1b   : > { %s934_s28 = scalar_lea.vmem %s1119_s3, %s708_s11  ;;  %v277_v2 = vsub.f32 1.0, %v275_v0  ;;  %v278_v3 = vsub.f32 1.0, %v276_v1  ;;  %287 = sbr.rel (%p698_p10) target bundleno = 35 (0x23), region = 44 }
  0x1d   : > { %v279_v5 = vmul.f32 10000.0, %v277_v2  ;;  %v280_v6 = vmul.f32 10000.0, %v278_v3 }
  0x1f   : > { %v282_v7 = vadd.f32 %v281_v4, %v279_v5  ;;  %v283_v8 = vadd.f32 %v281_v4, %v280_v6 }
  0x20   : > { %vm288_vm0 = vcmask 130048  }
  0x21   : > { %289 = vst.msk [vmem:[#allocation2] sm:$0xff] %vm288_vm0, %v282_v7 }
  0x22   : > { %290 = vst.msk [vmem:[#allocation2 + $0x8] sm:$0xff] %vm288_vm0, %v283_v8 }
  0x23 PF: > { %p699_p11 = scmp.le.s32.totalorder %s822_s15, 0 }
  0x25   : > { %294 = sbr.rel (%p699_p11) target bundleno = 47 (0x2f), region = 48 }
  0x2a   : > { %v295_v9 = vld [vmem:[#allocation2] sm:$0xff]  ;;  %vm299_vm1 = vcmask 130048   ;;  %v296_v10 = vld [vmem:[#allocation2 + $0x8] sm:$0xff] }
  0x2b   : > { %v297_v11 = vmin.f32 %v295_v9, %v282_v7  ;;  %v298_v12 = vmin.f32 %v296_v10, %v283_v8 }
  0x2d   : > { %300 = vst.msk [vmem:[#allocation2] sm:$0xff] %vm299_vm1, %v297_v11 }
  0x2e   : > { %301 = vst.msk [vmem:[#allocation2 + $0x8] sm:$0xff] %vm299_vm1, %v298_v12 }
  0x2f PF: > { %p700_p12 = scmp.ne.s32.totalorder %s822_s15, 1 }
  0x30   : > { %s841_s27 = smov (!%p700_p12), 16   ;;  %s842_s15 = smov (!%p700_p12), 1  }
  0x31   : > { %305 = sbr.rel (%p700_p12) target bundleno = 628 (0x274), region = 52  ;;  %s845_s29 = smov (!%p700_p12), 127  }
  0x36   : > { %v940_v13 = vld [vmem:[%s934_s28 + $0x10] sm:$0xff]  ;;  %v943_v14 = vld [vmem:[%s934_s28] sm:$0xff]  ;;  %v955_v16 = vld [vmem:[%s934_s28 + $0x8] sm:$0xff]  ;;  %vm351_vm2 = vcmask 1047680   ;;  %v337_v34 = vlaneseq  ;;  %v843_v39 = vmov 0.0   ;;  %v844_v45 = vmov 3.0  }
  0x37   : > { %395 = vrot.lane.b32.xlu1 %v940_v13, %s841_s27  ;;  %389 = vrot.lane.b32.xlu0 %v943_v14, %s841_s27  ;;  %v950_v15 = vld [vmem:[%s934_s28 + $0x20] sm:$0xff]  ;;  %v958_v17 = vld [vmem:[%s934_s28 + $0x18] sm:$0xff]  ;;  %771 = vrcp.f32 %v844_v45  ;;  %vm479_vm4 = vcmask 138248   ;;  %vm316_vm9 = vcmask 130048  }
  0x38   : > { %401 = vrot.lane.b32.xlu2 %v950_v15, %s841_s27  ;;  %v961_v18 = vld [vmem:[%s934_s28 + $0x28] sm:$0xff]  ;;  %v973_v20 = vld [vmem:[%s921_s9] sm:$0xff]  ;;  %v1012_v37 = vand.u32 127, %v337_v34 }
  0x39   : > { %v970_v19 = vld [vmem:[%s921_s9 + $0x8] sm:$0xff] }
  0x3a   : > { %vm342_vm3 = vcmp.lt.s32.totalorder %v1012_v37, 15  ;;  %vm569_vm11 = vcmp.eq.s32.totalorder %v1012_v37, 0  ;;  %vm572_vm12 = vcmp.eq.s32.totalorder %v1012_v37, 1  ;;  %vm576_vm13 = vcmp.eq.s32.totalorder %v1012_v37, 2 }
  0x3b   : > { %v703_v40 = vsel %vm342_vm3, 1.0, %v843_v39 }
  0x3d   : > { %v772_v49 = vpop.eup %771 }
  0x3e   : > { %v491_v50 = vmul.f32 3.0, %v772_v49  ;;  %vm495_vm5 = vweird.f32 %v772_v49 }
  0x3f   : > { %392 = vrot.lane.b32.xlu0 %v955_v16, %s841_s27  ;;  %398 = vrot.lane.b32.xlu1 %v958_v17, %s841_s27 }
  0x40   : > { %404 = vrot.lane.b32.xlu2 %v961_v18, %s841_s27  ;;  %v492_v57 = vsub.f32 1.0, %v491_v50 }
  0x42   : > { %v493_v63 = vmul.f32 %v772_v49, %v492_v57 }
  0x44   : > { %v494_v6 = vadd.f32 %v772_v49, %v493_v63  ;;  %v457_v63 = vrot.slane %v950_v15, 1 }
  0x47   : > { %355 = vrot.lane.b32.xlu1 %v970_v19, %s841_s27  ;;  %352 = vrot.lane.b32.xlu0 %v973_v20, %s841_s27 }
  0x48   : > { %435 = vrot.lane.b32.xlu2 %v940_v13, %s842_s15 }
  0x4f   : > { %431 = vrot.lane.b32.xlu0 %v943_v14, %s842_s15  ;;  %433 = vrot.lane.b32.xlu1 %v955_v16, %s842_s15 }
  0x57   : > { %437 = vrot.lane.b32.xlu0 %v958_v17, %s842_s15 }
  0x92   : > { %v402_v25 = vpop.permute.xlu2 %401 }
  0x93   : > { %v403_v26 = vsel %vm351_vm2, %v402_v25, %v950_v15 }
  0x9a   : > { %v405_v31 = vpop.permute.xlu2 %404 }
  0x9b   : > { %v406_v32 = vsel %vm351_vm2, %v405_v31, %v961_v18 }
  0xa2   : > { %v436_v41 = vpop.permute.xlu2 %435 }
  0xa9   : > { %v396_v21 = vpop.permute.xlu1 %395  ;;  %v390_v22 = vpop.permute.xlu0 %389 }
  0xaa   : > { %v391_v23 = vsel %vm351_vm2, %v390_v22, %v943_v14  ;;  %v397_v24 = vsel %vm351_vm2, %v396_v21, %v940_v13 }
  0xab   : > { %407 = vrot.lane.b32.xlu2 %v391_v23, %s841_s27  ;;  %411 = vrot.lane.b32.xlu1 %v397_v24, %s841_s27 }
  0xb1   : > { %v393_v27 = vpop.permute.xlu0 %392  ;;  %v399_v28 = vpop.permute.xlu1 %398 }
  0xb2   : > { %v394_v29 = vsel %vm351_vm2, %v393_v27, %v955_v16  ;;  %v400_v30 = vsel %vm351_vm2, %v399_v28, %v958_v17  ;;  %v1041_v28 = vsel %vm495_vm5, %v772_v49, %v494_v6 }
  0xb3   : > { %415 = vrot.lane.b32.xlu1 %v403_v26, %s841_s27  ;;  %409 = vrot.lane.b32.xlu0 %v394_v29, %s841_s27 }
  0xb4   : > { %413 = vrot.lane.b32.xlu2 %v400_v30, %s841_s27 }
  0xb9   : > { %v356_v33 = vpop.permute.xlu1 %355  ;;  %v353_v35 = vpop.permute.xlu0 %352 }
  0xba   : > { %v357_v36 = vsel %vm351_vm2, %v356_v33, %v970_v19  ;;  %v354_v38 = vsel %vm351_vm2, %v353_v35, %v973_v20 }
  0xbb   : > { %441 = vrot.lane.b32.xlu1 %v961_v18, %s842_s15  ;;  %439 = vrot.lane.b32.xlu0 %v950_v15, %s842_s15 }
  0xbc   : > { %417 = vrot.lane.b32.xlu2 %v406_v32, %s841_s27 }
  0xc1   : > { %v434_v42 = vpop.permute.xlu1 %433  ;;  %v432_v44 = vpop.permute.xlu0 %431 }
  0xc3   : > { %360 = vrot.lane.b32.xlu0 %v357_v36, %s841_s27  ;;  %366 = vrot.lane.b32.xlu1 %v973_v20, %s842_s15 }
  0xc4   : > { %358 = vrot.lane.b32.xlu2 %v354_v38, %s841_s27 }
  0xc9   : > { %v438_v47 = vpop.permute.xlu0 %437 }
  0xcb   : > { %375 = vrot.lane.b32.xlu0 %v703_v40, %s842_s15 }
  0xcc   : > { %368 = vrot.lane.b32.xlu2 %v970_v19, %s842_s15 }
 0x105   : > { %v408_v43 = vpop.permute.xlu2 %407 }
 0x106   : > { %v419_v53 = vsel %vm351_vm2, %v408_v43, %v943_v14 }
 0x107   : > { %v449_v61 = vsub.f32 %v419_v53, %v432_v44 }
 0x109   : > { %v473_v4 = vand.u32 2147483647, %v449_v61  ;;  %v459_v61 = vrot.slane %v958_v17, 1 }
 0x10b   : > { %v480_v22 = vsel %vm479_vm4, %v473_v4, 0.0 }
 0x10e   : > { %v414_v46 = vpop.permute.xlu2 %413 }
 0x10f   : > { %v422_v54 = vsel %vm351_vm2, %v414_v46, %v958_v17 }
 0x110   : > { %v452_v62 = vsub.f32 %v422_v54, %v438_v47 }
 0x112   : > { %v476_v5 = vand.u32 2147483647, %v452_v62  ;;  %v340_v62 = vshrl.u32 %v337_v34, 7 }
 0x114   : > { %v486_v23 = vsel %vm479_vm4, %v476_v5, 0.0  ;;  %vm382_vm6 = vcmp.lt.s32.totalorder %v340_v62, 7 }
 0x116   : > { %v418_v52 = vpop.permute.xlu2 %417 }
 0x117   : > { %v424_v2 = vsel %vm351_vm2, %v418_v52, %v961_v18 }
 0x11d   : > { %v412_v48 = vpop.permute.xlu1 %411 }
 0x11e   : > { %v421_v51 = vsel %vm351_vm2, %v412_v48, %v940_v13  ;;  %v359_v21 = vpop.permute.xlu2 %358 }
 0x11f   : > { %v451_v58 = vsub.f32 %v421_v51, %v436_v41 }
 0x121   : > { %v475_v0 = vand.u32 2147483647, %v451_v58  ;;  %v456_v58 = vrot.slane %v940_v13, 1 }
 0x123   : > { %v481_v9 = vsel %vm479_vm4, %v475_v0, 0.0  ;;  %v460_v0 = vrot.slane %v961_v18, 1  ;;  %v465_v4 = vsel %vm382_vm6, %v459_v61, %v456_v58 }
 0x124   : > { %v482_v27 = vadd.f32 %v481_v9, %v480_v22  ;;  %v470_v9 = vsub.f32 %v465_v4, %v958_v17  ;;  %v380_v17 = vrot.slane %v973_v20, 1 }
 0x125   : > { %v416_v55 = vpop.permute.xlu1 %415  ;;  %v410_v56 = vpop.permute.xlu0 %409  ;;  %v466_v34 = vsel %vm382_vm6, %v460_v0, %v457_v63 }
 0x126   : > { %v420_v59 = vsel %vm351_vm2, %v410_v56, %v955_v16  ;;  %v423_v3 = vsel %vm351_vm2, %v416_v55, %v950_v15  ;;  %v369_v45 = vpop.permute.xlu2 %368 }
 0x127   : > { %v450_v60 = vsub.f32 %v420_v59, %v434_v42  ;;  %v362_v42 = vsel %vm351_vm2, %v359_v21, %v973_v20  ;;  %v455_v59 = vrot.slane %v943_v14, 1  ;;  %v472_v21 = vsub.f32 %v466_v34, %v961_v18 }
 0x129   : > { %v474_v1 = vand.u32 2147483647, %v450_v60  ;;  %v458_v60 = vrot.slane %v955_v16, 1 }
 0x12b   : > { %v485_v10 = vsel %vm479_vm4, %v474_v1, 0.0  ;;  %v461_v1 = vsel %vm382_vm6, %v455_v59, %v458_v60 }
 0x12c   : > { %v487_v26 = vadd.f32 %v486_v23, %v485_v10  ;;  %v467_v5 = vsub.f32 %v461_v1, %v943_v14  ;;  %v306_v10 = vld [vmem:[#allocation2] sm:$0xff] }
 0x12d   : > { %v442_v7 = vpop.permute.xlu1 %441  ;;  %v440_v8 = vpop.permute.xlu0 %439  ;;  %vm308_vm7 = vcmp.lt.f32.partialorder %v306_v10, 10000.0 }
 0x12e   : > { %v454_v11 = vsub.f32 %v424_v2, %v442_v7  ;;  %v453_v12 = vsub.f32 %v423_v3, %v440_v8  ;;  %v462_v2 = vsel %vm382_vm6, %v456_v58, %v459_v61  ;;  %v464_v3 = vsel %vm382_vm6, %v458_v60, %v455_v59 }
 0x12f   : > { %v469_v6 = vsub.f32 %v462_v2, %v940_v13  ;;  %v463_v7 = vsel %vm382_vm6, %v457_v63, %v460_v0  ;;  %v468_v8 = vsub.f32 %v464_v3, %v955_v16  ;;  %v505_v22 = vand.u32 2147483647, %v467_v5 }
 0x130   : > { %v478_v24 = vand.u32 2147483647, %v454_v11  ;;  %v477_v25 = vand.u32 2147483647, %v453_v12  ;;  %v307_v11 = vld [vmem:[#allocation2 + $0x8] sm:$0xff]  ;;  %v471_v12 = vsub.f32 %v463_v7, %v950_v15  ;;  %v701_v13 = vsel %vm308_vm7, 1.0, %v843_v39 }
 0x131   : > { %vm309_vm8 = vcmp.lt.f32.partialorder %v307_v11, 10000.0  ;;  %v507_v14 = vand.u32 2147483647, %v469_v6  ;;  %v506_v16 = vand.u32 2147483647, %v468_v8 }
 0x132   : > { %v488_v29 = vsel %vm479_vm4, %v478_v24, 0.0  ;;  %v483_v30 = vsel %vm479_vm4, %v477_v25, 0.0  ;;  %v702_v23 = vsel %vm309_vm8, 1.0, %v843_v39  ;;  %v314_v24 = vmul.f32 %v701_v13, %v306_v10 }
 0x133   : > { %v489_v31 = vadd.f32 %v488_v29, %v487_v26  ;;  %v484_v32 = vadd.f32 %v483_v30, %v482_v27  ;;  %v315_v25 = vmul.f32 %v702_v23, %v307_v11  ;;  %v508_v26 = vand.u32 2147483647, %v470_v9 }
 0x134   : > { %v509_v27 = vand.u32 2147483647, %v471_v12  ;;  %v510_v29 = vand.u32 2147483647, %v472_v21  ;;  %v317_v15 = vsel %vm316_vm9, %v314_v24, 0.0  ;;  %v511_v30 = vsel %vm316_vm9, %v505_v22, 0.0 }
 0x135   : > { %v498_v33 = vmul.f32 %v1041_v28, %v489_v31  ;;  %v497_v35 = vmul.f32 %v1041_v28, %v484_v32  ;;  %v361_v36 = vpop.permute.xlu0 %360  ;;  %v367_v41 = vpop.permute.xlu1 %366  ;;  %v318_v18 = vsel %vm316_vm9, %v315_v25, 0.0  ;;  %v512_v31 = vsel %vm316_vm9, %v507_v14, 0.0 }
 0x136   : > { %v363_v46 = vsel %vm351_vm2, %v361_v36, %v970_v19  ;;  %v372_v47 = vsub.f32 %v362_v42, %v367_v41  ;;  %v319_v32 = vadd.f32 %v318_v18, %v317_v15  ;;  %v514_v36 = vsel %vm316_vm9, %v509_v27, 0.0 }
 0x137   : > { %v500_v38 = vsub.f32 0.0, %v498_v33  ;;  %v499_v40 = vsub.f32 0.0, %v497_v35  ;;  %v373_v48 = vsub.f32 %v363_v46, %v369_v45  ;;  %v381_v33 = vrot.slane %v970_v19, 1 }
 0x138   : > { %v513_v35 = vadd.f32 %v512_v31, %v511_v30  ;;  %v517_v41 = vsel %vm316_vm9, %v508_v26, 0.0  ;;  %v519_v42 = vsel %vm316_vm9, %v510_v29, 0.0  ;;  %320 = vadd.xlane.f32.xlu0 %v319_v32 }
 0x139   : > { %v503_v43 = vmul.f32 1.442695, %v500_v38  ;;  %v501_v44 = vmul.f32 1.442695, %v499_v40  ;;  %v341_v38 = vadd.s32 8, %v340_v62  ;;  %v516_v40 = vsel %vm316_vm9, %v506_v16, 0.0 }
 0x13a   : > { %v384_v45 = vsel %vm382_vm6, %v381_v33, %v380_v17 }
 0x13b   : > { %773 = vpow2.f32 %v503_v43  ;;  %v515_v43 = vadd.f32 %v514_v36, %v513_v35  ;;  %vm346_vm10 = vcmp.lt.s32.totalorder %v341_v38, 15 }
 0x13c   : > { %775 = vpow2.f32 %v501_v44  ;;  %v518_v44 = vadd.f32 %v517_v41, %v516_v40 }
 0x13d   : > { %v376_v49 = vpop.permute.xlu0 %375 }
 0x13e   : > { %v378_v50 = vmul.f32 %v376_v49, %v372_v47  ;;  %v379_v51 = vmul.f32 %v376_v49, %v373_v48  ;;  %v520_v46 = vadd.f32 %v519_v42, %v518_v44  ;;  %v521_v47 = vmul.f32 %v515_v43, %v1041_v28 }
 0x13f   : > { %v383_v48 = vsel %vm382_vm6, %v380_v17, %v381_v33 }
 0x140   : > { %v529_v52 = vand.u32 2147483647, %v378_v50  ;;  %v530_v53 = vand.u32 2147483647, %v379_v51  ;;  %v522_v49 = vmul.f32 %v520_v46, %v1041_v28  ;;  %v523_v50 = vsub.f32 0.0, %v521_v47 }
 0x141   : > { %v774_v54 = vpop.eup %773  ;;  %v386_v51 = vsub.f32 %v384_v45, %v970_v19 }
 0x142   : > { %v776_v55 = vpop.eup %775  ;;  %v532_v56 = vmul.f32 %v774_v54, %v530_v53  ;;  %v524_v53 = vsub.f32 0.0, %v522_v49  ;;  %v525_v54 = vmul.f32 1.442695, %v523_v50 }
 0x143   : > { %v531_v57 = vmul.f32 %v776_v55, %v529_v52  ;;  %v704_v52 = vsel %vm346_vm10, 1.0, %v843_v39  ;;  %v385_v55 = vsub.f32 %v383_v48, %v973_v20 }
 0x144   : > { %537 = vrot.lane.b32.xlu2 %v532_v56, %s845_s29  ;;  %777 = vpow2.f32 %v525_v54  ;;  %v527_v56 = vmul.f32 1.442695, %v524_v53 }
 0x145   : > { %535 = vrot.lane.b32.xlu1 %v531_v57, %s845_s29  ;;  %v388_v57 = vmul.f32 %v704_v52, %v386_v51  ;;  %v553_v58 = vand.u32 2147483647, %v385_v55 }
 0x146   : > { %779 = vpow2.f32 %v527_v56 }
 0x147   : > { %v554_v59 = vand.u32 2147483647, %v388_v57 }
 0x14a   : > { %v778_v60 = vpop.eup %777 }
 0x14b   : > { %v555_v61 = vmul.f32 %v778_v60, %v553_v58 }
 0x14c   : > { %v780_v62 = vpop.eup %779 }
 0x14d   : > { %v556_v63 = vmul.f32 %v780_v62, %v554_v59  ;;  %v557_v28 = vsel %vm316_vm9, %v555_v61, 0.0 }
 0x14f   : > { %v558_v19 = vsel %vm316_vm9, %v556_v63, 0.0 }
 0x150   : > { %v559_v0 = vadd.f32 %v558_v19, %v557_v28 }
 0x16d   : > { %560 = vadd.xlane.f32.xlu2 %v559_v0 }
 0x19e   : > { %v538_v39 = vpop.permute.xlu2 %537 }
 0x19f   : > { %v542_v20 = vsel %vm316_vm9, %v538_v39, 0.0 }
 0x1ab   : > { %v321_v4 = vpop.xlane.xlu0 %320 }
 0x1ac   : > { %v322_v5 = vrot.slane %v321_v4, 4 }
 0x1ae   : > { %v323_v6 = vadd.f32 %v322_v5, %v321_v4 }
 0x1b0   : > { %v324_v7 = vrot.slane %v323_v6, 2 }
 0x1b2   : > { %v325_v34 = vadd.f32 %v324_v7, %v323_v6 }
 0x1b4   : > { %v326_v8 = vrot.slane %v325_v34, 1 }
 0x1b6   : > { %v327_v9 = vadd.f32 %v326_v8, %v325_v34 }
 0x1b7   : > { %v536_v1 = vpop.permute.xlu1 %535 }
 0x1b8   : > { %v541_v2 = vsel %vm316_vm9, %v536_v1, 0.0  ;;  %709 = vpush %v327_v9 }
 0x1b9   : > { %v543_v3 = vadd.f32 %v542_v20, %v541_v2 }
 0x1bb   : > { %544 = vadd.xlane.f32.xlu1 %v543_v3 }
 0x1e0   : > { %v561_v10 = vpop.xlane.xlu2 %560 }
 0x1e1   : > { %v562_v11 = vrot.slane %v561_v10, 4 }
 0x1e3   : > { %v563_v12 = vadd.f32 %v562_v11, %v561_v10 }
 0x1e5   : > { %v564_v21 = vrot.slane %v563_v12, 2 }
 0x1e7   : > { %v565_v23 = vadd.f32 %v564_v21, %v563_v12 }
 0x1e9   : > { %v566_v16 = vrot.slane %v565_v23, 1  ;;  %s710_s30 = spop %709 }
 0x1ea   : > { %v570_v29 = vstv %s710_s30 }
 0x1eb   : > { %v567_v27 = vadd.f32 %v566_v16, %v565_v23  ;;  %v571_v18 = vsel %vm569_vm11, %v570_v29, 0.0 }
 0x22e   : > { %v545_v22 = vpop.xlane.xlu1 %544 }
 0x22f   : > { %v546_v14 = vrot.slane %v545_v22, 4 }
 0x231   : > { %v547_v13 = vadd.f32 %v546_v14, %v545_v22 }
 0x233   : > { %v548_v24 = vrot.slane %v547_v13, 2 }
 0x235   : > { %v549_v25 = vadd.f32 %v548_v24, %v547_v13 }
 0x237   : > { %v550_v26 = vrot.slane %v549_v25, 1 }
 0x239   : > { %v551_v17 = vadd.f32 %v550_v26, %v549_v25 }
 0x23b   : > { %711 = vpush %v551_v17 }
 0x23c   : > { %713 = vpush %v567_v27 }
 0x26c   : > { %s712_s5 = spop %711 }
 0x26d   : > { %v573_v15 = vstv %s712_s5  ;;  %s714_s6 = spop %713 }
 0x26e   : > { %v574_v30 = vsel %vm572_vm12, %v573_v15, 0.0  ;;  %v577_v31 = vstv %s714_s6 }
 0x26f   : > { %v575_v32 = vadd.f32 %v574_v30, %v571_v18  ;;  %v578_v33 = vsel %vm576_vm13, %v577_v31, 0.0 }
 0x271   : > { %v579_v35 = vadd.f32 %v578_v33, %v575_v32 }
 0x273   : > { %580 = vst [vmem:[%s273_s24] sm:$0x1] %v579_v35 }
 0x274 PF: > { %s15_s19 = sadd.s32 1, %s838_s19   ;;  %s1121_s15 = smov %s830_s17 }
 0x275   : > { %p12_p13 = scmp.ge.s32.totalorder %s15_s19, 6   ;;  %s1122_s16 = smov %s834_s18 }
 0x276   : > { %s1123_s17 = smov %s1126_s21  ;;  %s1124_s18 = smov %s1130_s22 }
 0x277   :  { %14 = sbr.rel (!%p12_p13) target bundleno = 3 (0x3), region = 89 }
 0x27c   :  { %598 = vsyncpa [#allocation4], 1 }
 0x27d   :  { %600 = vsyncpa [#allocation4 + $0x1], 1 }

// kernel: unsup_loss.2
= control target key start
LH: loop header
LB: loop body
LE: loop exit
PB: predicated region body
PF: predicated region fallthrough
CT: control target
= control target key end

     0   :  { %s1881_s12 = smov 0   ;;  %s1883_s13 = smov 0   ;;  %s3224_s0 = inlined_call_operand.vmem [shape: f32[2,3,16,16], index: 0, kind: input, shape index: {}]   ;;  %s3225_s1 = inlined_call_operand.vmem [shape: f32[2,2,3,16,16], index: 1, kind: input, shape index: {}]   ;;  %s3226_s2 = inlined_call_operand.vmem [shape: f32[2,2,16,16], index: 2, kind: input, shape index: {}]   ;;  %s3227_s3 = inlined_call_operand.vmem [shape: f32[2,2,1,128], index: 3, kind: output, shape index: {}]  }
   0x1   :  { %s1885_s14 = smov 0   ;;  %s1887_s15 = smov 0  }
   0x2   :  { %s1889_s16 = smov 0  }
   0x3 LB: > { %s22_s17 = sadd.s32 1, %s1843_s14  ;;  %s25_s18 = sadd.s32 1, %s1847_s15  ;;  %s1851_s16 = sphi %s1889_s16, %s13_s16   ;;  %s1847_s15 = sphi %s1887_s15, %s3298_s15   ;;  %s1843_s14 = sphi %s1885_s14, %s3297_s14   ;;  %s1839_s13 = sphi %s1883_s13, %s3296_s13   ;;  %s1835_s12 = sphi %s1881_s12, %s3295_s12  }
   0x4   : > { %p23_p0 = scmp.ge.s32.totalorder %s22_s17, 2  ;;  %p1710_p1 = scmp.ge.s32.totalorder %s1851_s16, 1 }
   0x5   : > { %p183_p2 = scmp.lt.s32.totalorder %s1851_s16, 5 }
   0x6   : > { %s3300_s17 = smov (%p23_p0, %s22_s17), 0  ;;  %s3302_s18 = smov (!%p23_p0, %s25_s18), %s1847_s15 }
   0x7   : > { %p184_p3 = pnand %p1710_p1, %p183_p2  ;;  %p27_p4 = scmp.ge.s32.totalorder %s3302_s18, 2 }
   0x9   : > { %s3304_s18 = smov (%p27_p4, %s3302_s18), 0  ;;  %187 = sbr.rel (%p184_p3) target bundleno = 1336 (0x538), region = 32 }
   0xe   : > { %p227_p5 = scmp.lt.s32.totalorder %s1839_s13, 1  ;;  %p232_p6 = scmp.lt.s32.totalorder %s1835_s12, 1  ;;  %v271_v0 = vlaneseq  ;;  %v1853_v3 = vmov 0.0   ;;  %vm354_vm3 = vcmask 1047680   ;;  %vm333_vm12 = vcmask 130048  }
   0xf   : > { %s1854_s11 = smov 16   ;;  %p1737_p7 = scmp.ge.s32.totalorder %s1835_s12, 2 }
  0x10   : > { %s3306_s13 = smov (!%p227_p5, %s1839_s13), 1  ;;  %v1917_v1 = vshrl.u32 %v271_v0, 7  ;;  %v2047_v46 = vand.u32 127, %v271_v0 }
  0x11   : > { %s1920_s19 = scalar_select %p232_p6, %s1835_s12, 1 }
  0x12   : > { %s1742_s20 = smul.u32 48, %s3306_s13  ;;  %s1713_s21 = sshll.u32 %s3306_s13, 1  ;;  %v1925_v2 = vadd.s32 8, %v1917_v1  ;;  %vm517_vm1 = vcmp.lt.s32.totalorder %v1917_v1, 7  ;;  %3237 = vst [vmem:[#allocation4_spill] sm:$0xff] %v2047_v46  ;;  %vm276_vm2 = vcmp.lt.s32.totalorder %v2047_v46, 15 }
  0x13   : > { %s1743_s22 = smul.u32 6, %s3306_s13  ;;  %s1714_s23 = sshll.u32 %s1920_s19, 2  ;;  %v1717_v47 = vsel %vm276_vm2, 1.0, %v1853_v3 }
  0x14   : > { %3235 = vst [vmem:[#allocation2_spill] sm:$0xff] %v1925_v2  ;;  %s231_s26 = scalar_lea.vmem %s3224_s0, %s1742_s20  ;;  %s1744_s27 = smul.u32 12, %s1920_s19  ;;  %vm280_vm0 = vcmp.lt.s32.totalorder %v1925_v2, 15 }
  0x15   : > { %s247_s28 = sadd.s32 %s1714_s23, %s1713_s21  ;;  %v1718_v4 = vsel %vm280_vm0, 1.0, %v1853_v3  ;;  %v1936_v5 = vld [vmem:[%s231_s26] sm:$0xff]  ;;  %v1938_v6 = vld [vmem:[%s231_s26 + $0x8] sm:$0xff]  ;;  %v1943_v7 = vld [vmem:[%s231_s26 + $0x10] sm:$0xff]  ;;  %s1855_s20 = smov 1  }
  0x16   : > { %s238_s29 = sadd.s32 %s1744_s27, %s1743_s22  ;;  %s1715_s30 = sshll.u32 %s247_s28, 3  ;;  %v1945_v8 = vld [vmem:[%s231_s26 + $0x18] sm:$0xff]  ;;  %v1947_v9 = vld [vmem:[%s231_s26 + $0x20] sm:$0xff]  ;;  %v1956_v12 = vld [vmem:[%s231_s26 + $0x28] sm:$0xff] }
  0x17   : > { %s1712_s4 = sshll.u32 %s238_s29, 3  ;;  %s249_s7 = scalar_lea.vmem %s3226_s2, %s1715_s30 }
  0x18   : > { %s240_s10 = scalar_lea.vmem %s3225_s1, %s1712_s4  ;;  %v1952_v10 = vld [vmem:[%s249_s7] sm:$0xff]  ;;  %v1954_v11 = vld [vmem:[%s249_s7 + $0x8] sm:$0xff]  ;;  %s1856_s22 = smov 127  }
  0x19   : > { %3236 = vst [vmem:[#allocation3_spill] sm:$0xff] %v1952_v10  ;;  %v1958_v13 = vld [vmem:[%s240_s10] sm:$0xff]  ;;  %v1960_v14 = vld [vmem:[%s240_s10 + $0x8] sm:$0xff]  ;;  %v1962_v15 = vld [vmem:[%s240_s10 + $0x10] sm:$0xff]  ;;  %s255_s25 = sadd.s32 %s1713_s21, %s1920_s19 }
  0x1a   : > { %v285_v16 = vsub.f32 %v1958_v13, %v1936_v5  ;;  %v286_v17 = vsub.f32 %v1960_v14, %v1938_v6  ;;  %v287_v18 = vsub.f32 %v1962_v15, %v1943_v7  ;;  %v1970_v19 = vld [vmem:[%s240_s10 + $0x18] sm:$0xff]  ;;  %v1972_v20 = vld [vmem:[%s240_s10 + $0x20] sm:$0xff]  ;;  %v1974_v21 = vld [vmem:[%s240_s10 + $0x28] sm:$0xff]  ;;  %s2250_s29 = scalar_lea.vmem %s3227_s3, %s255_s25 }
  0x1b   : > { %v288_v22 = vsub.f32 %v1970_v19, %v1945_v8  ;;  %v289_v23 = vsub.f32 %v1972_v20, %v1947_v9  ;;  %v290_v24 = vsub.f32 %v1974_v21, %v1956_v12 }
  0x1c   : > { %v1983_v25 = vmul.f32 %v285_v16, %v1952_v10  ;;  %v1986_v26 = vmul.f32 %v286_v17, %v1954_v11  ;;  %v1989_v27 = vmul.f32 %v287_v18, %v1952_v10 }
  0x1d   : > { %v1992_v28 = vmul.f32 %v288_v22, %v1954_v11  ;;  %v1995_v29 = vmul.f32 %v289_v23, %v1952_v10  ;;  %v1998_v30 = vmul.f32 %v290_v24, %v1954_v11 }
  0x1e   : > { %355 = vrot.lane.b32.xlu0 %v1983_v25, %s1854_s11  ;;  %361 = vrot.lane.b32.xlu1 %v1989_v27, %s1854_s11  ;;  %v512_v31 = vrot.slane %v1989_v27, 1  ;;  %v514_v32 = vrot.slane %v1986_v26, 1  ;;  %v511_v33 = vrot.slane %v1983_v25, 1 }
  0x1f   : > { %367 = vrot.lane.b32.xlu2 %v1995_v29, %s1854_s11  ;;  %v513_v34 = vrot.slane %v1995_v29, 1  ;;  %v515_v35 = vrot.slane %v1992_v28, 1  ;;  %v516_v36 = vrot.slane %v1998_v30, 1 }
  0x20   : > { %v521_v37 = vsel %vm517_vm1, %v514_v32, %v511_v33 }
  0x21   : > { %v522_v38 = vsel %vm517_vm1, %v515_v35, %v512_v31  ;;  %v523_v39 = vsel %vm517_vm1, %v516_v36, %v513_v34  ;;  %v525_v42 = vsub.f32 %v521_v37, %v1986_v26 }
  0x22   : > { %v527_v40 = vsub.f32 %v522_v38, %v1992_v28  ;;  %v529_v41 = vsub.f32 %v523_v39, %v1998_v30 }
  0x23   : > { %v2038_v45 = vmul.f32 %v1718_v4, %v525_v42 }
  0x24   : > { %v2034_v43 = vmul.f32 %v1718_v4, %v527_v40  ;;  %v2036_v44 = vmul.f32 %v1718_v4, %v529_v41 }
  0x26   : > { %358 = vrot.lane.b32.xlu0 %v1986_v26, %s1854_s11  ;;  %364 = vrot.lane.b32.xlu1 %v1992_v28, %s1854_s11 }
  0x27   : > { %370 = vrot.lane.b32.xlu2 %v1998_v30, %s1854_s11 }
  0x2e   : > { %399 = vrot.lane.b32.xlu0 %v1986_v26, %s1855_s20 }
  0x2f   : > { %397 = vrot.lane.b32.xlu2 %v1983_v25, %s1855_s20 }
  0x36   : > { %422 = vrot.lane.b32.xlu0 %v1717_v47, %s1855_s20 }
  0x37   : > { %401 = vrot.lane.b32.xlu2 %v1989_v27, %s1855_s20 }
  0x3f   : > { %403 = vrot.lane.b32.xlu2 %v1992_v28, %s1855_s20 }
  0x79   : > { %v368_v48 = vpop.permute.xlu2 %367 }
  0x7a   : > { %v369_v53 = vsel %vm354_vm3, %v368_v48, %v1995_v29 }
  0x81   : > { %v371_v51 = vpop.permute.xlu2 %370 }
  0x82   : > { %v372_v52 = vsel %vm354_vm3, %v371_v51, %v1998_v30 }
  0x83   : > { %383 = vrot.lane.b32.xlu2 %v372_v52, %s1854_s11 }
  0x89   : > { %v398_v61 = vpop.permute.xlu2 %397 }
  0x90   : > { %v356_v49 = vpop.permute.xlu0 %355  ;;  %v362_v56 = vpop.permute.xlu1 %361 }
  0x91   : > { %v357_v50 = vsel %vm354_vm3, %v356_v49, %v1983_v25  ;;  %v363_v57 = vsel %vm354_vm3, %v362_v56, %v1989_v27  ;;  %v402_v63 = vpop.permute.xlu2 %401 }
  0x92   : > { %373 = vrot.lane.b32.xlu0 %v357_v50, %s1854_s11 }
  0x98   : > { %v359_v54 = vpop.permute.xlu0 %358  ;;  %v365_v58 = vpop.permute.xlu1 %364 }
  0x99   : > { %v360_v55 = vsel %vm354_vm3, %v359_v54, %v1986_v26  ;;  %v366_v59 = vsel %vm354_vm3, %v365_v58, %v1992_v28  ;;  %v404_v16 = vpop.permute.xlu2 %403 }
  0x9a   : > { %381 = vrot.lane.b32.xlu0 %v369_v53, %s1854_s11  ;;  %375 = vrot.lane.b32.xlu1 %v360_v55, %s1854_s11 }
  0xa0   : > { %v400_v60 = vpop.permute.xlu0 %399 }
  0xa2   : > { %407 = vrot.lane.b32.xlu0 %v1998_v30, %s1855_s20  ;;  %377 = vrot.lane.b32.xlu1 %v363_v57, %s1854_s11 }
  0xa8   : > { %v2074_v62 = vpop.permute.xlu0 %422 }
  0xaa   : > { %379 = vrot.lane.b32.xlu1 %v366_v59, %s1854_s11 }
  0xb2   : > { %405 = vrot.lane.b32.xlu1 %v1995_v29, %s1855_s20 }
  0xdd   : > { %v384_v47 = vpop.permute.xlu2 %383 }
  0xde   : > { %v390_v50 = vsel %vm354_vm3, %v384_v47, %v1998_v30 }
 0x104   : > { %v374_v0 = vpop.permute.xlu0 %373 }
 0x105   : > { %v385_v3 = vsel %vm354_vm3, %v374_v0, %v1983_v25 }
 0x106   : > { %v415_v4 = vsub.f32 %v385_v3, %v398_v61 }
 0x108   : > { %v425_v17 = vmul.f32 %v2074_v62, %v415_v4 }
 0x10a   : > { %v431_v18 = vand.u32 2147483647, %v425_v17  ;;  %v443_v22 = vmul.f32 0.5, %v425_v17 }
 0x10c   : > { %v376_v23 = vpop.permute.xlu1 %375  ;;  %v382_v24 = vpop.permute.xlu0 %381  ;;  %vm437_vm4 = vcmp.lt.f32.partialorder %v431_v18, 1.0  ;;  %v449_v37 = vmul.f32 %v443_v22, %v425_v17  ;;  %v1725_v38 = vadd.f32 -0.5, %v431_v18 }
 0x10d   : > { %v386_v39 = vsel %vm354_vm3, %v376_v23, %v1986_v26 }
 0x10e   : > { %v416_v40 = vsub.f32 %v386_v39, %v400_v60  ;;  %v461_v41 = vsel %vm437_vm4, %v449_v37, %v1725_v38 }
 0x10f   : > { %473 = vrot.lane.b32.xlu1 %v461_v41, %s1856_s22 }
 0x110   : > { %v426_v42 = vmul.f32 %v2074_v62, %v416_v40 }
 0x112   : > { %v432_v48 = vand.u32 2147483647, %v426_v42  ;;  %v444_v49 = vmul.f32 0.5, %v426_v42 }
 0x114   : > { %v378_v51 = vpop.permute.xlu1 %377  ;;  %v408_v52 = vpop.permute.xlu0 %407  ;;  %vm438_vm5 = vcmp.lt.f32.partialorder %v432_v48, 1.0  ;;  %v450_v53 = vmul.f32 %v444_v49, %v426_v42  ;;  %v1726_v54 = vadd.f32 -0.5, %v432_v48  ;;  %v389_v48 = vsel %vm354_vm3, %v382_v24, %v1995_v29 }
 0x115   : > { %v387_v55 = vsel %vm354_vm3, %v378_v51, %v1989_v27  ;;  %v420_v57 = vsub.f32 %v390_v50, %v408_v52  ;;  %v518_v24 = vsel %vm517_vm1, %v511_v33, %v514_v32  ;;  %v309_v32 = vmul.f32 0.5, %v1983_v25 }
 0x116   : > { %v417_v56 = vsub.f32 %v387_v55, %v402_v63  ;;  %v462_v58 = vsel %vm438_vm5, %v450_v53, %v1726_v54  ;;  %v310_v33 = vmul.f32 0.5, %v1986_v26 }
 0x117   : > { %475 = vrot.lane.b32.xlu2 %v462_v58, %s1856_s22  ;;  %v430_v60 = vmul.f32 %v2074_v62, %v420_v57 }
 0x118   : > { %v427_v59 = vmul.f32 %v2074_v62, %v417_v56 }
 0x119   : > { %v448_v22 = vmul.f32 0.5, %v430_v60  ;;  %v436_v37 = vand.u32 2147483647, %v430_v60 }
 0x11a   : > { %v433_v61 = vand.u32 2147483647, %v427_v59  ;;  %v445_v0 = vmul.f32 0.5, %v427_v59 }
 0x11b   : > { %v454_v41 = vmul.f32 %v448_v22, %v430_v60  ;;  %v1730_v42 = vadd.f32 -0.5, %v436_v37  ;;  %vm442_vm7 = vcmp.lt.f32.partialorder %v436_v37, 1.0  ;;  %v519_v60 = vsel %vm517_vm1, %v512_v31, %v515_v35 }
 0x11c   : > { %v380_v3 = vpop.permute.xlu1 %379  ;;  %vm439_vm6 = vcmp.lt.f32.partialorder %v433_v61, 1.0  ;;  %v451_v4 = vmul.f32 %v445_v0, %v427_v59  ;;  %v1727_v17 = vadd.f32 -0.5, %v433_v61  ;;  %v549_v59 = vmul.f32 0.5, %v2038_v45 }
 0x11d   : > { %v388_v18 = vsel %vm354_vm3, %v380_v3, %v1992_v28  ;;  %v466_v52 = vsel %vm442_vm7, %v454_v41, %v1730_v42  ;;  %v2115_v61 = vsub.f32 %v518_v24, %v1983_v25  ;;  %v297_v0 = vand.u32 2147483647, %v1983_v25 }
 0x11e   : > { %v418_v23 = vsub.f32 %v388_v18, %v404_v16  ;;  %v463_v63 = vsel %vm439_vm6, %v451_v4, %v1727_v17  ;;  %v298_v3 = vand.u32 2147483647, %v1986_v26  ;;  %v539_v4 = vand.u32 2147483647, %v2034_v43 }
 0x11f   : > { %477 = vrot.lane.b32.xlu0 %v463_v63, %s1856_s22  ;;  %v537_v18 = vand.u32 2147483647, %v2038_v45  ;;  %v2127_v31 = vmul.f32 %v549_v59, %v2038_v45  ;;  %v299_v35 = vand.u32 2147483647, %v1989_v27  ;;  %v311_v22 = vmul.f32 0.5, %v1989_v27 }
 0x120   : > { %v428_v38 = vmul.f32 %v2074_v62, %v418_v23  ;;  %v315_v23 = vmul.f32 %v309_v32, %v1983_v25  ;;  %v316_v63 = vmul.f32 %v310_v33, %v1986_v26  ;;  %vm2133_vm10 = vcmp.lt.f32.partialorder %v297_v0, 1.0 }
 0x121   : > { %vm2137_vm11 = vcmp.lt.f32.partialorder %v298_v3, 1.0  ;;  %v300_v45 = vand.u32 2147483647, %v1992_v28  ;;  %v312_v41 = vmul.f32 0.5, %v1992_v28  ;;  %v317_v42 = vmul.f32 %v311_v22, %v1989_v27 }
 0x122   : > { %v434_v39 = vand.u32 2147483647, %v428_v38  ;;  %v446_v40 = vmul.f32 0.5, %v428_v38  ;;  %vm2144_vm13 = vcmp.lt.f32.partialorder %v299_v35, 1.0  ;;  %vm2168_vm15 = vcmp.lt.f32.partialorder %v537_v18, 1.0 }
 0x123   : > { %vm2155_vm14 = vcmp.lt.f32.partialorder %v300_v45, 1.0  ;;  %vm2195_vm4 = vcmp.lt.f32.partialorder %v539_v4, 1.0 }
 0x124   : > { %v406_v47 = vpop.permute.xlu1 %405  ;;  %vm440_vm8 = vcmp.lt.f32.partialorder %v434_v39, 1.0  ;;  %v452_v49 = vmul.f32 %v446_v40, %v428_v38  ;;  %v1728_v50 = vadd.f32 -0.5, %v434_v39  ;;  %v1719_v39 = vadd.f32 -0.5, %v297_v0 }
 0x125   : > { %v419_v51 = vsub.f32 %v389_v48, %v406_v47  ;;  %v1720_v40 = vadd.f32 -0.5, %v298_v3  ;;  %v1721_v47 = vadd.f32 -0.5, %v299_v35  ;;  %v1732_v35 = vadd.f32 -0.5, %v537_v18 }
 0x126   : > { %v464_v16 = vsel %vm440_vm8, %v452_v49, %v1728_v50  ;;  %v327_v26 = vsel %vm2133_vm10, %v315_v23, %v1719_v39  ;;  %v301_v49 = vand.u32 2147483647, %v1995_v29  ;;  %v313_v50 = vmul.f32 0.5, %v1995_v29 }
 0x127   : > { %v429_v53 = vmul.f32 %v2074_v62, %v419_v51  ;;  %479 = vrot.lane.b32.xlu1 %v464_v16, %s1856_s22  ;;  %483 = vrot.lane.b32.xlu0 %v466_v52, %s1856_s22  ;;  %v551_v62 = vmul.f32 0.5, %v2034_v43  ;;  %v328_v48 = vsel %vm2137_vm11, %v316_v63, %v1720_v40  ;;  %v318_v51 = vmul.f32 %v312_v41, %v1992_v28 }
 0x128   : > { %v1722_v16 = vadd.f32 -0.5, %v300_v45  ;;  %v302_v28 = vand.u32 2147483647, %v1998_v30  ;;  %v1723_v24 = vadd.f32 -0.5, %v301_v49  ;;  %vm2175_vm0 = vcmp.lt.f32.partialorder %v301_v49, 1.0 }
 0x129   : > { %v447_v54 = vmul.f32 0.5, %v429_v53  ;;  %v435_v55 = vand.u32 2147483647, %v429_v53  ;;  %v2123_v17 = vmul.f32 %v551_v62, %v2034_v43  ;;  %v526_v23 = vsub.f32 %v519_v60, %v1989_v27 }
 0x12a   : > { %v330_v59 = vsel %vm2155_vm14, %v318_v51, %v1722_v16  ;;  %v1724_v3 = vadd.f32 -0.5, %v302_v28  ;;  %vm308_vm2 = vcmp.lt.f32.partialorder %v302_v28, 1.0  ;;  %v536_v39 = vand.u32 2147483647, %v2115_v61 }
 0x12b   : > { %vm441_vm9 = vcmp.lt.f32.partialorder %v435_v55, 1.0  ;;  %v453_v56 = vmul.f32 %v447_v54, %v429_v53  ;;  %v1729_v57 = vadd.f32 -0.5, %v435_v55  ;;  %v329_v53 = vsel %vm2144_vm13, %v317_v42, %v1721_v47 }
 0x12c   : > { %v334_v54 = vsel %vm333_vm12, %v327_v26, 0.0  ;;  %v520_v55 = vsel %vm517_vm1, %v513_v34, %v516_v36  ;;  %v335_v34 = vsel %vm333_vm12, %v328_v48, 0.0  ;;  %v337_v36 = vsel %vm333_vm12, %v329_v53, 0.0 }
 0x12d   : > { %v465_v58 = vsel %vm441_vm9, %v453_v56, %v1729_v57  ;;  %v314_v57 = vmul.f32 0.5, %v1998_v30  ;;  %v336_v33 = vadd.f32 %v335_v34, %v334_v54  ;;  %v339_v22 = vsel %vm333_vm12, %v330_v59, 0.0 }
 0x12e   : > { %481 = vrot.lane.b32.xlu2 %v465_v58, %s1856_s22  ;;  %v319_v58 = vmul.f32 %v313_v50, %v1995_v29  ;;  %v528_v38 = vsub.f32 %v520_v55, %v1995_v29  ;;  %v538_v45 = vand.u32 2147483647, %v526_v23  ;;  %v541_v41 = vand.u32 2147483647, %v2036_v44 }
 0x12f   : > { %v320_v0 = vmul.f32 %v314_v57, %v1998_v30  ;;  %v338_v37 = vadd.f32 %v337_v36, %v336_v33  ;;  %v548_v27 = vmul.f32 0.5, %v2115_v61  ;;  %vm2200_vm5 = vcmp.lt.f32.partialorder %v536_v39, 1.0 }
 0x130   : > { %v331_v32 = vsel %vm2175_vm0, %v319_v58, %v1723_v24  ;;  %v540_v18 = vand.u32 2147483647, %v528_v38  ;;  %vm2204_vm6 = vcmp.lt.f32.partialorder %v538_v45, 1.0  ;;  %v550_v25 = vmul.f32 0.5, %v526_v23 }
 0x131   : > { %v332_v63 = vsel %vm308_vm2, %v320_v0, %v1724_v3  ;;  %v341_v40 = vsel %vm333_vm12, %v331_v32, 0.0  ;;  %v340_v42 = vadd.f32 %v339_v22, %v338_v37  ;;  %v552_v26 = vmul.f32 0.5, %v528_v38 }
 0x132   : > { %v343_v30 = vsel %vm333_vm12, %v332_v63, 0.0  ;;  %vm2208_vm7 = vcmp.lt.f32.partialorder %v540_v18, 1.0  ;;  %v553_v50 = vmul.f32 0.5, %v2036_v44  ;;  %v554_v51 = vmul.f32 %v548_v27, %v2115_v61 }
 0x133   : > { %v342_v48 = vadd.f32 %v341_v40, %v340_v42  ;;  %v556_v16 = vmul.f32 %v550_v25, %v526_v23  ;;  %v558_v52 = vmul.f32 %v552_v26, %v528_v38  ;;  %v1731_v53 = vadd.f32 -0.5, %v536_v39 }
 0x134   : > { %v1733_v54 = vadd.f32 -0.5, %v538_v45  ;;  %v559_v28 = vmul.f32 %v553_v50, %v2036_v44  ;;  %v1734_v57 = vadd.f32 -0.5, %v539_v4  ;;  %v1735_v58 = vadd.f32 -0.5, %v540_v18 }
 0x135   : > { %v344_v55 = vadd.f32 %v343_v30, %v342_v48  ;;  %v1736_v24 = vadd.f32 -0.5, %v541_v41  ;;  %v566_v62 = vsel %vm2200_vm5, %v554_v51, %v1731_v53  ;;  %v567_v59 = vsel %vm2168_vm15, %v2127_v31, %v1732_v35 }
 0x136   : > { %v568_v61 = vsel %vm2204_vm6, %v556_v16, %v1733_v54  ;;  %vm547_vm8 = vcmp.lt.f32.partialorder %v541_v41, 1.0  ;;  %v569_v44 = vsel %vm2195_vm4, %v2123_v17, %v1734_v57  ;;  %v572_v43 = vsel %vm333_vm12, %v566_v62, 0.0 }
 0x137   : > { %v573_v4 = vsel %vm333_vm12, %v567_v59, 0.0  ;;  %v570_v34 = vsel %vm2208_vm7, %v558_v52, %v1735_v58  ;;  %v575_v56 = vsel %vm333_vm12, %v568_v61, 0.0  ;;  %v577_v31 = vsel %vm333_vm12, %v569_v44, 0.0 }
 0x138   : > { %v574_v36 = vadd.f32 %v573_v4, %v572_v43  ;;  %v571_v0 = vsel %vm547_vm8, %v559_v28, %v1736_v24  ;;  %v579_v32 = vsel %vm333_vm12, %v570_v34, 0.0  ;;  %vm592_vm9 = vcmp.eq.s32.totalorder %v2047_v46, 0 }
 0x139   : > { %v581_v35 = vsel %vm333_vm12, %v571_v0, 0.0  ;;  %vm595_vm10 = vcmp.eq.s32.totalorder %v2047_v46, 1  ;;  %vm599_vm11 = vcmp.eq.s32.totalorder %v2047_v46, 2 }
 0x13a   : > { %v576_v3 = vadd.f32 %v575_v56, %v574_v36 }
 0x13c   : > { %v578_v33 = vadd.f32 %v577_v31, %v576_v3 }
 0x13e   : > { %v580_v17 = vadd.f32 %v579_v32, %v578_v33 }
 0x140   : > { %v582_v22 = vadd.f32 %v581_v35, %v580_v17 }
 0x151   : > { %345 = vadd.xlane.f32.xlu1 %v344_v55  ;;  %583 = vadd.xlane.f32.xlu0 %v582_v22 }
 0x171   : > { %v476_v23 = vpop.permute.xlu2 %475 }
 0x172   : > { %v492_v39 = vsel %vm333_vm12, %v476_v23, 0.0 }
 0x181   : > { %v474_v63 = vpop.permute.xlu1 %473 }
 0x182   : > { %v491_v38 = vsel %vm333_vm12, %v474_v63, 0.0 }
 0x183   : > { %v493_v30 = vadd.f32 %v492_v39, %v491_v38 }
 0x188   : > { %v482_v45 = vpop.permute.xlu2 %481 }
 0x189   : > { %v498_v29 = vsel %vm333_vm12, %v482_v45, 0.0 }
 0x191   : > { %v478_v37 = vpop.permute.xlu0 %477 }
 0x192   : > { %v494_v40 = vsel %vm333_vm12, %v478_v37, 0.0 }
 0x193   : > { %v495_v41 = vadd.f32 %v494_v40, %v493_v30 }
 0x199   : > { %v480_v42 = vpop.permute.xlu1 %479  ;;  %v484_v27 = vpop.permute.xlu0 %483 }
 0x19a   : > { %v496_v18 = vsel %vm333_vm12, %v480_v42, 0.0  ;;  %v500_v25 = vsel %vm333_vm12, %v484_v27, 0.0 }
 0x19b   : > { %v497_v47 = vadd.f32 %v496_v18, %v495_v41 }
 0x19d   : > { %v499_v60 = vadd.f32 %v498_v29, %v497_v47 }
 0x19f   : > { %v501_v26 = vadd.f32 %v500_v25, %v499_v60 }
 0x1a1   : > { %502 = vadd.xlane.f32.xlu2 %v501_v26 }
 0x1c4   : > { %v346_v48 = vpop.xlane.xlu1 %345  ;;  %v584_v54 = vpop.xlane.xlu0 %583 }
 0x1c5   : > { %v347_v49 = vrot.slane %v346_v48, 4  ;;  %v585_v55 = vrot.slane %v584_v54, 4 }
 0x1c7   : > { %v348_v50 = vadd.f32 %v347_v49, %v346_v48  ;;  %v586_v28 = vadd.f32 %v585_v55, %v584_v54 }
 0x1c9   : > { %v349_v51 = vrot.slane %v348_v50, 2  ;;  %v587_v57 = vrot.slane %v586_v28, 2 }
 0x1cb   : > { %v350_v16 = vadd.f32 %v349_v51, %v348_v50  ;;  %v588_v59 = vadd.f32 %v587_v57, %v586_v28 }
 0x1cd   : > { %v351_v52 = vrot.slane %v350_v16, 1  ;;  %v589_v43 = vrot.slane %v588_v59, 1 }
 0x1cf   : > { %v352_v53 = vadd.f32 %v351_v52, %v350_v16  ;;  %v590_v36 = vadd.f32 %v589_v43, %v588_v59 }
 0x1d1   : > { %1745 = vpush %v352_v53 }
 0x202   : > { %s1746_s23 = spop %1745 }
 0x203   : > { %v593_v56 = vstv %s1746_s23 }
 0x204   : > { %v594_v0 = vsel %vm592_vm9, %v593_v56, 0.0 }
 0x214   : > { %v503_v58 = vpop.xlane.xlu2 %502 }
 0x215   : > { %v504_v24 = vrot.slane %v503_v58, 4 }
 0x217   : > { %v505_v62 = vadd.f32 %v504_v24, %v503_v58 }
 0x219   : > { %v506_v61 = vrot.slane %v505_v62, 2 }
 0x21b   : > { %v507_v44 = vadd.f32 %v506_v61, %v505_v62 }
 0x21d   : > { %v508_v4 = vrot.slane %v507_v44, 1 }
 0x21f   : > { %v509_v34 = vadd.f32 %v508_v4, %v507_v44 }
 0x221   : > { %1747 = vpush %v509_v34 }
 0x222   : > { %1749 = vpush %v590_v36 }
 0x252   : > { %s1748_s24 = spop %1747 }
 0x253   : > { %v596_v31 = vstv %s1748_s24  ;;  %s1750_s26 = spop %1749 }
 0x254   : > { %v597_v3 = vsel %vm595_vm10, %v596_v31, 0.0  ;;  %v600_v32 = vstv %s1750_s26 }
 0x255   : > { %v598_v33 = vadd.f32 %v597_v3, %v594_v0  ;;  %v601_v35 = vsel %vm599_vm11, %v600_v32, 0.0  ;;  %607 = sbr.rel (%p1737_p7) target bundleno = 1336 (0x538), region = 36 }
 0x257   : > { %v602_v17 = vadd.f32 %v601_v35, %v598_v33 }
 0x259   : > { %603 = vst [vmem:[%s2250_s29] sm:$0x1] %v602_v17 }
 0x25a   : > { %s1857_s13 = smov 16   ;;  %v2280_v22 = vmul.f32 %v1938_v6, %v1938_v6  ;;  %v2284_v23 = vmul.f32 %v1958_v13, %v1958_v13  ;;  %v2288_v63 = vmul.f32 %v1936_v5, %v1936_v5  ;;  %v2298_v37 = vmul.f32 %v1943_v7, %v1943_v7  ;;  %s1858_s12 = smov 127  }
 0x25b   : > { %614 = vrot.lane.b32.xlu1 %v1943_v7, %s1857_s13  ;;  %608 = vrot.lane.b32.xlu0 %v1936_v5, %s1857_s13  ;;  %v2302_v38 = vmul.f32 %v1945_v8, %v1945_v8  ;;  %v2306_v39 = vmul.f32 %v1960_v14, %v1960_v14  ;;  %v2316_v40 = vmul.f32 %v1970_v19, %v1970_v19  ;;  %s1859_s19 = smov 126   ;;  %vm722_vm13 = vcmp.lt.s32.totalorder %v1917_v1, 6 }
 0x25c   : > { %620 = vrot.lane.b32.xlu2 %v1947_v9, %s1857_s13  ;;  %v2320_v30 = vmul.f32 %v1947_v9, %v1947_v9  ;;  %v2324_v45 = vmul.f32 %v1962_v15, %v1962_v15  ;;  %v2334_v41 = vmul.f32 %v1972_v20, %v1972_v20  ;;  %v2338_v42 = vmul.f32 %v1974_v21, %v1974_v21 }
 0x25d   : > { %v2342_v18 = vmul.f32 %v1956_v12, %v1956_v12  ;;  %v2352_v47 = vmul.f32 %v1960_v14, %v1938_v6  ;;  %v2356_v27 = vmul.f32 %v1962_v15, %v1943_v7  ;;  %v2360_v29 = vmul.f32 %v1958_v13, %v1936_v5 }
 0x25e   : > { %v2370_v60 = vmul.f32 %v1972_v20, %v1947_v9  ;;  %v2374_v25 = vmul.f32 %v1974_v21, %v1956_v12  ;;  %v2378_v26 = vmul.f32 %v1970_v19, %v1945_v8 }
 0x260   : > { %3258 = vst [vmem:[#allocation5_spill] sm:$0xff] %v2370_v60 }
 0x261   : > { %3259 = vst [vmem:[#allocation6_spill] sm:$0xff] %v2374_v25 }
 0x263   : > { %617 = vrot.lane.b32.xlu1 %v1945_v8, %s1857_s13  ;;  %611 = vrot.lane.b32.xlu0 %v1938_v6, %s1857_s13 }
 0x264   : > { %623 = vrot.lane.b32.xlu2 %v1956_v12, %s1857_s13 }
 0x26b   : > { %741 = vrot.lane.b32.xlu0 %v1958_v13, %s1857_s13  ;;  %744 = vrot.lane.b32.xlu1 %v1960_v14, %s1857_s13 }
 0x26c   : > { %747 = vrot.lane.b32.xlu2 %v1962_v15, %s1857_s13 }
 0x273   : > { %750 = vrot.lane.b32.xlu0 %v1970_v19, %s1857_s13  ;;  %753 = vrot.lane.b32.xlu1 %v1972_v20, %s1857_s13 }
 0x274   : > { %756 = vrot.lane.b32.xlu2 %v1974_v21, %s1857_s13 }
 0x27b   : > { %882 = vrot.lane.b32.xlu0 %v2280_v22, %s1857_s13  ;;  %1029 = vrot.lane.b32.xlu1 %v2284_v23, %s1857_s13 }
 0x27c   : > { %879 = vrot.lane.b32.xlu2 %v2288_v63, %s1857_s13 }
 0x283   : > { %885 = vrot.lane.b32.xlu0 %v2298_v37, %s1857_s13  ;;  %888 = vrot.lane.b32.xlu1 %v2302_v38, %s1857_s13 }
 0x284   : > { %1032 = vrot.lane.b32.xlu2 %v2306_v39, %s1857_s13 }
 0x28b   : > { %1038 = vrot.lane.b32.xlu0 %v2316_v40, %s1857_s13  ;;  %891 = vrot.lane.b32.xlu1 %v2320_v30, %s1857_s13 }
 0x28c   : > { %1035 = vrot.lane.b32.xlu2 %v2324_v45, %s1857_s13 }
 0x293   : > { %1041 = vrot.lane.b32.xlu0 %v2334_v41, %s1857_s13  ;;  %1044 = vrot.lane.b32.xlu1 %v2338_v42, %s1857_s13 }
 0x294   : > { %894 = vrot.lane.b32.xlu2 %v2342_v18, %s1857_s13 }
 0x29b   : > { %1182 = vrot.lane.b32.xlu0 %v2352_v47, %s1857_s13  ;;  %1185 = vrot.lane.b32.xlu1 %v2356_v27, %s1857_s13 }
 0x29c   : > { %1179 = vrot.lane.b32.xlu2 %v2360_v29, %s1857_s13 }
 0x2a3   : > { %1191 = vrot.lane.b32.xlu0 %v2370_v60, %s1857_s13  ;;  %1194 = vrot.lane.b32.xlu1 %v2374_v25, %s1857_s13 }
 0x2a4   : > { %1188 = vrot.lane.b32.xlu2 %v2378_v26, %s1857_s13 }
 0x2ab   : > { %1511 = vrot.lane.b32.xlu0 %v1954_v11, %s1857_s13 }
 0x2ac   : > { %1508 = vrot.lane.b32.xlu2 %v1952_v10, %s1857_s13 }
 0x2b6   : > { %v621_v48 = vpop.permute.xlu2 %620 }
 0x2b7   : > { %v622_v59 = vsel %vm354_vm3, %v621_v48, %v1947_v9 }
 0x2be   : > { %v624_v49 = vpop.permute.xlu2 %623 }
 0x2bf   : > { %v625_v54 = vsel %vm354_vm3, %v624_v49, %v1956_v12 }
 0x2c6   : > { %v748_v53 = vpop.permute.xlu2 %747 }
 0x2c7   : > { %v749_v62 = vsel %vm354_vm3, %v748_v53, %v1962_v15 }
 0x2cd   : > { %v615_v50 = vpop.permute.xlu1 %614  ;;  %v609_v51 = vpop.permute.xlu0 %608 }
 0x2ce   : > { %v616_v16 = vsel %vm354_vm3, %v615_v50, %v1943_v7  ;;  %v610_v52 = vsel %vm354_vm3, %v609_v51, %v1936_v5  ;;  %v757_v24 = vpop.permute.xlu2 %756 }
 0x2cf   : > { %630 = vrot.lane.b32.xlu2 %v616_v16, %s1857_s13  ;;  %626 = vrot.lane.b32.xlu0 %v610_v52, %s1857_s13  ;;  %v758_v34 = vsel %vm354_vm3, %v757_v24, %v1974_v21 }
 0x2d5   : > { %v618_v55 = vpop.permute.xlu1 %617  ;;  %v612_v28 = vpop.permute.xlu0 %611 }
 0x2d6   : > { %v619_v57 = vsel %vm354_vm3, %v618_v55, %v1945_v8  ;;  %v613_v58 = vsel %vm354_vm3, %v612_v28, %v1938_v6  ;;  %v880_v4 = vpop.permute.xlu2 %879 }
 0x2d7   : > { %636 = vrot.lane.b32.xlu2 %v625_v54, %s1857_s13  ;;  %632 = vrot.lane.b32.xlu0 %v619_v57, %s1857_s13  ;;  %v881_v49 = vsel %vm354_vm3, %v880_v4, %v2288_v63 }
 0x2d8   : > { %628 = vrot.lane.b32.xlu1 %v613_v58, %s1857_s13 }
 0x2dd   : > { %v742_v61 = vpop.permute.xlu0 %741  ;;  %v745_v44 = vpop.permute.xlu1 %744 }
 0x2de   : > { %v743_v43 = vsel %vm354_vm3, %v742_v61, %v1958_v13  ;;  %v746_v36 = vsel %vm354_vm3, %v745_v44, %v1960_v14  ;;  %v1033_v3 = vpop.permute.xlu2 %1032 }
 0x2df   : > { %759 = vrot.lane.b32.xlu0 %v743_v43, %s1857_s13  ;;  %763 = vrot.lane.b32.xlu2 %v749_v62, %s1857_s13  ;;  %v1034_v54 = vsel %vm354_vm3, %v1033_v3, %v2306_v39 }
 0x2e0   : > { %634 = vrot.lane.b32.xlu1 %v622_v59, %s1857_s13 }
 0x2e5   : > { %v751_v56 = vpop.permute.xlu0 %750  ;;  %v754_v31 = vpop.permute.xlu1 %753 }
 0x2e6   : > { %v752_v0 = vsel %vm354_vm3, %v751_v56, %v1970_v19  ;;  %v755_v32 = vsel %vm354_vm3, %v754_v31, %v1972_v20  ;;  %v1036_v53 = vpop.permute.xlu2 %1035 }
 0x2e7   : > { %769 = vrot.lane.b32.xlu2 %v758_v34, %s1857_s13  ;;  %765 = vrot.lane.b32.xlu0 %v752_v0, %s1857_s13  ;;  %v1037_v62 = vsel %vm354_vm3, %v1036_v53, %v2324_v45 }
 0x2e8   : > { %761 = vrot.lane.b32.xlu1 %v746_v36, %s1857_s13 }
 0x2ed   : > { %v883_v33 = vpop.permute.xlu0 %882  ;;  %v1030_v35 = vpop.permute.xlu1 %1029 }
 0x2ee   : > { %v884_v17 = vsel %vm354_vm3, %v883_v33, %v2280_v22  ;;  %v1031_v48 = vsel %vm354_vm3, %v1030_v35, %v2284_v23  ;;  %v895_v24 = vpop.permute.xlu2 %894 }
 0x2ef   : > { %899 = vrot.lane.b32.xlu2 %v884_v17, %s1857_s13  ;;  %1047 = vrot.lane.b32.xlu0 %v1031_v48, %s1857_s13  ;;  %v896_v34 = vsel %vm354_vm3, %v895_v24, %v2342_v18 }
 0x2f0   : > { %767 = vrot.lane.b32.xlu1 %v755_v32, %s1857_s13 }
 0x2f5   : > { %v886_v50 = vpop.permute.xlu0 %885  ;;  %v889_v51 = vpop.permute.xlu1 %888 }
 0x2f6   : > { %v887_v16 = vsel %vm354_vm3, %v886_v50, %v2298_v37  ;;  %v890_v52 = vsel %vm354_vm3, %v889_v51, %v2302_v38  ;;  %v1180_v43 = vpop.permute.xlu2 %1179 }
 0x2f7   : > { %901 = vrot.lane.b32.xlu2 %v887_v16, %s1857_s13  ;;  %903 = vrot.lane.b32.xlu0 %v890_v52, %s1857_s13  ;;  %v1181_v3 = vsel %vm354_vm3, %v1180_v43, %v2360_v29 }
 0x2f8   : > { %897 = vrot.lane.b32.xlu1 %v881_v49, %s1857_s13 }
 0x2fd   : > { %v1039_v55 = vpop.permute.xlu0 %1038  ;;  %v892_v28 = vpop.permute.xlu1 %891 }
 0x2fe   : > { %v1040_v57 = vsel %vm354_vm3, %v1039_v55, %v2316_v40  ;;  %v893_v58 = vsel %vm354_vm3, %v892_v28, %v2320_v30  ;;  %v1189_v32 = vpop.permute.xlu2 %1188 }
 0x2ff   : > { %1053 = vrot.lane.b32.xlu2 %v1040_v57, %s1857_s13  ;;  %905 = vrot.lane.b32.xlu0 %v893_v58, %s1857_s13  ;;  %v1190_v49 = vsel %vm354_vm3, %v1189_v32, %v2378_v26 }
 0x300   : > { %1049 = vrot.lane.b32.xlu1 %v1034_v54, %s1857_s13 }
 0x305   : > { %v1042_v59 = vpop.permute.xlu0 %1041  ;;  %v1045_v44 = vpop.permute.xlu1 %1044 }
 0x306   : > { %v1043_v61 = vsel %vm354_vm3, %v1042_v59, %v2334_v41  ;;  %v1046_v4 = vsel %vm354_vm3, %v1045_v44, %v2338_v42  ;;  %v1509_v16 = vpop.permute.xlu2 %1508 }
 0x307   : > { %1055 = vrot.lane.b32.xlu2 %v1043_v61, %s1857_s13  ;;  %1057 = vrot.lane.b32.xlu0 %v1046_v4, %s1857_s13  ;;  %v1510_v52 = vsel %vm354_vm3, %v1509_v16, %v1952_v10 }
 0x308   : > { %1051 = vrot.lane.b32.xlu1 %v1037_v62, %s1857_s13 }
 0x30d   : > { %v1183_v36 = vpop.permute.xlu0 %1182  ;;  %v1186_v31 = vpop.permute.xlu1 %1185 }
 0x30e   : > { %v1184_v56 = vsel %vm354_vm3, %v1183_v36, %v2352_v47  ;;  %v1187_v0 = vsel %vm354_vm3, %v1186_v31, %v2356_v27 }
 0x30f   : > { %1199 = vrot.lane.b32.xlu2 %v1184_v56, %s1857_s13  ;;  %1201 = vrot.lane.b32.xlu0 %v1187_v0, %s1857_s13 }
 0x310   : > { %907 = vrot.lane.b32.xlu1 %v896_v34, %s1857_s13 }
 0x315   : > { %v1192_v33 = vpop.permute.xlu0 %1191  ;;  %v1195_v17 = vpop.permute.xlu1 %1194 }
 0x316   : > { %v1193_v35 = vsel %vm354_vm3, %v1192_v33, %v2370_v60  ;;  %v1196_v48 = vsel %vm354_vm3, %v1195_v17, %v2374_v25 }
 0x317   : > { %1205 = vrot.lane.b32.xlu2 %v1193_v35, %s1857_s13  ;;  %1207 = vrot.lane.b32.xlu0 %v1196_v48, %s1857_s13 }
 0x318   : > { %1197 = vrot.lane.b32.xlu1 %v1181_v3, %s1857_s13 }
 0x31d   : > { %v1512_v50 = vpop.permute.xlu0 %1511 }
 0x31e   : > { %v1513_v51 = vsel %vm354_vm3, %v1512_v50, %v1954_v11 }
 0x31f   : > { %1516 = vrot.lane.b32.xlu2 %v1513_v51, %s1857_s13 }
 0x320   : > { %1203 = vrot.lane.b32.xlu1 %v1190_v49, %s1857_s13 }
 0x328   : > { %1514 = vrot.lane.b32.xlu1 %v1510_v52, %s1857_s13 }
 0x329   : > { %v631_v53 = vpop.permute.xlu2 %630 }
 0x32a   : > { %v640_v54 = vsel %vm354_vm3, %v631_v53, %v1943_v7 }
 0x32b   : > { %654 = vrot.lane.b32.xlu2 %v640_v54, %s1858_s12 }
 0x331   : > { %v637_v55 = vpop.permute.xlu2 %636 }
 0x332   : > { %v643_v28 = vsel %vm354_vm3, %v637_v55, %v1956_v12 }
 0x333   : > { %660 = vrot.lane.b32.xlu2 %v643_v28, %s1858_s12 }
 0x339   : > { %v764_v57 = vpop.permute.xlu2 %763 }
 0x33a   : > { %v773_v33 = vsel %vm354_vm3, %v764_v57, %v1962_v15 }
 0x33b   : > { %678 = vrot.lane.b32.xlu2 %v640_v54, %s1859_s19 }
 0x341   : > { %v627_v58 = vpop.permute.xlu0 %626  ;;  %v2493_v24 = vpop.permute.xlu2 %769 }
 0x342   : > { %v638_v62 = vsel %vm354_vm3, %v627_v58, %v1936_v5 }
 0x343   : > { %650 = vrot.lane.b32.xlu0 %v638_v62, %s1858_s12  ;;  %684 = vrot.lane.b32.xlu2 %v643_v28, %s1859_s19 }
 0x349   : > { %v633_v59 = vpop.permute.xlu0 %632  ;;  %v900_v61 = vpop.permute.xlu2 %899 }
 0x34a   : > { %v629_v44 = vpop.permute.xlu1 %628  ;;  %v641_v43 = vsel %vm354_vm3, %v633_v59, %v1945_v8  ;;  %v910_v17 = vsel %vm354_vm3, %v900_v61, %v2280_v22 }
 0x34b   : > { %v639_v4 = vsel %vm354_vm3, %v629_v44, %v1938_v6  ;;  %656 = vrot.lane.b32.xlu0 %v641_v43, %s1858_s12 }
 0x34c   : > { %652 = vrot.lane.b32.xlu1 %v639_v4, %s1858_s12 }
 0x351   : > { %v760_v34 = vpop.permute.xlu0 %759  ;;  %v902_v36 = vpop.permute.xlu2 %901 }
 0x352   : > { %v635_v56 = vpop.permute.xlu1 %634  ;;  %v771_v31 = vsel %vm354_vm3, %v760_v34, %v1958_v13  ;;  %v911_v34 = vsel %vm354_vm3, %v902_v36, %v2298_v37 }
 0x353   : > { %v642_v0 = vsel %vm354_vm3, %v635_v56, %v1947_v9  ;;  %674 = vrot.lane.b32.xlu0 %v638_v62, %s1859_s19  ;;  %807 = vrot.lane.b32.xlu2 %v771_v31, %s1859_s19 }
 0x354   : > { %658 = vrot.lane.b32.xlu1 %v642_v0, %s1858_s12 }
 0x359   : > { %v1054_v3 = vpop.permute.xlu2 %1053  ;;  %v766_v32 = vpop.permute.xlu0 %765 }
 0x35a   : > { %v762_v35 = vpop.permute.xlu1 %761  ;;  %v774_v55 = vsel %vm354_vm3, %v766_v32, %v1970_v19 }
 0x35b   : > { %680 = vrot.lane.b32.xlu0 %v641_v43, %s1859_s19  ;;  %811 = vrot.lane.b32.xlu2 %v773_v33, %s1859_s19  ;;  %v772_v51 = vsel %vm354_vm3, %v762_v35, %v1960_v14 }
 0x35c   : > { %676 = vrot.lane.b32.xlu1 %v639_v4, %s1859_s19 }
 0x361   : > { %v2519_v48 = vpop.permute.xlu2 %1055  ;;  %v1048_v49 = vpop.permute.xlu0 %1047 }
 0x362   : > { %v768_v50 = vpop.permute.xlu1 %767  ;;  %v1059_v44 = vsel %vm354_vm3, %v1048_v49, %v2284_v23 }
 0x363   : > { %783 = vrot.lane.b32.xlu0 %v771_v31, %s1858_s12  ;;  %923 = vrot.lane.b32.xlu2 %v910_v17, %s1858_s12 }
 0x364   : > { %682 = vrot.lane.b32.xlu1 %v642_v0, %s1859_s19  ;;  %v1062_v0 = vsel %vm354_vm3, %v1054_v3, %v2316_v40 }
 0x369   : > { %v2526_v16 = vpop.permute.xlu2 %1199  ;;  %v904_v52 = vpop.permute.xlu0 %903 }
 0x36a   : > { %v898_v53 = vpop.permute.xlu1 %897  ;;  %v912_v54 = vsel %vm354_vm3, %v904_v52, %v2302_v38  ;;  %v775_v52 = vsel %vm354_vm3, %v768_v50, %v1972_v20  ;;  %v776_v50 = vsel %vm354_vm3, %v2493_v24, %v1974_v21 }
 0x36b   : > { %787 = vrot.lane.b32.xlu0 %v773_v33, %s1858_s12  ;;  %927 = vrot.lane.b32.xlu2 %v912_v54, %s1858_s12  ;;  %v909_v58 = vsel %vm354_vm3, %v898_v53, %v2288_v63 }
 0x36c   : > { %785 = vrot.lane.b32.xlu1 %v772_v51, %s1858_s12 }
 0x371   : > { %v2535_v28 = vpop.permute.xlu2 %1205  ;;  %v906_v31 = vpop.permute.xlu0 %905 }
 0x372   : > { %v1050_v57 = vpop.permute.xlu1 %1049 }
 0x373   : > { %809 = vrot.lane.b32.xlu0 %v772_v51, %s1859_s19  ;;  %v1060_v43 = vsel %vm354_vm3, %v1050_v57, %v2306_v39  ;;  %v913_v51 = vsel %vm354_vm3, %v906_v31, %v2320_v30 }
 0x374   : > { %789 = vrot.lane.b32.xlu1 %v774_v55, %s1858_s12 }
 0x379   : > { %v2544_v61 = vpop.permute.xlu2 %1516  ;;  %v1058_v49 = vpop.permute.xlu0 %1057 }
 0x37a   : > { %v1052_v62 = vpop.permute.xlu1 %1051 }
 0x37b   : > { %v1061_v59 = vsel %vm354_vm3, %v1052_v62, %v2324_v45  ;;  %813 = vrot.lane.b32.xlu0 %v774_v55, %s1859_s19  ;;  %v1064_v55 = vsel %vm354_vm3, %v1058_v49, %v2338_v42 }
 0x37c   : > { %921 = vrot.lane.b32.xlu1 %v909_v58, %s1858_s12  ;;  %1075 = vrot.lane.b32.xlu2 %v1061_v59, %s1858_s12 }
 0x381   : > { %v1202_v57 = vpop.permute.xlu0 %1201 }
 0x382   : > { %v908_v35 = vpop.permute.xlu1 %907  ;;  %v1211_v49 = vsel %vm354_vm3, %v1202_v57, %v2356_v27  ;;  %v2636_v57 = vsel %vm354_vm3, %v2544_v61, %v1954_v11 }
 0x383   : > { %1071 = vrot.lane.b32.xlu0 %v1059_v44, %s1858_s12 }
 0x384   : > { %1073 = vrot.lane.b32.xlu1 %v1060_v43, %s1858_s12  ;;  %1097 = vrot.lane.b32.xlu2 %v1060_v43, %s1859_s19 }
 0x385   : > { %v655_v4 = vpop.permute.xlu2 %654 }
 0x386   : > { %v670_v32 = vadd.f32 %v655_v4, %v1943_v7 }
 0x389   : > { %v2590_v62 = vpop.permute.xlu0 %1207 }
 0x38a   : > { %v1198_v53 = vpop.permute.xlu1 %1197 }
 0x38b   : > { %945 = vrot.lane.b32.xlu0 %v909_v58, %s1859_s19  ;;  %v1063_v58 = vsel %vm354_vm3, %v2519_v48, %v2334_v41  ;;  %v1209_v4 = vsel %vm354_vm3, %v1198_v53, %v2360_v29 }
 0x38c   : > { %925 = vrot.lane.b32.xlu1 %v911_v34, %s1858_s12  ;;  %949 = vrot.lane.b32.xlu2 %v911_v34, %s1859_s19 }
 0x38d   : > { %v661_v56 = vpop.permute.xlu2 %660 }
 0x38e   : > { %v673_v3 = vadd.f32 %v661_v56, %v1956_v12 }
 0x392   : > { %v1204_v12 = vpop.permute.xlu1 %1203 }
 0x393   : > { %1077 = vrot.lane.b32.xlu0 %v1062_v0, %s1858_s12  ;;  %v1212_v31 = vsel %vm354_vm3, %v1204_v12, %v2378_v26 }
 0x394   : > { %947 = vrot.lane.b32.xlu1 %v910_v17, %s1859_s19  ;;  %1101 = vrot.lane.b32.xlu2 %v1062_v0, %s1859_s19 }
 0x395   : > { %v679_v36 = vpop.permute.xlu2 %678 }
 0x396   : > { %v2566_v33 = vadd.f32 %v679_v36, %v670_v32 }
 0x39a   : > { %v2604_v48 = vpop.permute.xlu1 %1514 }
 0x39b   : > { %791 = vrot.lane.b32.xlu0 %v775_v52, %s1858_s12 }
 0x39c   : > { %1095 = vrot.lane.b32.xlu1 %v1059_v44, %s1859_s19  ;;  %929 = vrot.lane.b32.xlu2 %v913_v51, %s1858_s12  ;;  %v1210_v44 = vsel %vm354_vm3, %v2526_v16, %v2352_v47 }
 0x39d   : > { %v685_v7 = vpop.permute.xlu2 %684 }
 0x39e   : > { %v2576_v17 = vadd.f32 %v685_v7, %v673_v3 }
 0x3a3   : > { %951 = vrot.lane.b32.xlu0 %v912_v54, %s1859_s19  ;;  %v914_v54 = vsel %vm354_vm3, %v908_v35, %v2342_v18 }
 0x3a4   : > { %793 = vrot.lane.b32.xlu1 %v776_v50, %s1858_s12  ;;  %1081 = vrot.lane.b32.xlu2 %v1064_v55, %s1858_s12 }
 0x3ab   : > { %815 = vrot.lane.b32.xlu0 %v775_v52, %s1859_s19 }
 0x3ac   : > { %1099 = vrot.lane.b32.xlu1 %v1061_v59, %s1859_s19  ;;  %1103 = vrot.lane.b32.xlu2 %v1063_v58, %s1859_s19 }
 0x3ad   : > { %v2594_v24 = vpop.permute.xlu2 %807 }
 0x3b3   : > { %931 = vrot.lane.b32.xlu0 %v914_v54, %s1858_s12 }
 0x3b4   : > { %817 = vrot.lane.b32.xlu1 %v776_v50, %s1859_s19  ;;  %1223 = vrot.lane.b32.xlu2 %v1210_v44, %s1858_s12  ;;  %v717_v50 = vrot.slane %v2566_v33, 2 }
 0x3b5   : > { %v651_v59 = vpop.permute.xlu0 %650  ;;  %v2606_v43 = vpop.permute.xlu2 %811 }
 0x3b6   : > { %v668_v0 = vadd.f32 %v651_v59, %v1936_v5 }
 0x3bb   : > { %953 = vrot.lane.b32.xlu0 %v913_v51, %s1859_s19  ;;  %v1213_v51 = vsel %vm354_vm3, %v2535_v28, %v2370_v60 }
 0x3bc   : > { %1079 = vrot.lane.b32.xlu1 %v1063_v58, %s1858_s12  ;;  %1245 = vrot.lane.b32.xlu2 %v1209_v4, %s1859_s19 }
 0x3bd   : > { %v657_v16 = vpop.permute.xlu0 %656  ;;  %v2613_v56 = vpop.permute.xlu2 %923 }
 0x3be   : > { %v653_v34 = vpop.permute.xlu1 %652  ;;  %v671_v52 = vadd.f32 %v657_v16, %v1945_v8  ;;  %v699_v8 = vrot.slane %v2566_v33, 1 }
 0x3bf   : > { %v669_v3 = vadd.f32 %v653_v34, %v1938_v6 }
 0x3c3   : > { %1105 = vrot.lane.b32.xlu0 %v1064_v55, %s1859_s19 }
 0x3c4   : > { %955 = vrot.lane.b32.xlu1 %v914_v54, %s1859_s19  ;;  %1251 = vrot.lane.b32.xlu2 %v1212_v31, %s1859_s19 }
 0x3c5   : > { %v675_v32 = vpop.permute.xlu0 %674  ;;  %v2630_v5 = vpop.permute.xlu2 %927 }
 0x3c6   : > { %v659_v36 = vpop.permute.xlu1 %658  ;;  %v692_v35 = vadd.f32 %v675_v32, %v668_v0 }
 0x3c8   : > { %v698_v54 = vrot.slane %v692_v35, 1  ;;  %v716_v59 = vrot.slane %v692_v35, 2 }
 0x3cb   : > { %1225 = vrot.lane.b32.xlu0 %v1211_v49, %s1858_s12 }
 0x3cc   : > { %1221 = vrot.lane.b32.xlu1 %v1209_v4, %s1858_s12  ;;  %1253 = vrot.lane.b32.xlu2 %v1213_v51, %s1859_s19 }
 0x3cd   : > { %v681_v7 = vpop.permute.xlu0 %680 }
 0x3ce   : > { %v677_v53 = vpop.permute.xlu1 %676  ;;  %v695_v55 = vadd.f32 %v681_v7, %v671_v52 }
 0x3cf   : > { %v693_v28 = vadd.f32 %v677_v53, %v669_v3 }
 0x3d0   : > { %v702_v12 = vrot.slane %v695_v55, 1  ;;  %v720_v58 = vrot.slane %v695_v55, 2 }
 0x3d1   : > { %v701_v6 = vrot.slane %v693_v28, 1  ;;  %v719_v4 = vrot.slane %v693_v28, 2 }
 0x3d2   : > { %v705_v16 = vsel %vm517_vm1, %v699_v8, %v702_v12  ;;  %v708_v61 = vsel %vm517_vm1, %v702_v12, %v699_v8  ;;  %v724_v34 = vsel %vm722_vm13, %v717_v50, %v720_v58  ;;  %v727_v0 = vsel %vm722_vm13, %v720_v58, %v717_v50 }
 0x3d3   : > { %v704_v32 = vsel %vm517_vm1, %v698_v54, %v701_v6  ;;  %v707_v52 = vsel %vm517_vm1, %v701_v6, %v698_v54  ;;  %v723_v3 = vsel %vm722_vm13, %v716_v59, %v719_v4  ;;  %v726_v7 = vsel %vm722_vm13, %v719_v4, %v716_v59  ;;  %1247 = vrot.lane.b32.xlu0 %v1210_v44, %s1859_s19 }
 0x3d4   : > { %v710_v53 = vadd.f32 %v704_v32, %v692_v35  ;;  %v711_v8 = vadd.f32 %v707_v52, %v693_v28  ;;  %v712_v12 = vadd.f32 %v705_v16, %v2566_v33  ;;  %v713_v2 = vadd.f32 %v708_v61, %v695_v55  ;;  %1227 = vrot.lane.b32.xlu1 %v1212_v31, %s1858_s12 }
 0x3d5   : > { %v672_v50 = vadd.f32 %v659_v36, %v1947_v9  ;;  %1524 = vrot.lane.b32.xlu2 %v2636_v57, %s1858_s12  ;;  %v784_v58 = vpop.permute.xlu0 %783  ;;  %v703_v31 = vrot.slane %v2576_v17, 1  ;;  %v721_v9 = vrot.slane %v2576_v17, 2 }
 0x3d6   : > { %v729_v54 = vadd.f32 %v723_v3, %v710_v53  ;;  %v730_v6 = vadd.f32 %v726_v7, %v711_v8  ;;  %v2663_v46 = vadd.f32 %v724_v34, %v712_v12  ;;  %v2665_v59 = vadd.f32 %v727_v0, %v713_v2  ;;  %v683_v44 = vpop.permute.xlu1 %682  ;;  %v2667_v35 = vpop.permute.xlu2 %1075 }
 0x3d7   : > { %v696_v28 = vadd.f32 %v683_v44, %v672_v50  ;;  %v801_v33 = vadd.f32 %v784_v58, %v1958_v13 }
 0x3d9   : > { %v700_v36 = vrot.slane %v696_v28, 1  ;;  %v718_v55 = vrot.slane %v696_v28, 2  ;;  %v825_v4 = vadd.f32 %v2594_v24, %v801_v33 }
 0x3db   : > { %v706_v16 = vsel %vm517_vm1, %v700_v36, %v703_v31  ;;  %v709_v2 = vsel %vm517_vm1, %v703_v31, %v700_v36  ;;  %v725_v61 = vsel %vm722_vm13, %v718_v55, %v721_v9  ;;  %1229 = vrot.lane.b32.xlu0 %v1213_v51, %s1858_s12  ;;  %v728_v0 = vsel %vm722_vm13, %v721_v9, %v718_v55 }
 0x3dc   : > { %v714_v13 = vadd.f32 %v706_v16, %v696_v28  ;;  %v715_v34 = vadd.f32 %v709_v2, %v2576_v17  ;;  %1249 = vrot.lane.b32.xlu1 %v1211_v49, %s1859_s19  ;;  %v1214_v17 = vsel %vm354_vm3, %v2590_v62, %v2374_v25  ;;  %v831_v44 = vrot.slane %v825_v4, 1 }
 0x3dd   : > { %v788_v24 = vpop.permute.xlu0 %787  ;;  %v849_v28 = vrot.slane %v825_v4, 2  ;;  %v2711_v36 = vmul.f32 0.11111111, %v729_v54  ;;  %v2713_v55 = vmul.f32 0.11111111, %v730_v6 }
 0x3de   : > { %v2684_v32 = vadd.f32 %v725_v61, %v714_v13  ;;  %v2686_v52 = vadd.f32 %v728_v0, %v715_v34  ;;  %v786_v3 = vpop.permute.xlu1 %785  ;;  %v2688_v7 = vpop.permute.xlu2 %1097  ;;  %v803_v53 = vadd.f32 %v788_v24, %v1962_v15 }
 0x3df   : > { %v802_v49 = vadd.f32 %v786_v3, %v1960_v14  ;;  %v1323_v54 = vmul.f32 2.0, %v2711_v36  ;;  %v1324_v6 = vmul.f32 2.0, %v2713_v55 }
 0x3e0   : > { %v827_v51 = vadd.f32 %v2606_v43, %v803_v53  ;;  %v1518_v43 = vsel %vm354_vm3, %v2604_v48, %v1952_v10 }
 0x3e3   : > { %1255 = vrot.lane.b32.xlu0 %v1214_v17, %s1859_s19 }
 0x3e4   : > { %1231 = vrot.lane.b32.xlu1 %v1214_v17, %s1858_s12  ;;  %v832_v17 = vrot.slane %v827_v51, 1 }
 0x3e5   : > { %v810_v8 = vpop.permute.xlu0 %809 }
 0x3e6   : > { %v790_v12 = vpop.permute.xlu1 %789  ;;  %v2698_v50 = vpop.permute.xlu2 %949  ;;  %v826_v58 = vadd.f32 %v810_v8, %v802_v49  ;;  %v850_v49 = vrot.slane %v827_v51, 2 }
 0x3e7   : > { %v804_v48 = vadd.f32 %v790_v12, %v1970_v19 }
 0x3e8   : > { %v834_v15 = vrot.slane %v826_v58, 1  ;;  %v852_v33 = vrot.slane %v826_v58, 2 }
 0x3ea   : > { %v837_v62 = vsel %vm517_vm1, %v831_v44, %v834_v15  ;;  %v840_v14 = vsel %vm517_vm1, %v834_v15, %v831_v44  ;;  %v855_v31 = vsel %vm722_vm13, %v849_v28, %v852_v33  ;;  %v858_v9 = vsel %vm722_vm13, %v852_v33, %v849_v28 }
 0x3eb   : > { %v843_v16 = vadd.f32 %v837_v62, %v825_v4  ;;  %v844_v2 = vadd.f32 %v840_v14, %v826_v58  ;;  %1530 = vrot.lane.b32.xlu0 %v1518_v43, %s1859_s19 }
 0x3ec   : > { %1522 = vrot.lane.b32.xlu1 %v1518_v43, %s1858_s12  ;;  %v2741_v43 = vmul.f32 0.11111111, %v2665_v59 }
 0x3ed   : > { %v861_v61 = vadd.f32 %v855_v31, %v843_v16  ;;  %v862_v13 = vadd.f32 %v858_v9, %v844_v2  ;;  %v814_v34 = vpop.permute.xlu0 %813  ;;  %v2744_v31 = vmul.f32 0.11111111, %v2663_v46 }
 0x3ee   : > { %v922_v0 = vpop.permute.xlu1 %921  ;;  %v2718_v24 = vpop.permute.xlu2 %1101  ;;  %v828_v3 = vadd.f32 %v814_v34, %v804_v48  ;;  %v1326_v46 = vmul.f32 2.0, %v2741_v43 }
 0x3ef   : > { %v2722_v53 = vmul.f32 0.11111111, %v861_v61  ;;  %v2724_v4 = vmul.f32 0.11111111, %v862_v13 }
 0x3f0   : > { %v835_v19 = vrot.slane %v828_v3, 1  ;;  %v853_v8 = vrot.slane %v828_v3, 2 }
 0x3f1   : > { %v2727_v12 = vmul.f32 %v1323_v54, %v2722_v53  ;;  %v2730_v58 = vmul.f32 %v1324_v6, %v2724_v4  ;;  %v2750_v9 = vmul.f32 %v2722_v53, %v2711_v36  ;;  %v2754_v16 = vmul.f32 %v2724_v4, %v2713_v55 }
 0x3f2   : > { %v838_v44 = vsel %vm517_vm1, %v832_v17, %v835_v19  ;;  %v841_v28 = vsel %vm517_vm1, %v835_v19, %v832_v17  ;;  %v856_v15 = vsel %vm722_vm13, %v850_v49, %v853_v8  ;;  %v859_v33 = vsel %vm722_vm13, %v853_v8, %v850_v49 }
 0x3f3   : > { %v845_v62 = vadd.f32 %v838_v44, %v827_v51  ;;  %v846_v14 = vadd.f32 %v841_v28, %v828_v3  ;;  %3260 = vst [vmem:[#allocation7_spill] sm:$0xff] %v2750_v9  ;;  %v939_v49 = vadd.f32 %v922_v0, %v2288_v63 }
 0x3f4   : > { %1532 = vrot.lane.b32.xlu1 %v2636_v57, %s1859_s19  ;;  %3261 = vst [vmem:[#allocation8_spill] sm:$0xff] %v2754_v16  ;;  %v1325_v57 = vmul.f32 2.0, %v2744_v31 }
 0x3f5   : > { %v863_v2 = vadd.f32 %v856_v15, %v845_v62  ;;  %v864_v48 = vadd.f32 %v859_v33, %v846_v14  ;;  %v1072_v59 = vpop.permute.xlu0 %1071  ;;  %v940_v15 = vadd.f32 %v2613_v56, %v2280_v22 }
 0x3f6   : > { %v1074_v61 = vpop.permute.xlu1 %1073  ;;  %v2756_v51 = vpop.permute.xlu2 %929 }
 0x3f7   : > { %v2759_v13 = vmul.f32 0.11111111, %v863_v2  ;;  %v2761_v34 = vmul.f32 0.11111111, %v864_v48  ;;  %v1090_v48 = vadd.f32 %v1074_v61, %v2306_v39  ;;  %v1089_v61 = vadd.f32 %v1072_v59, %v2284_v23 }
 0x3f9   : > { %v2766_v3 = vmul.f32 %v2761_v34, %v2741_v43  ;;  %v2769_v54 = vmul.f32 %v1326_v46, %v2761_v34  ;;  %v2773_v6 = vmul.f32 %v2759_v13, %v2744_v31  ;;  %v2776_v17 = vmul.f32 %v1325_v57, %v2759_v13 }
 0x3fa   : > { %v1114_v39 = vadd.f32 %v2688_v7, %v1090_v48  ;;  %v1012_v7 = vmul.f32 %v2713_v55, %v2713_v55 }
 0x3fb   : > { %3262 = vst [vmem:[#allocation9_spill] sm:$0xff] %v2766_v3 }
 0x3fc   : > { %3263 = vst [vmem:[#allocation10_spill] sm:$0xff] %v2773_v6  ;;  %v1140_v23 = vrot.slane %v1114_v39, 2 }
 0x3fd   : > { %v946_v19 = vpop.permute.xlu0 %945 }
 0x3fe   : > { %v926_v8 = vpop.permute.xlu1 %925  ;;  %v2779_v44 = vpop.permute.xlu2 %1081  ;;  %v963_v28 = vadd.f32 %v946_v19, %v939_v49 }
 0x400   : > { %v969_v46 = vrot.slane %v963_v28, 1  ;;  %v987_v57 = vrot.slane %v963_v28, 2 }
 0x405   : > { %v1078_v33 = vpop.permute.xlu0 %1077 }
 0x406   : > { %v948_v62 = vpop.permute.xlu1 %947  ;;  %v2783_v14 = vpop.permute.xlu2 %1103 }
 0x407   : > { %v964_v2 = vadd.f32 %v948_v62, %v940_v15  ;;  %v941_v62 = vadd.f32 %v926_v8, %v2298_v37 }
 0x409   : > { %v972_v10 = vrot.slane %v964_v2, 1  ;;  %v990_v3 = vrot.slane %v964_v2, 2  ;;  %v965_v37 = vadd.f32 %v2698_v50, %v941_v62  ;;  %v942_v50 = vadd.f32 %v2630_v5, %v2302_v38 }
 0x40b   : > { %v975_v63 = vsel %vm517_vm1, %v969_v46, %v972_v10  ;;  %v978_v0 = vsel %vm517_vm1, %v972_v10, %v969_v46  ;;  %v993_v22 = vsel %vm722_vm13, %v987_v57, %v990_v3  ;;  %v996_v56 = vsel %vm722_vm13, %v990_v3, %v987_v57 }
 0x40c   : > { %v981_v49 = vadd.f32 %v975_v63, %v963_v28  ;;  %v982_v19 = vadd.f32 %v978_v0, %v964_v2  ;;  %v1011_v3 = vmul.f32 %v2711_v36, %v2711_v36  ;;  %v1122_v28 = vrot.slane %v1114_v39, 1 }
 0x40d   : > { %v2796_v15 = vpop.permute.xlu0 %791  ;;  %v970_v62 = vrot.slane %v965_v37, 1 }
 0x40e   : > { %v999_v6 = vadd.f32 %v993_v22, %v981_v49  ;;  %v1000_v25 = vadd.f32 %v996_v56, %v982_v19  ;;  %v1096_v60 = vpop.permute.xlu1 %1095  ;;  %v2799_v10 = vpop.permute.xlu2 %1223  ;;  %v1162_v49 = vmul.f32 %v2724_v4, %v2724_v4 }
 0x40f   : > { %v1113_v46 = vadd.f32 %v1096_v60, %v1089_v61 }
 0x410   : > { %v1005_v16 = vmul.f32 0.11111111, %v999_v6  ;;  %v1006_v9 = vmul.f32 0.11111111, %v1000_v25 }
 0x411   : > { %v1119_v59 = vrot.slane %v1113_v46, 1  ;;  %v1137_v2 = vrot.slane %v1113_v46, 2 }
 0x412   : > { %v1017_v8 = vsub.f32 %v1005_v16, %v1011_v3  ;;  %v1018_v48 = vsub.f32 %v1006_v9, %v1012_v7 }
 0x413   : > { %v1125_v57 = vsel %vm517_vm1, %v1119_v59, %v1122_v28  ;;  %v1128_v60 = vsel %vm517_vm1, %v1122_v28, %v1119_v59  ;;  %v1143_v25 = vsel %vm722_vm13, %v1137_v2, %v1140_v23  ;;  %v1146_v36 = vsel %vm722_vm13, %v1140_v23, %v1137_v2 }
 0x414   : > { %v1359_v55 = vadd.f32 %v1017_v8, %v1011_v3  ;;  %v1360_v6 = vadd.f32 %v1018_v48, %v1012_v7  ;;  %v1131_v63 = vadd.f32 %v1125_v57, %v1113_v46  ;;  %v1132_v0 = vadd.f32 %v1128_v60, %v1114_v39 }
 0x415   : > { %v952_v9 = vpop.permute.xlu0 %951  ;;  %v1161_v46 = vmul.f32 %v2722_v53, %v2722_v53  ;;  %v988_v39 = vrot.slane %v965_v37, 2  ;;  %v1092_v3 = vadd.f32 %v1078_v33, %v2316_v40  ;;  %v1091_v33 = vadd.f32 %v2667_v35, %v2324_v45 }
 0x416   : > { %v1149_v16 = vadd.f32 %v1143_v25, %v1131_v63  ;;  %v1150_v22 = vadd.f32 %v1146_v36, %v1132_v0  ;;  %v794_v56 = vpop.permute.xlu1 %793  ;;  %v2818_v19 = vpop.permute.xlu2 %1245  ;;  %v966_v61 = vadd.f32 %v952_v9, %v942_v50  ;;  %v1365_v25 = vadd.f32 0.0001, %v1359_v55 }
 0x417   : > { %v1366_v36 = vadd.f32 0.0001, %v1360_v6  ;;  %v1116_v63 = vadd.f32 %v2718_v24, %v1092_v3 }
 0x418   : > { %v1155_v28 = vmul.f32 0.11111111, %v1149_v16  ;;  %v1156_v23 = vmul.f32 0.11111111, %v1150_v22  ;;  %v973_v38 = vrot.slane %v966_v61, 1  ;;  %v991_v5 = vrot.slane %v966_v61, 2 }
 0x419   : > { %v1123_v24 = vrot.slane %v1116_v63, 1 }
 0x41a   : > { %v1167_v7 = vsub.f32 %v1155_v28, %v1161_v46  ;;  %v1168_v59 = vsub.f32 %v1156_v23, %v1162_v49  ;;  %v976_v2 = vsel %vm517_vm1, %v970_v62, %v973_v38  ;;  %v979_v4 = vsel %vm517_vm1, %v973_v38, %v970_v62 }
 0x41b   : > { %v994_v8 = vsel %vm722_vm13, %v988_v39, %v991_v5  ;;  %v997_v48 = vsel %vm722_vm13, %v991_v5, %v988_v39  ;;  %v983_v60 = vadd.f32 %v976_v2, %v965_v37  ;;  %v984_v40 = vadd.f32 %v979_v4, %v966_v61 }
 0x41c   : > { %v1371_v53 = vadd.f32 %v1167_v7, %v1161_v46  ;;  %v1372_v57 = vadd.f32 %v1168_v59, %v1162_v49  ;;  %v1013_v28 = vmul.f32 %v2744_v31, %v2744_v31  ;;  %v1014_v37 = vmul.f32 %v2741_v43, %v2741_v43 }
 0x41d   : > { %v816_v0 = vpop.permute.xlu0 %815  ;;  %v1001_v16 = vadd.f32 %v994_v8, %v983_v60  ;;  %v1002_v22 = vadd.f32 %v997_v48, %v984_v40  ;;  %v1141_v39 = vrot.slane %v1116_v63, 2  ;;  %v805_v31 = vadd.f32 %v2796_v15, %v1972_v20 }
 0x41e   : > { %v1377_v50 = vadd.f32 0.0009, %v1371_v53  ;;  %v1378_v9 = vadd.f32 0.0009, %v1372_v57  ;;  %v1100_v62 = vpop.permute.xlu1 %1099  ;;  %v2842_v46 = vpop.permute.xlu2 %1251  ;;  %v806_v43 = vadd.f32 %v794_v56, %v1974_v21  ;;  %v2858_v60 = vmul.f32 0.11111111, %v2684_v32 }
 0x41f   : > { %v1115_v49 = vadd.f32 %v1100_v62, %v1091_v33  ;;  %v1007_v35 = vmul.f32 0.11111111, %v1001_v16  ;;  %v1008_v55 = vmul.f32 0.11111111, %v1002_v22  ;;  %v829_v15 = vadd.f32 %v816_v0, %v805_v31 }
 0x420   : > { %v2838_v61 = vmul.f32 %v1377_v50, %v1365_v25  ;;  %v2840_v45 = vmul.f32 %v1378_v9, %v1366_v36  ;;  %v1164_v33 = vmul.f32 %v2761_v34, %v2761_v34  ;;  %v2865_v0 = vmul.f32 0.11111111, %v2686_v52 }
 0x421   : > { %v1120_v6 = vrot.slane %v1115_v49, 1  ;;  %v1138_v23 = vrot.slane %v1115_v49, 2  ;;  %v1019_v3 = vsub.f32 %v1007_v35, %v1013_v28  ;;  %v1020_v38 = vsub.f32 %v1008_v55, %v1014_v37 }
 0x422   : > { %1801 = vrcp.f32 %v2838_v61  ;;  %v833_v50 = vrot.slane %v829_v15, 1  ;;  %v2871_v32 = vmul.f32 %v2858_v60, %v2858_v60  ;;  %v2880_v52 = vmul.f32 2.0, %v2858_v60 }
 0x423   : > { %v1126_v5 = vsel %vm517_vm1, %v1120_v6, %v1123_v24  ;;  %v1129_v7 = vsel %vm517_vm1, %v1123_v24, %v1120_v6  ;;  %v1361_v59 = vadd.f32 %v1019_v3, %v1013_v28  ;;  %v1362_v2 = vadd.f32 %v1020_v38, %v1014_v37 }
 0x424   : > { %v1133_v4 = vadd.f32 %v1126_v5, %v1115_v49  ;;  %v1134_v8 = vadd.f32 %v1129_v7, %v1116_v63  ;;  %v1144_v48 = vsel %vm722_vm13, %v1138_v23, %v1141_v39  ;;  %v1147_v20 = vsel %vm722_vm13, %v1141_v39, %v1138_v23 }
 0x425   : > { %v932_v21 = vpop.permute.xlu0 %931  ;;  %1803 = vrcp.f32 %v2840_v45  ;;  %v1163_v63 = vmul.f32 %v2759_v13, %v2759_v13  ;;  %v1367_v55 = vadd.f32 0.0001, %v1361_v59  ;;  %v2886_v23 = vmul.f32 %v2865_v0, %v2865_v0 }
 0x426   : > { %v1151_v56 = vadd.f32 %v1144_v48, %v1133_v4  ;;  %v1152_v53 = vadd.f32 %v1147_v20, %v1134_v8  ;;  %v818_v57 = vpop.permute.xlu1 %817  ;;  %v2875_v28 = vpop.permute.xlu2 %1253  ;;  %v2889_v39 = vmul.f32 2.0, %v2865_v0  ;;  %v1368_v3 = vadd.f32 0.0001, %v1362_v2 }
 0x427   : > { %v830_v40 = vadd.f32 %v818_v57, %v806_v43  ;;  %v851_v4 = vrot.slane %v829_v15, 2  ;;  %v2896_v48 = vadd.f32 0.0001, %v2727_v12  ;;  %v943_v57 = vadd.f32 %v2756_v51, %v2320_v30 }
 0x428   : > { %v1157_v25 = vmul.f32 0.11111111, %v1151_v56  ;;  %v1158_v36 = vmul.f32 0.11111111, %v1152_v53  ;;  %v2867_v62 = vpop.eup %1801  ;;  %v2904_v53 = vadd.f32 0.0001, %v2730_v58  ;;  %v1094_v58 = vadd.f32 %v2779_v44, %v2338_v42 }
 0x429   : > { %v836_v9 = vrot.slane %v830_v40, 1  ;;  %v854_v24 = vrot.slane %v830_v40, 2  ;;  %v1390_v7 = vmul.f32 %v2867_v62, %v2838_v61  ;;  %v2912_v12 = vadd.f32 0.0001, %v2769_v54 }
 0x42a   : > { %v1169_v16 = vsub.f32 %v1157_v25, %v1163_v63  ;;  %v1170_v22 = vsub.f32 %v1158_v36, %v1164_v33  ;;  %vm1409_vm3 = vweird.f32 %v2840_v45  ;;  %v1398_v44 = vand.u32 2147483647, %v2838_v61 }
 0x42b   : > { %v839_v34 = vsel %vm517_vm1, %v833_v50, %v836_v9  ;;  %v2877_v37 = vpop.eup %1803  ;;  %v842_v35 = vsel %vm517_vm1, %v836_v9, %v833_v50  ;;  %v1391_v51 = vsub.f32 1.0, %v1390_v7  ;;  %v1413_v9 = vand.u32 2147483647, %v2840_v45 }
 0x42c   : > { %v1373_v13 = vadd.f32 %v1169_v16, %v1163_v63  ;;  %v1374_v49 = vadd.f32 %v1170_v22, %v1164_v33  ;;  %v847_v43 = vadd.f32 %v839_v34, %v829_v15  ;;  %v848_v8 = vadd.f32 %v842_v35, %v830_v40 }
 0x42d   : > { %v954_v6 = vpop.permute.xlu0 %953  ;;  %v1405_v59 = vmul.f32 %v2877_v37, %v2840_v45  ;;  %v857_v15 = vsel %vm722_vm13, %v851_v4, %v854_v24  ;;  %v1415_v40 = vand.u32 2147483648, %v2840_v45  ;;  %v860_v33 = vsel %vm722_vm13, %v854_v24, %v851_v4 }
 0x42e   : > { %v1379_v38 = vadd.f32 0.0009, %v1373_v13  ;;  %v1380_v31 = vadd.f32 0.0009, %v1374_v49  ;;  %v1080_v5 = vpop.permute.xlu1 %1079  ;;  %v865_v25 = vadd.f32 %v857_v15, %v847_v43  ;;  %v866_v36 = vadd.f32 %v860_v33, %v848_v8 }
 0x42f   : > { %v1093_v2 = vadd.f32 %v1080_v5, %v2334_v41  ;;  %v2917_v41 = vadd.f32 0.0001, %v2776_v17  ;;  %v1406_v30 = vsub.f32 1.0, %v1405_v59  ;;  %v2923_v63 = vadd.f32 %v2799_v10, %v2352_v47  ;;  %v1525_v22 = vpop.permute.xlu2 %1524 }
 0x430   : > { %v2898_v20 = vmul.f32 %v1379_v38, %v1367_v55  ;;  %v2900_v56 = vmul.f32 %v1380_v31, %v1368_v3  ;;  %v967_v50 = vadd.f32 %v954_v6, %v943_v57  ;;  %v944_v16 = vadd.f32 %v932_v21, %v2342_v18 }
 0x431   : > { %v1117_v54 = vadd.f32 %v2783_v14, %v1093_v2  ;;  %vm1410_vm14 = vweird.f32 %v2877_v37  ;;  %v2930_v42 = vor.u32 1.1754944e-38, %v1415_v40  ;;  %v871_v47 = vmul.f32 0.11111111, %v865_v25 }
 0x432   : > { %1805 = vrcp.f32 %v2898_v20  ;;  %v1400_v34 = vand.u32 2147483648, %v2838_v61  ;;  %v872_v13 = vmul.f32 0.11111111, %v866_v36  ;;  %v1407_v18 = vmul.f32 %v2877_v37, %v1406_v30  ;;  %vm2971_vm2 = vmor %vm1409_vm3, %vm1410_vm14 }
 0x433   : > { %v1392_v21 = vmul.f32 %v2867_v62, %v1391_v51  ;;  %v1121_v35 = vrot.slane %v1117_v54, 1  ;;  %v2938_v55 = vadd.f32 %v1525_v22, %v1954_v11  ;;  %v971_v24 = vrot.slane %v967_v50, 1 }
 0x434   : > { %v989_v3 = vrot.slane %v967_v50, 2  ;;  %vm2940_vm15 = vcmp.eq.f32.partialorder %v1413_v9, 8.507059e+37  ;;  %1807 = vrcp.f32 %v2900_v56  ;;  %v1165_v7 = vmul.f32 %v871_v47, %v871_v47 }
 0x435   : > { %v1106_v17 = vpop.permute.xlu0 %1105  ;;  %v1139_v8 = vrot.slane %v1117_v54, 2  ;;  %v1408_v57 = vadd.f32 %v2877_v37, %v1407_v18  ;;  %vm1395_vm0 = vweird.f32 %v2867_v62  ;;  %vm1394_vm4 = vweird.f32 %v2838_v61 }
 0x436   : > { %v956_v10 = vpop.permute.xlu1 %955  ;;  %v1118_v14 = vadd.f32 %v1106_v17, %v1094_v58  ;;  %vm3009_vm5 = vcmp.eq.f32.partialorder %v1398_v44, 8.507059e+37  ;;  %vm1424_vm6 = vweird.f32 %v2898_v20  ;;  %vm3026_vm7 = vmor %vm1394_vm4, %vm1395_vm0  ;;  %vm1439_vm9 = vweird.f32 %v2900_v56 }
 0x437   : > { %v968_v49 = vadd.f32 %v956_v10, %v944_v16  ;;  %v1412_v18 = vsel %vm2971_vm2, %v2877_v37, %v1408_v57  ;;  %v1333_v37 = vmul.f32 %v2880_v52, %v871_v47 }
 0x438   : > { %v1124_v6 = vrot.slane %v1118_v14, 1  ;;  %v1142_v43 = vrot.slane %v1118_v14, 2  ;;  %v2954_v15 = vpop.eup %1805 }
 0x439   : > { %v974_v38 = vrot.slane %v968_v49, 1  ;;  %v992_v31 = vrot.slane %v968_v49, 2  ;;  %vm1425_vm8 = vweird.f32 %v2954_v15 }
 0x43a   : > { %v1127_v4 = vsel %vm517_vm1, %v1121_v35, %v1124_v6  ;;  %v1130_v11 = vsel %vm517_vm1, %v1124_v6, %v1121_v35  ;;  %v1145_v51 = vsel %vm722_vm13, %v1139_v8, %v1142_v43  ;;  %v1148_v9 = vsel %vm722_vm13, %v1142_v43, %v1139_v8  ;;  %v2984_v6 = vpop.eup %1807  ;;  %vm3061_vm10 = vmor %vm1424_vm6, %vm1425_vm8 }
 0x43b   : > { %v977_v59 = vsel %vm517_vm1, %v971_v24, %v974_v38  ;;  %v980_v2 = vsel %vm517_vm1, %v974_v38, %v971_v24  ;;  %v1135_v25 = vadd.f32 %v1127_v4, %v1117_v54  ;;  %v1136_v58 = vadd.f32 %v1130_v11, %v1118_v14 }
 0x43c   : > { %v985_v40 = vadd.f32 %v977_v59, %v967_v50  ;;  %v986_v33 = vadd.f32 %v980_v2, %v968_v49  ;;  %v995_v36 = vsel %vm722_vm13, %v989_v3, %v992_v31  ;;  %v998_v30 = vsel %vm722_vm13, %v992_v31, %v989_v3 }
 0x43d   : > { %v2964_v16 = vpop.permute.xlu0 %1225  ;;  %v1153_v54 = vadd.f32 %v1145_v51, %v1135_v25  ;;  %v1154_v17 = vadd.f32 %v1148_v9, %v1136_v58  ;;  %v1166_v49 = vmul.f32 %v872_v13, %v872_v13  ;;  %v2979_v35 = vmul.f32 %v871_v47, %v2858_v60 }
 0x43e   : > { %v1003_v50 = vadd.f32 %v995_v36, %v985_v40  ;;  %v1004_v22 = vadd.f32 %v998_v30, %v986_v33  ;;  %v1222_v10 = vpop.permute.xlu1 %1221  ;;  %v1420_v24 = vmul.f32 %v2954_v15, %v2898_v20  ;;  %v2988_v4 = vmul.f32 %v872_v13, %v2865_v0 }
 0x43f   : > { %v1159_v38 = vmul.f32 0.11111111, %v1153_v54  ;;  %v1239_v31 = vadd.f32 %v1222_v10, %v2360_v29  ;;  %v1160_v43 = vmul.f32 0.11111111, %v1154_v17  ;;  %v1334_v60 = vmul.f32 %v2889_v39, %v872_v13 }
 0x440   : > { %v1009_v45 = vmul.f32 0.11111111, %v1003_v50  ;;  %v1010_v3 = vmul.f32 0.11111111, %v1004_v22  ;;  %v2997_v2 = vsel %vm2940_vm15, %v2930_v42, %v1412_v18  ;;  %v1393_v29 = vadd.f32 %v2867_v62, %v1392_v21 }
 0x441   : > { %v1171_v59 = vsub.f32 %v1159_v38, %v1165_v7  ;;  %v1172_v57 = vsub.f32 %v1160_v43, %v1166_v49  ;;  %v1421_v40 = vsub.f32 1.0, %v1420_v24  ;;  %v1435_v0 = vmul.f32 %v2984_v6, %v2900_v56 }
 0x442   : > { %v1021_v11 = vsub.f32 %v1009_v45, %v2871_v32  ;;  %v1022_v8 = vsub.f32 %v1010_v3, %v2886_v23  ;;  %v1263_v13 = vadd.f32 %v2818_v19, %v1239_v31  ;;  %v3005_v58 = vadd.f32 0.0001, %v1333_v37 }
 0x443   : > { %v1375_v47 = vadd.f32 %v1171_v59, %v1165_v7  ;;  %v1376_v33 = vadd.f32 %v1172_v57, %v1166_v49  ;;  %v1401_v21 = vor.u32 1.1754944e-38, %v1400_v34  ;;  %v3017_v30 = vadd.f32 0.0001, %v1334_v60 }
 0x444   : > { %v1363_v52 = vadd.f32 %v1021_v11, %v2871_v32  ;;  %v1364_v39 = vadd.f32 %v1022_v8, %v2886_v23  ;;  %v1422_v51 = vmul.f32 %v2954_v15, %v1421_v40  ;;  %v1436_v44 = vsub.f32 1.0, %v1435_v0 }
 0x445   : > { %v1248_v25 = vpop.permute.xlu0 %1247  ;;  %v1381_v5 = vadd.f32 0.0009, %v1375_v47  ;;  %v1382_v36 = vadd.f32 0.0009, %v1376_v33  ;;  %v1269_v50 = vrot.slane %v1263_v13, 1  ;;  %v1397_v17 = vsel %vm3026_vm7, %v2867_v62, %v1393_v29 }
 0x446   : > { %v1369_v32 = vadd.f32 0.0001, %v1363_v52  ;;  %v1370_v23 = vadd.f32 0.0001, %v1364_v39  ;;  %v1228_v7 = vpop.permute.xlu1 %1227  ;;  %v1264_v19 = vadd.f32 %v1248_v25, %v2923_v63  ;;  %v1428_v10 = vand.u32 2147483647, %v2898_v20 }
 0x447   : > { %v1242_v63 = vadd.f32 %v1228_v7, %v2378_v26  ;;  %v1430_v14 = vand.u32 2147483648, %v2898_v20  ;;  %v1287_v18 = vrot.slane %v1263_v13, 2  ;;  %v1423_v26 = vadd.f32 %v2954_v15, %v1422_v51 }
 0x448   : > { %v3020_v9 = vmul.f32 %v1381_v5, %v1369_v32  ;;  %v1272_v22 = vrot.slane %v1264_v19, 1  ;;  %v1290_v54 = vrot.slane %v1264_v19, 2  ;;  %v3036_v49 = vmul.f32 %v1382_v36, %v1370_v23  ;;  %v3277_v23 = vld [vmem:[#allocation8_spill] sm:$0xff] }
 0x449   : > { %v1437_v38 = vmul.f32 %v2984_v6, %v1436_v44  ;;  %v1241_v31 = vadd.f32 %v2964_v16, %v2356_v27  ;;  %v1266_v43 = vadd.f32 %v2842_v46, %v1242_v63  ;;  %v1402_v57 = vsel %vm3009_vm5, %v1401_v21, %v1397_v17  ;;  %v3278_v44 = vld [vmem:[#allocation5_spill] sm:$0xff] }
 0x44a   : > { %v1275_v61 = vsel %vm517_vm1, %v1269_v50, %v1272_v22  ;;  %v1278_v24 = vsel %vm517_vm1, %v1272_v22, %v1269_v50  ;;  %1809 = vrcp.f32 %v3020_v9  ;;  %v1293_v3 = vsel %vm722_vm13, %v1287_v18, %v1290_v54 }
 0x44b   : > { %v1281_v45 = vadd.f32 %v1275_v61, %v1263_v13  ;;  %v1282_v62 = vadd.f32 %v1278_v24, %v1264_v19  ;;  %v1296_v37 = vsel %vm722_vm13, %v1290_v54, %v1287_v18  ;;  %1811 = vrcp.f32 %v3036_v49  ;;  %v3276_v13 = vld [vmem:[#allocation7_spill] sm:$0xff] }
 0x44c   : > { %vm3065_vm11 = vcmp.eq.f32.partialorder %v1428_v10, 8.507059e+37  ;;  %v1427_v40 = vsel %vm3061_vm10, %v2954_v15, %v1423_v26  ;;  %v1431_v0 = vor.u32 1.1754944e-38, %v1430_v14  ;;  %v1438_v39 = vadd.f32 %v2984_v6, %v1437_v38 }
 0x44d   : > { %v1299_v60 = vadd.f32 %v1293_v3, %v1281_v45  ;;  %v1300_v11 = vadd.f32 %v1296_v37, %v1282_v62  ;;  %v1230_v59 = vpop.permute.xlu0 %1229  ;;  %vm1440_vm3 = vweird.f32 %v2984_v6  ;;  %v1443_v20 = vand.u32 2147483647, %v2900_v56 }
 0x44e   : > { %v1250_v8 = vpop.permute.xlu1 %1249  ;;  %v1273_v47 = vrot.slane %v1266_v43, 1  ;;  %v1291_v32 = vrot.slane %v1266_v43, 2  ;;  %v3081_v15 = vsel %vm3065_vm11, %v1431_v0, %v1427_v40  ;;  %v1445_v7 = vand.u32 2147483648, %v2900_v56  ;;  %vm3093_vm14 = vmor %vm1439_vm9, %vm1440_vm3  ;;  %v3283_v0 = vld [vmem:[#allocation9_spill] sm:$0xff] }
 0x44f   : > { %v1305_v16 = vmul.f32 0.11111111, %v1299_v60  ;;  %v1265_v29 = vadd.f32 %v1250_v8, %v1241_v31  ;;  %v1306_v52 = vmul.f32 0.11111111, %v1300_v11  ;;  %v1243_v50 = vadd.f32 %v1230_v59, %v3278_v44 }
 0x450   : > { %v3076_v21 = vpop.eup %1809  ;;  %v1442_v10 = vsel %vm3093_vm14, %v2984_v6, %v1438_v39  ;;  %v1446_v3 = vor.u32 1.1754944e-38, %v1445_v7  ;;  %v3281_v6 = vld [vmem:[#allocation6_spill] sm:$0xff]  ;;  %vm1444_vm15 = vcmp.eq.f32.partialorder %v1443_v20, 8.507059e+37  ;;  %v1458_v39 = vand.u32 2147483647, %v3020_v9 }
 0x451   : > { %v1317_v33 = vsub.f32 %v1305_v16, %v3276_v13  ;;  %v1270_v25 = vrot.slane %v1265_v29, 1  ;;  %v1288_v42 = vrot.slane %v1265_v29, 2  ;;  %v1318_v5 = vsub.f32 %v1306_v52, %v3277_v23  ;;  %v3097_v54 = vpop.eup %1811 }
 0x452   : > { %v1450_v61 = vmul.f32 %v3076_v21, %v3020_v9  ;;  %v1267_v31 = vadd.f32 %v2875_v28, %v1243_v50  ;;  %v1465_v37 = vmul.f32 %v3097_v54, %v3036_v49  ;;  %v1447_v16 = vsel %vm1444_vm15, %v1446_v3, %v1442_v10  ;;  %v3282_v28 = vld [vmem:[#allocation10_spill] sm:$0xff] }
 0x453   : > { %v1341_v19 = vmul.f32 2.0, %v1317_v33  ;;  %v1276_v36 = vsel %vm517_vm1, %v1270_v25, %v1273_v47  ;;  %v1279_v51 = vsel %vm517_vm1, %v1273_v47, %v1270_v25  ;;  %v1342_v34 = vmul.f32 2.0, %v1318_v5 }
 0x454   : > { %v1283_v63 = vadd.f32 %v1276_v36, %v1265_v29  ;;  %v1284_v17 = vadd.f32 %v1279_v51, %v1266_v43  ;;  %v1294_v18 = vsel %vm722_vm13, %v1288_v42, %v1291_v32  ;;  %v1297_v56 = vsel %vm722_vm13, %v1291_v32, %v1288_v42 }
 0x455   : > { %v1347_v14 = vadd.f32 0.0009, %v1341_v19  ;;  %v1348_v24 = vadd.f32 0.0009, %v1342_v34  ;;  %v1256_v59 = vpop.permute.xlu0 %1255  ;;  %v1451_v29 = vsub.f32 1.0, %v1450_v61  ;;  %v1271_v47 = vrot.slane %v1267_v31, 1 }
 0x456   : > { %v1301_v45 = vadd.f32 %v1294_v18, %v1283_v63  ;;  %v1302_v26 = vadd.f32 %v1297_v56, %v1284_v17  ;;  %v1232_v62 = vpop.permute.xlu1 %1231  ;;  %vm1454_vm0 = vweird.f32 %v3020_v9  ;;  %v1466_v20 = vsub.f32 1.0, %v1465_v37  ;;  %v3284_v56 = vld [vmem:[#allocation3_spill] sm:$0xff] }
 0x457   : > { %v1353_v38 = vmul.f32 %v1347_v14, %v2896_v48  ;;  %v1244_v43 = vadd.f32 %v1232_v62, %v3281_v6  ;;  %v1354_v60 = vmul.f32 %v1348_v24, %v2904_v53  ;;  %v1460_v25 = vand.u32 2147483648, %v3020_v9 }
 0x458   : > { %v1307_v11 = vmul.f32 0.11111111, %v1301_v45  ;;  %v1308_v8 = vmul.f32 0.11111111, %v1302_v26  ;;  %v1473_v42 = vand.u32 2147483647, %v3036_v49  ;;  %v1452_v5 = vmul.f32 %v3076_v21, %v1451_v29 }
 0x459   : > { %v1268_v27 = vadd.f32 %v1256_v59, %v1244_v43  ;;  %v3114_v46 = vmul.f32 %v1402_v57, %v1353_v38  ;;  %v3117_v48 = vmul.f32 %v2997_v2, %v1354_v60  ;;  %v1289_v2 = vrot.slane %v1267_v31, 2 }
 0x45a   : > { %v1319_v40 = vsub.f32 %v1307_v11, %v3282_v28  ;;  %v1320_v52 = vsub.f32 %v1308_v8, %v3283_v0  ;;  %vm1469_vm2 = vweird.f32 %v3036_v49  ;;  %v1467_v34 = vmul.f32 %v3097_v54, %v1466_v20 }
 0x45b   : > { %v1274_v53 = vrot.slane %v1268_v27, 1  ;;  %v1292_v13 = vrot.slane %v1268_v27, 2  ;;  %v1475_v63 = vand.u32 2147483648, %v3036_v49  ;;  %v1453_v24 = vadd.f32 %v3076_v21, %v1452_v5 }
 0x45c   : > { %v1343_v33 = vmul.f32 2.0, %v1319_v40  ;;  %v1344_v57 = vmul.f32 2.0, %v1320_v52  ;;  %vm1455_vm4 = vweird.f32 %v3076_v21  ;;  %vm3142_vm5 = vcmp.eq.f32.partialorder %v1458_v39, 8.507059e+37 }
 0x45d   : > { %v1277_v32 = vsel %vm517_vm1, %v1271_v47, %v1274_v53  ;;  %v1280_v23 = vsel %vm517_vm1, %v1274_v53, %v1271_v47  ;;  %v1295_v50 = vsel %vm722_vm13, %v1289_v2, %v1292_v13  ;;  %v1298_v22 = vsel %vm722_vm13, %v1292_v13, %v1289_v2  ;;  %v1531_v37 = vpop.permute.xlu0 %1530  ;;  %vm3157_vm8 = vmor %vm1454_vm0, %vm1455_vm4 }
 0x45e   : > { %v1349_v7 = vadd.f32 0.0009, %v1343_v33  ;;  %v1350_v19 = vadd.f32 0.0009, %v1344_v57  ;;  %v1285_v36 = vadd.f32 %v1277_v32, %v1267_v31  ;;  %v1286_v51 = vadd.f32 %v1280_v23, %v1268_v27  ;;  %v1523_v44 = vpop.permute.xlu1 %1522 }
 0x45f   : > { %v1528_v61 = vadd.f32 %v1523_v44, %v3284_v56  ;;  %v1468_v31 = vadd.f32 %v3097_v54, %v1467_v34  ;;  %vm1470_vm6 = vweird.f32 %v3097_v54  ;;  %vm3149_vm7 = vcmp.eq.f32.partialorder %v1473_v42, 8.507059e+37 }
 0x460   : > { %v1355_v17 = vmul.f32 %v1349_v7, %v2917_v41  ;;  %v1303_v10 = vadd.f32 %v1295_v50, %v1285_v36  ;;  %v1304_v14 = vadd.f32 %v1298_v22, %v1286_v51  ;;  %v1356_v18 = vmul.f32 %v1350_v19, %v2912_v12  ;;  %vm3171_vm10 = vmor %vm1469_vm2, %vm1470_vm6 }
 0x461   : > { %v1461_v41 = vor.u32 1.1754944e-38, %v1460_v25  ;;  %v1479_v11 = vsub.f32 1.0, %v3114_v46  ;;  %v1536_v8 = vadd.f32 %v1531_v37, %v1528_v61  ;;  %v1457_v59 = vsel %vm3157_vm8, %v3076_v21, %v1453_v24  ;;  %v3294_v46 = vld [vmem:[#allocation2_spill] sm:$0xff] }
 0x462   : > { %v1309_v26 = vmul.f32 0.11111111, %v1303_v10  ;;  %v1310_v62 = vmul.f32 0.11111111, %v1304_v14  ;;  %v1433_v3 = vmul.f32 %v3081_v15, %v1355_v17  ;;  %v1448_v38 = vmul.f32 %v1447_v16, %v1356_v18 }
 0x463   : > { %v1476_v15 = vor.u32 1.1754944e-38, %v1475_v63  ;;  %v1480_v27 = vsub.f32 1.0, %v3117_v48  ;;  %vm1505_vm11 = vcmp.lt.s32.totalorder %v3294_v46, 14  ;;  %v1472_v21 = vsel %vm3171_vm10, %v3097_v54, %v1468_v31 }
 0x464   : > { %v1321_v6 = vsub.f32 %v1309_v26, %v2979_v35  ;;  %v1322_v43 = vsub.f32 %v1310_v62, %v2988_v4  ;;  %v3291_v35 = vld [vmem:[#allocation4_spill] sm:$0xff]  ;;  %v1481_v48 = vsub.f32 1.0, %v1433_v3  ;;  %v1482_v40 = vsub.f32 1.0, %v1448_v38 }
 0x465   : > { %vm1503_vm9 = vcmp.lt.s32.totalorder %v3291_v35, 14  ;;  %v1462_v39 = vsel %vm3142_vm5, %v1461_v41, %v1457_v59  ;;  %v1485_v49 = vmul.f32 0.5, %v1479_v11  ;;  %v1538_v47 = vrot.slane %v1536_v8, 1 }
 0x466   : > { %v1345_v4 = vmul.f32 2.0, %v1321_v6  ;;  %v1346_v16 = vmul.f32 2.0, %v1322_v43  ;;  %v1533_v29 = vpop.permute.xlu1 %1532  ;;  %v1486_v20 = vmul.f32 0.5, %v1480_v27  ;;  %v1544_v33 = vrot.slane %v1536_v8, 2  ;;  %vm1507_vm3 = vmand %vm1503_vm9, %vm1505_vm11 }
 0x467   : > { %v1537_v28 = vadd.f32 %v1533_v29, %v2938_v55  ;;  %v1477_v54 = vsel %vm3149_vm7, %v1476_v15, %v1472_v21  ;;  %v1487_v2 = vmul.f32 0.5, %v1481_v48  ;;  %v1488_v32 = vmul.f32 0.5, %v1482_v40 }
 0x468   : > { %v1352_v0 = vadd.f32 0.0009, %v1346_v16  ;;  %v1351_v52 = vadd.f32 0.0009, %v1345_v4  ;;  %v1491_v36 = vmax.f32 %v1485_v49, 0.0  ;;  %v1492_v51 = vmax.f32 %v1486_v20, 0.0 }
 0x469   : > { %v1539_v53 = vrot.slane %v1537_v28, 1  ;;  %v1545_v13 = vrot.slane %v1537_v28, 2  ;;  %v1493_v63 = vmax.f32 %v1487_v2, 0.0  ;;  %v1494_v17 = vmax.f32 %v1488_v32, 0.0 }
 0x46a   : > { %v1357_v57 = vmul.f32 %v1351_v52, %v3005_v58  ;;  %v1358_v55 = vmul.f32 %v1352_v0, %v3017_v30  ;;  %v1860_v10 = vmov 0.0   ;;  %v1497_v26 = vmin.f32 %v1491_v36, 1.0 }
 0x46b   : > { %v1540_v25 = vsel %vm517_vm1, %v1538_v47, %v1539_v53  ;;  %v1541_v42 = vsel %vm517_vm1, %v1539_v53, %v1538_v47  ;;  %v1546_v58 = vsel %vm722_vm13, %v1544_v33, %v1545_v13  ;;  %v1547_v30 = vsel %vm722_vm13, %v1545_v13, %v1544_v33  ;;  %v1558_v33 = vld [vmem:[%s2250_s29] sm:$0x1] }
 0x46c   : > { %v1542_v23 = vadd.f32 %v1540_v25, %v1536_v8  ;;  %v1543_v5 = vadd.f32 %v1541_v42, %v1537_v28  ;;  %v1463_v7 = vmul.f32 %v1462_v39, %v1357_v57  ;;  %v1478_v19 = vmul.f32 %v1477_v54, %v1358_v55 }
 0x46d   : > { %v1738_v14 = vsel %vm1503_vm9, 1.0, %v1860_v10  ;;  %v1739_v18 = vsel %vm1507_vm3, 1.0, %v1860_v10  ;;  %v1498_v1 = vmin.f32 %v1492_v51, 1.0  ;;  %v1499_v31 = vmin.f32 %v1493_v63, 1.0 }
 0x46e   : > { %v1548_v44 = vadd.f32 %v1546_v58, %v1542_v23  ;;  %v1549_v50 = vadd.f32 %v1547_v30, %v1543_v5  ;;  %v1483_v22 = vsub.f32 1.0, %v1463_v7  ;;  %v1484_v34 = vsub.f32 1.0, %v1478_v19 }
 0x46f   : > { %v1500_v12 = vmin.f32 %v1494_v17, 1.0  ;;  %vm1559_vm1 = vcmp.eq.s32.totalorder %v3291_v35, 3 }
 0x470   : > { %v1550_v56 = vmul.f32 0.11111111, %v1548_v44  ;;  %v1551_v61 = vmul.f32 0.11111111, %v1549_v50  ;;  %v1489_v24 = vmul.f32 0.5, %v1483_v22  ;;  %v1490_v45 = vmul.f32 0.5, %v1484_v34 }
 0x472   : > { %v1495_v62 = vmax.f32 %v1489_v24, 0.0  ;;  %v1496_v3 = vmax.f32 %v1490_v45, 0.0  ;;  %v1556_v38 = vmul.f32 %v1738_v14, %v1550_v56  ;;  %v1557_v41 = vmul.f32 %v1739_v18, %v1551_v61 }
 0x474   : > { %v1501_v6 = vmin.f32 %v1495_v62, 1.0  ;;  %v1560_v43 = vmul.f32 %v1556_v38, %v1497_v26  ;;  %v1561_v37 = vmul.f32 %v1557_v41, %v1498_v1  ;;  %v1562_v60 = vmul.f32 %v1556_v38, %v1499_v31 }
 0x475   : > { %v1502_v15 = vmin.f32 %v1496_v3, 1.0  ;;  %v1563_v11 = vmul.f32 %v1557_v41, %v1500_v12 }
 0x476   : > { %v1566_v8 = vsel %vm333_vm12, %v1560_v43, 0.0  ;;  %v1567_v59 = vsel %vm333_vm12, %v1561_v37, 0.0  ;;  %v1564_v4 = vmul.f32 %v1556_v38, %v1501_v6  ;;  %v1569_v16 = vsel %vm333_vm12, %v1562_v60, 0.0 }
 0x477   : > { %v1568_v27 = vadd.f32 %v1567_v59, %v1566_v8  ;;  %v1565_v9 = vmul.f32 %v1557_v41, %v1502_v15  ;;  %v1571_v46 = vsel %vm333_vm12, %v1563_v11, 0.0 }
 0x478   : > { %v1573_v21 = vsel %vm333_vm12, %v1564_v4, 0.0 }
 0x479   : > { %v1570_v29 = vadd.f32 %v1569_v16, %v1568_v27  ;;  %v1575_v40 = vsel %vm333_vm12, %v1565_v9, 0.0 }
 0x47b   : > { %v1572_v28 = vadd.f32 %v1571_v46, %v1570_v29 }
 0x47d   : > { %v1574_v48 = vadd.f32 %v1573_v21, %v1572_v28 }
 0x47f   : > { %v1576_v0 = vadd.f32 %v1575_v40, %v1574_v48 }
 0x481   : > { %1577 = vadd.xlane.f32.xlu2 %v1576_v0 }
 0x4f4   : > { %v1578_v52 = vpop.xlane.xlu2 %1577 }
 0x4f5   : > { %v1579_v39 = vrot.slane %v1578_v52, 4 }
 0x4f7   : > { %v1580_v49 = vadd.f32 %v1579_v39, %v1578_v52 }
 0x4f9   : > { %v1581_v47 = vrot.slane %v1580_v49, 2 }
 0x4fb   : > { %v1582_v53 = vadd.f32 %v1581_v47, %v1580_v49 }
 0x4fd   : > { %v1583_v13 = vrot.slane %v1582_v53, 1 }
 0x4ff   : > { %v1584_v20 = vadd.f32 %v1583_v13, %v1582_v53 }
 0x501   : > { %1751 = vpush %v1584_v20 }
 0x532   : > { %s1752_s21 = spop %1751 }
 0x533   : > { %v1586_v57 = vstv %s1752_s21 }
 0x534   : > { %v1587_v55 = vsel %vm1559_vm1, %v1586_v57, 0.0 }
 0x535   : > { %v1588_v54 = vadd.f32 %v1587_v55, %v1558_v33 }
 0x537   : > { %1589 = vst [vmem:[%s2250_s29] sm:$0x1] %v1588_v54 }
 0x538 PF: > { %s13_s16 = sadd.s32 1, %s1851_s16   ;;  %s3295_s12 = smov %s1843_s14 }
 0x539   : > { %p10_p8 = scmp.ge.s32.totalorder %s13_s16, 6   ;;  %s3296_s13 = smov %s1847_s15 }
 0x53a   : > { %s3297_s14 = smov %s3300_s17  ;;  %s3298_s15 = smov %s3304_s18 }
 0x53b   :  { %12 = sbr.rel (!%p10_p8) target bundleno = 3 (0x3), region = 72 }

</bundles_post_ra>
